<compile_context>
chip_gen: v7x
topology: tpu7x:2x2x1
jax: 0.10.0
libtpu: 0.0.40
codegen_flags: <defaults>
</compile_context>

<pallas_src>
import functools

import jax
import jax.numpy as jnp
from jax.experimental import pallas as pl
from jax.experimental.pallas import tpu as pltpu

EPS = 1e-5
HIGHEST = jax.lax.Precision.HIGHEST


def _round_up(n, m):
    return ((n + m - 1) // m) * m


def _erf(x):
    # Abramowitz & Stegun 7.1.26 (max abs err ~1.5e-7); avoids relying on an
    # erf primitive lowering inside the Pallas kernel.
    a1, a2, a3, a4, a5 = 0.254829592, -0.284496736, 1.421413741, -1.453152027, 1.061405429
    p = 0.3275911
    s = jnp.where(x < 0.0, -1.0, 1.0)
    ax = jnp.abs(x)
    t = 1.0 / (1.0 + p * ax)
    poly = ((((a5 * t + a4) * t + a3) * t + a2) * t + a1) * t
    return s * (1.0 - poly * jnp.exp(-ax * ax))


def _gelu(x):  # exact (erf-based) GELU == torch.nn.GELU() default
    return 0.5 * x * (1.0 + _erf(x * 0.7071067811865476))


def _layernorm(x, w, b):
    # Folded-affine layernorm; variance as E[x^2] - mean^2 (single pass).
    mu = jnp.mean(x, axis=-1, keepdims=True)
    var = jnp.mean(x * x, axis=-1, keepdims=True) - mu * mu
    return (x - mu) * jax.lax.rsqrt(var + EPS) * w + b


# ----------------------------- Pallas kernel --------------------------------
def dit_block_kernel(x_ref, vh_ref, v4_ref, wam_ref, mf2w_ref, f1w_ref, f2w_ref,
                     o_ref, *, precision):
    def dot(a, b):
        return jnp.dot(a, b, precision=precision,
                       preferred_element_type=jnp.float32)

    vh = vh_ref[...]                         # (6, H) packed per-feature rows
    ln1_w, ln1_b = vh[0:1], vh[1:2]          # LN1 affine (scale_shift1 folded in)
    ln2_w, ln2_b = vh[2:3], vh[3:4]          # LN2 affine (scale_shift2 folded in)
    mf2_b, f2_b = vh[4:5], vh[5:6]           # MHA-ffn2 bias (+shift1), ffn2 bias (+shift2)
    v4 = v4_ref[...]                         # (2, 4H)
    b_am, f1_b = v4[0:1], v4[1:2]            # folded attention->ffn1 bias, ffn1 bias

    # Token slices of the (TB, 3, H) block (static middle-dim ref slices).
    x0 = x_ref[:, 0, :]
    x1 = x_ref[:, 1, :]
    x2 = x_ref[:, 2, :]

    # --- MHA branch: depends only on token 2 (length-1 softmax eliminated,
    #     qkv chunk-sum and first FFN matmul folded into wam/b_am offline). ---
    h = _layernorm(x2, ln1_w, ln1_b)                        # (TB, H)
    g = _gelu(dot(h, wam_ref[...]) + b_am)                  # (TB, 4H), lane-dense
    m = dot(g, mf2w_ref[...]) + mf2_b                       # (TB, H); includes shift1

    # --- per-token: residual + LN2 + outer FFN + residual ---
    f1_w = f1w_ref[...]
    f2_w = f2w_ref[...]
    for t, xt in enumerate((x0, x1, x2)):                   # static unroll (T = 3)
        r = xt + m                                          # residual + broadcast MHA out
        hh = _layernorm(r, ln2_w, ln2_b)
        ff = _gelu(dot(hh, f1_w) + f1_b)                    # (TB, 4H), lane-dense
        ff = dot(ff, f2_w) + f2_b                           # (TB, H); includes shift2
        o_ref[:, t, :] = r + ff


def dit_block_pallas(x, params, *, precision=HIGHEST, batch_block=512):
    """Fused DiTBlock forward.  x: (B, T=3, H) float32."""
    B, T, H = x.shape
    assert T == 3, "PyTorch DiTBlock as written requires T == 3 (and n_heads == 1)"
    (ln1_w, ln1_b, ss1_sc, ss1_sh,
     qkv_w, qkv_b, mf1_w, mf1_b, mf2_w, mf2_b, sh1,
     ln2_w, ln2_b, ss2_sc, ss2_sh, f1_w, f1_b, f2_w, f2_b, sh2) = params

    # ---- offline algebraic folds (exact; plain XLA, done once per call) ----
    w_attn = qkv_w[:, 0:H] + qkv_w[:, H:2 * H] + qkv_w[:, 2 * H:3 * H]     # (H, H)
    b_attn = qkv_b[:, 0:H] + qkv_b[:, H:2 * H] + qkv_b[:, 2 * H:3 * H]     # (1, H)
    w_am = jnp.dot(w_attn, mf1_w, precision=HIGHEST)                       # (H, 4H)
    b_am = jnp.dot(b_attn, mf1_w, precision=HIGHEST) + mf1_b               # (1, 4H)
    ln1_wf = ln1_w * ss1_sc
    ln1_bf = ln1_b * ss1_sc + ss1_sh
    ln2_wf = ln2_w * ss2_sc
    ln2_bf = ln2_b * ss2_sc + ss2_sh
    mf2_bf = mf2_b + sh1
    f2_bf = f2_b + sh2

    vec_h = jnp.concatenate([ln1_wf, ln1_bf, ln2_wf, ln2_bf, mf2_bf, f2_bf],
                            axis=0)                                        # (6, H)
    vec_4h = jnp.concatenate([b_am, f1_b], axis=0)                         # (2, 4H)

    # ---- batch blocking on the untiled leading axis (no transposes) ----
    # >= 2 grid steps whenever B allows it (v7x has 2 TensorCores); TB kept a
    # multiple of 8 so the only pad is a small conditional zero-pad on B.
    TB = min(batch_block, _round_up(max(pl.cdiv(B, 2), 1), 8))
    nb = pl.cdiv(B, TB)
    B_pad = nb * TB
    xin = x if B_pad == B else jnp.pad(x, ((0, B_pad - B), (0, 0), (0, 0)))

    const2 = lambda i: (0, 0)
    out = pl.pallas_call(
        functools.partial(dit_block_kernel, precision=precision),
        out_shape=jax.ShapeDtypeStruct((B_pad, T, H), x.dtype),
        grid_spec=pltpu.PrefetchScalarGridSpec(
            num_scalar_prefetch=0,
            grid=(nb,),
            in_specs=[
                pl.BlockSpec((TB, T, H), lambda i: (i, 0, 0)),   # x (natural layout)
                pl.BlockSpec((6, H), const2),                    # packed (1,H) params
                pl.BlockSpec((2, 4 * H), const2),                # packed (1,4H) biases
                pl.BlockSpec((H, 4 * H), const2),                # folded attn->ffn1 weight
                pl.BlockSpec((4 * H, H), const2),                # MHA ffn2 weight
                pl.BlockSpec((H, 4 * H), const2),                # ffn1 weight
                pl.BlockSpec((4 * H, H), const2),                # ffn2 weight
            ],
            out_specs=pl.BlockSpec((TB, T, H), lambda i: (i, 0, 0)),
        ),
        compiler_params=pltpu.CompilerParams(
            dimension_semantics=("parallel",)),   # batch blocks spread over v7x TCs
    )(xin, vec_h, vec_4h, w_am, mf2_w, f1_w, f2_w)

    return out if B_pad == B else out[:B]


# -------------------------- pure-JAX reference -------------------------------
def dit_block_ref(x, params):
    (ln1_w, ln1_b, ss1_sc, ss1_sh,
     qkv_w, qkv_b, mf1_w, mf1_b, mf2_w, mf2_b, sh1,
     ln2_w, ln2_b, ss2_sc, ss2_sh, f1_w, f1_b, f2_w, f2_b, sh2) = params
    B, T, H = x.shape
    nh, hd = 1, H

    def ln(v, w, b):
        mu = v.mean(-1, keepdims=True)
        var = ((v - mu) ** 2).mean(-1, keepdims=True)
        return (v - mu) / jnp.sqrt(var + EPS) * w + b

    residual = x
    h = ln(x, ln1_w, ln1_b) * ss1_sc + ss1_sh
    qkv = jnp.einsum('bti,io->bto', h, qkv_w, precision=HIGHEST) + qkv_b
    xr = qkv.reshape(B, T, 3, nh, hd).transpose(2, 0, 1, 3, 4)   # 'b t (n h s) -> n b t h s'
    q, k, v = xr[:, :, 0:1], xr[:, :, 1:2], xr[:, :, 2:3]        # torch.chunk(x, 3, dim=2)
    # torch einsum sums ellipsis dims that do not appear in the output:
    wei = jnp.einsum('ebnth,ebnTh->bntT', q, k, precision=HIGHEST) / (H ** 0.5)
    wei = jax.nn.softmax(wei, axis=-1)                            # dropout1 = identity
    a = jnp.einsum('bntT,ebnTh->bnth', wei, v, precision=HIGHEST)
    a = a.transpose(0, 2, 1, 3).reshape(B, nh, (T // 3) * hd)     # 'b n t h -> b t (n h)'
    m = jax.nn.gelu(jnp.einsum('bti,io->bto', a, mf1_w, precision=HIGHEST) + mf1_b,
                    approximate=False)
    m = jnp.einsum('bti,io->bto', m, mf2_w, precision=HIGHEST) + mf2_b  # dropout2 = identity
    x2 = residual + (m + sh1)
    residual2 = x2
    h2 = ln(x2, ln2_w, ln2_b) * ss2_sc + ss2_sh
    f = jax.nn.gelu(jnp.einsum('bti,io->bto', h2, f1_w, precision=HIGHEST) + f1_b,
                    approximate=False)
    f = jnp.einsum('bti,io->bto', f, f2_w, precision=HIGHEST) + f2_b
    return residual2 + (f + sh2)


# ---------------------------------- main --------------------------------------
if __name__ == "__main__":
    B, T, H = 2, 3, 32        # n_heads = 1, head_dim = H (forced by module semantics)
    key = jax.random.PRNGKey(0)
    ks = jax.random.split(key, 24)

    def nrm(k, shape, scale=1.0):
        return (scale * jax.random.normal(k, shape)).astype(jnp.float32)

    # Deterministic synthetic parameters; 1-D params stored as (1, D).
    params = [
        1.0 + 0.1 * nrm(ks[0], (1, H)),            # layernorm1.weight
        0.1 * nrm(ks[1], (1, H)),                  # layernorm1.bias
        1.0 + 0.1 * nrm(ks[2], (1, H)),            # scale_shift1.scale
        0.1 * nrm(ks[3], (1, H)),                  # scale_shift1.shift
        nrm(ks[4], (H, 3 * H), H ** -0.5),         # MHA.qkv.weight (stored (in, out))
        0.1 * nrm(ks[5], (1, 3 * H)),              # MHA.qkv.bias
        nrm(ks[6], (H, 4 * H), H ** -0.5),         # MHA.ffn[0].weight
        0.1 * nrm(ks[7], (1, 4 * H)),              # MHA.ffn[0].bias
        nrm(ks[8], (4 * H, H), (4 * H) ** -0.5),   # MHA.ffn[2].weight
        0.1 * nrm(ks[9], (1, H)),                  # MHA.ffn[2].bias
        0.1 * nrm(ks[10], (1, H)),                 # shift1.shift
        1.0 + 0.1 * nrm(ks[11], (1, H)),           # layernorm2.weight
        0.1 * nrm(ks[12], (1, H)),                 # layernorm2.bias
        1.0 + 0.1 * nrm(ks[13], (1, H)),           # scale_shift2.scale
        0.1 * nrm(ks[14], (1, H)),                 # scale_shift2.shift
        nrm(ks[15], (H, 4 * H), H ** -0.5),        # ffn[0].weight
        0.1 * nrm(ks[16], (1, 4 * H)),             # ffn[0].bias
        nrm(ks[17], (4 * H, H), (4 * H) ** -0.5),  # ffn[2].weight
        0.1 * nrm(ks[18], (1, H)),                 # ffn[2].bias
        0.1 * nrm(ks[19], (1, H)),                 # shift2.shift
    ]
    x = nrm(ks[20], (B, T, H))

    # Accurate path (default): HIGHEST-precision matmuls -> tight f32 agreement.
    ref = dit_block_ref(x, params)
    out = dit_block_pallas(x, params)
    jax.block_until_ready(out)
    assert out.shape == (B, T, H) and out.dtype == jnp.float32
    max_err = float(jnp.max(jnp.abs(out - ref)))
    if not bool(jnp.allclose(out, ref, rtol=1e-3, atol=1e-3)):
        raise AssertionError(f"Pallas kernel mismatch vs reference, max_err={max_err}")

    # Multi-block + padded-remainder path (grid = 2 parallel blocks, B % TB != 0).
    B2 = 19
    x_mb = nrm(ks[21], (B2, T, H))
    ref_mb = dit_block_ref(x_mb, params)
    out_mb = dit_block_pallas(x_mb, params)
    jax.block_until_ready(out_mb)
    assert out_mb.shape == (B2, T, H)
    max_err_mb = float(jnp.max(jnp.abs(out_mb - ref_mb)))
    if not bool(jnp.allclose(out_mb, ref_mb, rtol=1e-3, atol=1e-3)):
        raise AssertionError(f"multi-block kernel mismatch vs reference, max_err={max_err_mb}")

    # Fast path (per perf review): DEFAULT precision = single-pass bf16 MXU
    # matmuls; checked at the tolerance that numerics path supports.
    out_fast = dit_block_pallas(x, params, precision=None)
    jax.block_until_ready(out_fast)
    max_err_fast = float(jnp.max(jnp.abs(out_fast - ref)))
    if not bool(jnp.allclose(out_fast, ref, rtol=2e-2, atol=2e-2)):
        raise AssertionError(f"bf16-pass kernel mismatch vs reference, max_err={max_err_fast}")

    print("KERNEL_OK")
</pallas_src>

<mosaic_0001>
module attributes {stable_mosaic.version = 11 : i64} {
  func.func @dit_block_kernel(%arg0: i32, %arg1: memref<8x3x32xf32, #tpu.memory_space<vmem>>, %arg2: memref<6x32xf32, #tpu.memory_space<vmem>>, %arg3: memref<2x128xf32, #tpu.memory_space<vmem>>, %arg4: memref<32x128xf32, #tpu.memory_space<vmem>>, %arg5: memref<128x32xf32, #tpu.memory_space<vmem>>, %arg6: memref<32x128xf32, #tpu.memory_space<vmem>>, %arg7: memref<128x32xf32, #tpu.memory_space<vmem>>, %arg8: memref<8x3x32xf32, #tpu.memory_space<vmem>>) attributes {dimension_semantics = [#tpu.dimension_semantics<parallel>], iteration_bounds = array<i64: 1>, scalar_prefetch = 0 : i64, scratch_operands = 0 : i64, tpu.core_type = #tpu.core_type<tc>, window_params = [{transform_indices = @transform_0, window_bounds = array<i64: 8, 3, 32>}, {pipeline_mode = #tpu.pipeline_mode<synchronous>, transform_indices = @transform_1, window_bounds = array<i64: 6, 32>}, {pipeline_mode = #tpu.pipeline_mode<synchronous>, transform_indices = @transform_2, window_bounds = array<i64: 2, 128>}, {pipeline_mode = #tpu.pipeline_mode<synchronous>, transform_indices = @transform_3, window_bounds = array<i64: 32, 128>}, {pipeline_mode = #tpu.pipeline_mode<synchronous>, transform_indices = @transform_4, window_bounds = array<i64: 128, 32>}, {pipeline_mode = #tpu.pipeline_mode<synchronous>, transform_indices = @transform_5, window_bounds = array<i64: 32, 128>}, {pipeline_mode = #tpu.pipeline_mode<synchronous>, transform_indices = @transform_6, window_bounds = array<i64: 128, 32>}, {transform_indices = @transform_7, window_bounds = array<i64: 8, 3, 32>}]} {
    %c0 = arith.constant 0 : index
    %c0_0 = arith.constant 0 : index
    %0 = vector.load %arg2[%c0, %c0_0] : memref<6x32xf32, #tpu.memory_space<vmem>>, vector<6x32xf32>
    %1 = vector.extract_strided_slice %0 {offsets = [0, 0], sizes = [1, 32], strides = [1, 1]} : vector<6x32xf32> to vector<1x32xf32>
    %2 = vector.extract_strided_slice %0 {offsets = [1, 0], sizes = [1, 32], strides = [1, 1]} : vector<6x32xf32> to vector<1x32xf32>
    %3 = vector.extract_strided_slice %0 {offsets = [2, 0], sizes = [1, 32], strides = [1, 1]} : vector<6x32xf32> to vector<1x32xf32>
    %4 = vector.extract_strided_slice %0 {offsets = [3, 0], sizes = [1, 32], strides = [1, 1]} : vector<6x32xf32> to vector<1x32xf32>
    %5 = vector.extract_strided_slice %0 {offsets = [4, 0], sizes = [1, 32], strides = [1, 1]} : vector<6x32xf32> to vector<1x32xf32>
    %6 = vector.extract_strided_slice %0 {offsets = [5, 0], sizes = [1, 32], strides = [1, 1]} : vector<6x32xf32> to vector<1x32xf32>
    %c0_1 = arith.constant 0 : index
    %c0_2 = arith.constant 0 : index
    %7 = vector.load %arg3[%c0_1, %c0_2] : memref<2x128xf32, #tpu.memory_space<vmem>>, vector<2x128xf32>
    %8 = vector.extract_strided_slice %7 {offsets = [0, 0], sizes = [1, 128], strides = [1, 1]} : vector<2x128xf32> to vector<1x128xf32>
    %9 = vector.extract_strided_slice %7 {offsets = [1, 0], sizes = [1, 128], strides = [1, 1]} : vector<2x128xf32> to vector<1x128xf32>
    %c0_3 = arith.constant 0 : index
    %c0_4 = arith.constant 0 : index
    %c0_5 = arith.constant 0 : index
    %10 = vector.load %arg1[%c0_3, %c0_4, %c0_5] : memref<8x3x32xf32, #tpu.memory_space<vmem>>, vector<8x1x32xf32>
    %11 = vector.shape_cast %10 : vector<8x1x32xf32> to vector<8x32xf32>
    %c0_6 = arith.constant 0 : index
    %c1 = arith.constant 1 : index
    %c0_7 = arith.constant 0 : index
    %12 = vector.load %arg1[%c0_6, %c1, %c0_7] : memref<8x3x32xf32, #tpu.memory_space<vmem>>, vector<8x1x32xf32>
    %13 = vector.shape_cast %12 : vector<8x1x32xf32> to vector<8x32xf32>
    %c0_8 = arith.constant 0 : index
    %c2 = arith.constant 2 : index
    %c0_9 = arith.constant 0 : index
    %14 = vector.load %arg1[%c0_8, %c2, %c0_9] : memref<8x3x32xf32, #tpu.memory_space<vmem>>, vector<8x1x32xf32>
    %15 = vector.shape_cast %14 : vector<8x1x32xf32> to vector<8x32xf32>
    %cst = arith.constant dense<0.000000e+00> : vector<8xf32>
    %16 = vector.multi_reduction <add>, %15, %cst [1] : vector<8x32xf32> to vector<8xf32>
    %17 = vector.shape_cast %16 : vector<8xf32> to vector<8x1xf32>
    %cst_10 = arith.constant 3.200000e+01 : f32
    %18 = vector.broadcast %cst_10 : f32 to vector<8x1xf32>
    %19 = arith.divf %17, %18 : vector<8x1xf32>
    %20 = arith.mulf %15, %15 : vector<8x32xf32>
    %cst_11 = arith.constant dense<0.000000e+00> : vector<8xf32>
    %21 = vector.multi_reduction <add>, %20, %cst_11 [1] : vector<8x32xf32> to vector<8xf32>
    %22 = vector.shape_cast %21 : vector<8xf32> to vector<8x1xf32>
    %cst_12 = arith.constant 3.200000e+01 : f32
    %23 = vector.broadcast %cst_12 : f32 to vector<8x1xf32>
    %24 = arith.divf %22, %23 : vector<8x1xf32>
    %25 = arith.mulf %19, %19 : vector<8x1xf32>
    %26 = arith.subf %24, %25 : vector<8x1xf32>
    %27 = vector.broadcast %19 : vector<8x1xf32> to vector<8x32xf32>
    %28 = arith.subf %15, %27 : vector<8x32xf32>
    %cst_13 = arith.constant 9.99999974E-6 : f32
    %29 = vector.broadcast %cst_13 : f32 to vector<8x1xf32>
    %30 = arith.addf %26, %29 : vector<8x1xf32>
    %31 = math.rsqrt %30 : vector<8x1xf32>
    %32 = vector.broadcast %31 : vector<8x1xf32> to vector<8x32xf32>
    %33 = arith.mulf %28, %32 : vector<8x32xf32>
    %34 = vector.broadcast %1 : vector<1x32xf32> to vector<8x32xf32>
    %35 = arith.mulf %33, %34 : vector<8x32xf32>
    %36 = vector.broadcast %2 : vector<1x32xf32> to vector<8x32xf32>
    %37 = arith.addf %35, %36 : vector<8x32xf32>
    %c0_14 = arith.constant 0 : index
    %c0_15 = arith.constant 0 : index
    %38 = vector.load %arg4[%c0_14, %c0_15] : memref<32x128xf32, #tpu.memory_space<vmem>>, vector<32x128xf32>
    %cst_16 = arith.constant dense<0.000000e+00> : vector<8x128xf32>
    %39 = tpu.matmul %37, %38, %cst_16 {dimension_numbers = #tpu.dot_dimension_numbers<[1], [0], [0], [1], [0, 0, 1, 1], [], []>, precision = #tpu.contract_precision<fp32>} : vector<8x32xf32>, vector<32x128xf32>, vector<8x128xf32> -> vector<8x128xf32>
    %40 = vector.broadcast %8 : vector<1x128xf32> to vector<8x128xf32>
    %41 = arith.addf %39, %40 : vector<8x128xf32>
    %cst_17 = arith.constant 5.000000e-01 : f32
    %42 = vector.broadcast %cst_17 : f32 to vector<8x128xf32>
    %43 = arith.mulf %42, %41 : vector<8x128xf32>
    %cst_18 = arith.constant 0.707106769 : f32
    %44 = vector.broadcast %cst_18 : f32 to vector<8x128xf32>
    %45 = arith.mulf %41, %44 : vector<8x128xf32>
    %cst_19 = arith.constant 0.000000e+00 : f32
    %46 = vector.broadcast %cst_19 : f32 to vector<8x128xf32>
    %47 = arith.cmpf olt, %45, %46 : vector<8x128xf32>
    %cst_20 = arith.constant -1.000000e+00 : f32
    %cst_21 = arith.constant 1.000000e+00 : f32
    %48 = vector.broadcast %cst_20 : f32 to vector<8x128xf32>
    %49 = vector.broadcast %cst_21 : f32 to vector<8x128xf32>
    %50 = arith.select %47, %48, %49 : vector<8x128xi1>, vector<8x128xf32>
    %51 = math.absf %45 : vector<8x128xf32>
    %cst_22 = arith.constant 0.327591091 : f32
    %52 = vector.broadcast %cst_22 : f32 to vector<8x128xf32>
    %53 = arith.mulf %52, %51 : vector<8x128xf32>
    %cst_23 = arith.constant 1.000000e+00 : f32
    %54 = vector.broadcast %cst_23 : f32 to vector<8x128xf32>
    %55 = arith.addf %54, %53 : vector<8x128xf32>
    %cst_24 = arith.constant 1.000000e+00 : f32
    %56 = vector.broadcast %cst_24 : f32 to vector<8x128xf32>
    %57 = arith.divf %56, %55 : vector<8x128xf32>
    %cst_25 = arith.constant 1.06140542 : f32
    %58 = vector.broadcast %cst_25 : f32 to vector<8x128xf32>
    %59 = arith.mulf %58, %57 : vector<8x128xf32>
    %cst_26 = arith.constant -1.45315206 : f32
    %60 = vector.broadcast %cst_26 : f32 to vector<8x128xf32>
    %61 = arith.addf %59, %60 : vector<8x128xf32>
    %62 = arith.mulf %61, %57 : vector<8x128xf32>
    %cst_27 = arith.constant 1.42141378 : f32
    %63 = vector.broadcast %cst_27 : f32 to vector<8x128xf32>
    %64 = arith.addf %62, %63 : vector<8x128xf32>
    %65 = arith.mulf %64, %57 : vector<8x128xf32>
    %cst_28 = arith.constant -0.284496725 : f32
    %66 = vector.broadcast %cst_28 : f32 to vector<8x128xf32>
    %67 = arith.addf %65, %66 : vector<8x128xf32>
    %68 = arith.mulf %67, %57 : vector<8x128xf32>
    %cst_29 = arith.constant 0.254829586 : f32
    %69 = vector.broadcast %cst_29 : f32 to vector<8x128xf32>
    %70 = arith.addf %68, %69 : vector<8x128xf32>
    %71 = arith.mulf %70, %57 : vector<8x128xf32>
    %cst_30 = arith.constant 0.000000e+00 : f32
    %72 = vector.broadcast %cst_30 : f32 to vector<8x128xf32>
    %73 = arith.subf %72, %51 : vector<8x128xf32>
    %74 = arith.mulf %73, %51 : vector<8x128xf32>
    %75 = math.exp %74 : vector<8x128xf32>
    %76 = arith.mulf %71, %75 : vector<8x128xf32>
    %cst_31 = arith.constant 1.000000e+00 : f32
    %77 = vector.broadcast %cst_31 : f32 to vector<8x128xf32>
    %78 = arith.subf %77, %76 : vector<8x128xf32>
    %79 = arith.mulf %50, %78 : vector<8x128xf32>
    %cst_32 = arith.constant 1.000000e+00 : f32
    %80 = vector.broadcast %cst_32 : f32 to vector<8x128xf32>
    %81 = arith.addf %80, %79 : vector<8x128xf32>
    %82 = arith.mulf %43, %81 : vector<8x128xf32>
    %c0_33 = arith.constant 0 : index
    %c0_34 = arith.constant 0 : index
    %83 = vector.load %arg5[%c0_33, %c0_34] : memref<128x32xf32, #tpu.memory_space<vmem>>, vector<128x32xf32>
    %cst_35 = arith.constant dense<0.000000e+00> : vector<8x32xf32>
    %84 = tpu.matmul %82, %83, %cst_35 {dimension_numbers = #tpu.dot_dimension_numbers<[1], [0], [0], [1], [0, 0, 1, 1], [], []>, precision = #tpu.contract_precision<fp32>} : vector<8x128xf32>, vector<128x32xf32>, vector<8x32xf32> -> vector<8x32xf32>
    %85 = vector.broadcast %5 : vector<1x32xf32> to vector<8x32xf32>
    %86 = arith.addf %84, %85 : vector<8x32xf32>
    %c0_36 = arith.constant 0 : index
    %c0_37 = arith.constant 0 : index
    %87 = vector.load %arg6[%c0_36, %c0_37] : memref<32x128xf32, #tpu.memory_space<vmem>>, vector<32x128xf32>
    %c0_38 = arith.constant 0 : index
    %c0_39 = arith.constant 0 : index
    %88 = vector.load %arg7[%c0_38, %c0_39] : memref<128x32xf32, #tpu.memory_space<vmem>>, vector<128x32xf32>
    %89 = arith.addf %11, %86 : vector<8x32xf32>
    %cst_40 = arith.constant dense<0.000000e+00> : vector<8xf32>
    %90 = vector.multi_reduction <add>, %89, %cst_40 [1] : vector<8x32xf32> to vector<8xf32>
    %91 = vector.shape_cast %90 : vector<8xf32> to vector<8x1xf32>
    %cst_41 = arith.constant 3.200000e+01 : f32
    %92 = vector.broadcast %cst_41 : f32 to vector<8x1xf32>
    %93 = arith.divf %91, %92 : vector<8x1xf32>
    %94 = arith.mulf %89, %89 : vector<8x32xf32>
    %cst_42 = arith.constant dense<0.000000e+00> : vector<8xf32>
    %95 = vector.multi_reduction <add>, %94, %cst_42 [1] : vector<8x32xf32> to vector<8xf32>
    %96 = vector.shape_cast %95 : vector<8xf32> to vector<8x1xf32>
    %cst_43 = arith.constant 3.200000e+01 : f32
    %97 = vector.broadcast %cst_43 : f32 to vector<8x1xf32>
    %98 = arith.divf %96, %97 : vector<8x1xf32>
    %99 = arith.mulf %93, %93 : vector<8x1xf32>
    %100 = arith.subf %98, %99 : vector<8x1xf32>
    %101 = vector.broadcast %93 : vector<8x1xf32> to vector<8x32xf32>
    %102 = arith.subf %89, %101 : vector<8x32xf32>
    %cst_44 = arith.constant 9.99999974E-6 : f32
    %103 = vector.broadcast %cst_44 : f32 to vector<8x1xf32>
    %104 = arith.addf %100, %103 : vector<8x1xf32>
    %105 = math.rsqrt %104 : vector<8x1xf32>
    %106 = vector.broadcast %105 : vector<8x1xf32> to vector<8x32xf32>
    %107 = arith.mulf %102, %106 : vector<8x32xf32>
    %108 = vector.broadcast %3 : vector<1x32xf32> to vector<8x32xf32>
    %109 = arith.mulf %107, %108 : vector<8x32xf32>
    %110 = vector.broadcast %4 : vector<1x32xf32> to vector<8x32xf32>
    %111 = arith.addf %109, %110 : vector<8x32xf32>
    %cst_45 = arith.constant dense<0.000000e+00> : vector<8x128xf32>
    %112 = tpu.matmul %111, %87, %cst_45 {dimension_numbers = #tpu.dot_dimension_numbers<[1], [0], [0], [1], [0, 0, 1, 1], [], []>, precision = #tpu.contract_precision<fp32>} : vector<8x32xf32>, vector<32x128xf32>, vector<8x128xf32> -> vector<8x128xf32>
    %113 = vector.broadcast %9 : vector<1x128xf32> to vector<8x128xf32>
    %114 = arith.addf %112, %113 : vector<8x128xf32>
    %cst_46 = arith.constant 5.000000e-01 : f32
    %115 = vector.broadcast %cst_46 : f32 to vector<8x128xf32>
    %116 = arith.mulf %115, %114 : vector<8x128xf32>
    %cst_47 = arith.constant 0.707106769 : f32
    %117 = vector.broadcast %cst_47 : f32 to vector<8x128xf32>
    %118 = arith.mulf %114, %117 : vector<8x128xf32>
    %cst_48 = arith.constant 0.000000e+00 : f32
    %119 = vector.broadcast %cst_48 : f32 to vector<8x128xf32>
    %120 = arith.cmpf olt, %118, %119 : vector<8x128xf32>
    %cst_49 = arith.constant -1.000000e+00 : f32
    %cst_50 = arith.constant 1.000000e+00 : f32
    %121 = vector.broadcast %cst_49 : f32 to vector<8x128xf32>
    %122 = vector.broadcast %cst_50 : f32 to vector<8x128xf32>
    %123 = arith.select %120, %121, %122 : vector<8x128xi1>, vector<8x128xf32>
    %124 = math.absf %118 : vector<8x128xf32>
    %cst_51 = arith.constant 0.327591091 : f32
    %125 = vector.broadcast %cst_51 : f32 to vector<8x128xf32>
    %126 = arith.mulf %125, %124 : vector<8x128xf32>
    %cst_52 = arith.constant 1.000000e+00 : f32
    %127 = vector.broadcast %cst_52 : f32 to vector<8x128xf32>
    %128 = arith.addf %127, %126 : vector<8x128xf32>
    %cst_53 = arith.constant 1.000000e+00 : f32
    %129 = vector.broadcast %cst_53 : f32 to vector<8x128xf32>
    %130 = arith.divf %129, %128 : vector<8x128xf32>
    %cst_54 = arith.constant 1.06140542 : f32
    %131 = vector.broadcast %cst_54 : f32 to vector<8x128xf32>
    %132 = arith.mulf %131, %130 : vector<8x128xf32>
    %cst_55 = arith.constant -1.45315206 : f32
    %133 = vector.broadcast %cst_55 : f32 to vector<8x128xf32>
    %134 = arith.addf %132, %133 : vector<8x128xf32>
    %135 = arith.mulf %134, %130 : vector<8x128xf32>
    %cst_56 = arith.constant 1.42141378 : f32
    %136 = vector.broadcast %cst_56 : f32 to vector<8x128xf32>
    %137 = arith.addf %135, %136 : vector<8x128xf32>
    %138 = arith.mulf %137, %130 : vector<8x128xf32>
    %cst_57 = arith.constant -0.284496725 : f32
    %139 = vector.broadcast %cst_57 : f32 to vector<8x128xf32>
    %140 = arith.addf %138, %139 : vector<8x128xf32>
    %141 = arith.mulf %140, %130 : vector<8x128xf32>
    %cst_58 = arith.constant 0.254829586 : f32
    %142 = vector.broadcast %cst_58 : f32 to vector<8x128xf32>
    %143 = arith.addf %141, %142 : vector<8x128xf32>
    %144 = arith.mulf %143, %130 : vector<8x128xf32>
    %cst_59 = arith.constant 0.000000e+00 : f32
    %145 = vector.broadcast %cst_59 : f32 to vector<8x128xf32>
    %146 = arith.subf %145, %124 : vector<8x128xf32>
    %147 = arith.mulf %146, %124 : vector<8x128xf32>
    %148 = math.exp %147 : vector<8x128xf32>
    %149 = arith.mulf %144, %148 : vector<8x128xf32>
    %cst_60 = arith.constant 1.000000e+00 : f32
    %150 = vector.broadcast %cst_60 : f32 to vector<8x128xf32>
    %151 = arith.subf %150, %149 : vector<8x128xf32>
    %152 = arith.mulf %123, %151 : vector<8x128xf32>
    %cst_61 = arith.constant 1.000000e+00 : f32
    %153 = vector.broadcast %cst_61 : f32 to vector<8x128xf32>
    %154 = arith.addf %153, %152 : vector<8x128xf32>
    %155 = arith.mulf %116, %154 : vector<8x128xf32>
    %cst_62 = arith.constant dense<0.000000e+00> : vector<8x32xf32>
    %156 = tpu.matmul %155, %88, %cst_62 {dimension_numbers = #tpu.dot_dimension_numbers<[1], [0], [0], [1], [0, 0, 1, 1], [], []>, precision = #tpu.contract_precision<fp32>} : vector<8x128xf32>, vector<128x32xf32>, vector<8x32xf32> -> vector<8x32xf32>
    %157 = vector.broadcast %6 : vector<1x32xf32> to vector<8x32xf32>
    %158 = arith.addf %156, %157 : vector<8x32xf32>
    %159 = arith.addf %89, %158 : vector<8x32xf32>
    %c0_63 = arith.constant 0 : index
    %c0_64 = arith.constant 0 : index
    %c0_65 = arith.constant 0 : index
    %160 = vector.load %arg8[%c0_63, %c0_64, %c0_65] : memref<8x3x32xf32, #tpu.memory_space<vmem>>, vector<8x1x32xf32>
    %161 = vector.shape_cast %160 : vector<8x1x32xf32> to vector<8x32xf32>
    %162 = vector.shape_cast %159 : vector<8x32xf32> to vector<8x1x32xf32>
    tpu.vector_store %arg8[%c0_63, %c0_64, %c0_65], %162 {strides = array<i32>} : memref<8x3x32xf32, #tpu.memory_space<vmem>>, vector<8x1x32xf32>,
    %163 = arith.addf %13, %86 : vector<8x32xf32>
    %cst_66 = arith.constant dense<0.000000e+00> : vector<8xf32>
    %164 = vector.multi_reduction <add>, %163, %cst_66 [1] : vector<8x32xf32> to vector<8xf32>
    %165 = vector.shape_cast %164 : vector<8xf32> to vector<8x1xf32>
    %cst_67 = arith.constant 3.200000e+01 : f32
    %166 = vector.broadcast %cst_67 : f32 to vector<8x1xf32>
    %167 = arith.divf %165, %166 : vector<8x1xf32>
    %168 = arith.mulf %163, %163 : vector<8x32xf32>
    %cst_68 = arith.constant dense<0.000000e+00> : vector<8xf32>
    %169 = vector.multi_reduction <add>, %168, %cst_68 [1] : vector<8x32xf32> to vector<8xf32>
    %170 = vector.shape_cast %169 : vector<8xf32> to vector<8x1xf32>
    %cst_69 = arith.constant 3.200000e+01 : f32
    %171 = vector.broadcast %cst_69 : f32 to vector<8x1xf32>
    %172 = arith.divf %170, %171 : vector<8x1xf32>
    %173 = arith.mulf %167, %167 : vector<8x1xf32>
    %174 = arith.subf %172, %173 : vector<8x1xf32>
    %175 = vector.broadcast %167 : vector<8x1xf32> to vector<8x32xf32>
    %176 = arith.subf %163, %175 : vector<8x32xf32>
    %cst_70 = arith.constant 9.99999974E-6 : f32
    %177 = vector.broadcast %cst_70 : f32 to vector<8x1xf32>
    %178 = arith.addf %174, %177 : vector<8x1xf32>
    %179 = math.rsqrt %178 : vector<8x1xf32>
    %180 = vector.broadcast %179 : vector<8x1xf32> to vector<8x32xf32>
    %181 = arith.mulf %176, %180 : vector<8x32xf32>
    %182 = vector.broadcast %3 : vector<1x32xf32> to vector<8x32xf32>
    %183 = arith.mulf %181, %182 : vector<8x32xf32>
    %184 = vector.broadcast %4 : vector<1x32xf32> to vector<8x32xf32>
    %185 = arith.addf %183, %184 : vector<8x32xf32>
    %cst_71 = arith.constant dense<0.000000e+00> : vector<8x128xf32>
    %186 = tpu.matmul %185, %87, %cst_71 {dimension_numbers = #tpu.dot_dimension_numbers<[1], [0], [0], [1], [0, 0, 1, 1], [], []>, precision = #tpu.contract_precision<fp32>} : vector<8x32xf32>, vector<32x128xf32>, vector<8x128xf32> -> vector<8x128xf32>
    %187 = vector.broadcast %9 : vector<1x128xf32> to vector<8x128xf32>
    %188 = arith.addf %186, %187 : vector<8x128xf32>
    %cst_72 = arith.constant 5.000000e-01 : f32
    %189 = vector.broadcast %cst_72 : f32 to vector<8x128xf32>
    %190 = arith.mulf %189, %188 : vector<8x128xf32>
    %cst_73 = arith.constant 0.707106769 : f32
    %191 = vector.broadcast %cst_73 : f32 to vector<8x128xf32>
    %192 = arith.mulf %188, %191 : vector<8x128xf32>
    %cst_74 = arith.constant 0.000000e+00 : f32
    %193 = vector.broadcast %cst_74 : f32 to vector<8x128xf32>
    %194 = arith.cmpf olt, %192, %193 : vector<8x128xf32>
    %cst_75 = arith.constant -1.000000e+00 : f32
    %cst_76 = arith.constant 1.000000e+00 : f32
    %195 = vector.broadcast %cst_75 : f32 to vector<8x128xf32>
    %196 = vector.broadcast %cst_76 : f32 to vector<8x128xf32>
    %197 = arith.select %194, %195, %196 : vector<8x128xi1>, vector<8x128xf32>
    %198 = math.absf %192 : vector<8x128xf32>
    %cst_77 = arith.constant 0.327591091 : f32
    %199 = vector.broadcast %cst_77 : f32 to vector<8x128xf32>
    %200 = arith.mulf %199, %198 : vector<8x128xf32>
    %cst_78 = arith.constant 1.000000e+00 : f32
    %201 = vector.broadcast %cst_78 : f32 to vector<8x128xf32>
    %202 = arith.addf %201, %200 : vector<8x128xf32>
    %cst_79 = arith.constant 1.000000e+00 : f32
    %203 = vector.broadcast %cst_79 : f32 to vector<8x128xf32>
    %204 = arith.divf %203, %202 : vector<8x128xf32>
    %cst_80 = arith.constant 1.06140542 : f32
    %205 = vector.broadcast %cst_80 : f32 to vector<8x128xf32>
    %206 = arith.mulf %205, %204 : vector<8x128xf32>
    %cst_81 = arith.constant -1.45315206 : f32
    %207 = vector.broadcast %cst_81 : f32 to vector<8x128xf32>
    %208 = arith.addf %206, %207 : vector<8x128xf32>
    %209 = arith.mulf %208, %204 : vector<8x128xf32>
    %cst_82 = arith.constant 1.42141378 : f32
    %210 = vector.broadcast %cst_82 : f32 to vector<8x128xf32>
    %211 = arith.addf %209, %210 : vector<8x128xf32>
    %212 = arith.mulf %211, %204 : vector<8x128xf32>
    %cst_83 = arith.constant -0.284496725 : f32
    %213 = vector.broadcast %cst_83 : f32 to vector<8x128xf32>
    %214 = arith.addf %212, %213 : vector<8x128xf32>
    %215 = arith.mulf %214, %204 : vector<8x128xf32>
    %cst_84 = arith.constant 0.254829586 : f32
    %216 = vector.broadcast %cst_84 : f32 to vector<8x128xf32>
    %217 = arith.addf %215, %216 : vector<8x128xf32>
    %218 = arith.mulf %217, %204 : vector<8x128xf32>
    %cst_85 = arith.constant 0.000000e+00 : f32
    %219 = vector.broadcast %cst_85 : f32 to vector<8x128xf32>
    %220 = arith.subf %219, %198 : vector<8x128xf32>
    %221 = arith.mulf %220, %198 : vector<8x128xf32>
    %222 = math.exp %221 : vector<8x128xf32>
    %223 = arith.mulf %218, %222 : vector<8x128xf32>
    %cst_86 = arith.constant 1.000000e+00 : f32
    %224 = vector.broadcast %cst_86 : f32 to vector<8x128xf32>
    %225 = arith.subf %224, %223 : vector<8x128xf32>
    %226 = arith.mulf %197, %225 : vector<8x128xf32>
    %cst_87 = arith.constant 1.000000e+00 : f32
    %227 = vector.broadcast %cst_87 : f32 to vector<8x128xf32>
    %228 = arith.addf %227, %226 : vector<8x128xf32>
    %229 = arith.mulf %190, %228 : vector<8x128xf32>
    %cst_88 = arith.constant dense<0.000000e+00> : vector<8x32xf32>
    %230 = tpu.matmul %229, %88, %cst_88 {dimension_numbers = #tpu.dot_dimension_numbers<[1], [0], [0], [1], [0, 0, 1, 1], [], []>, precision = #tpu.contract_precision<fp32>} : vector<8x128xf32>, vector<128x32xf32>, vector<8x32xf32> -> vector<8x32xf32>
    %231 = vector.broadcast %6 : vector<1x32xf32> to vector<8x32xf32>
    %232 = arith.addf %230, %231 : vector<8x32xf32>
    %233 = arith.addf %163, %232 : vector<8x32xf32>
    %c0_89 = arith.constant 0 : index
    %c1_90 = arith.constant 1 : index
    %c0_91 = arith.constant 0 : index
    %234 = vector.load %arg8[%c0_89, %c1_90, %c0_91] : memref<8x3x32xf32, #tpu.memory_space<vmem>>, vector<8x1x32xf32>
    %235 = vector.shape_cast %234 : vector<8x1x32xf32> to vector<8x32xf32>
    %236 = vector.shape_cast %233 : vector<8x32xf32> to vector<8x1x32xf32>
    tpu.vector_store %arg8[%c0_89, %c1_90, %c0_91], %236 {strides = array<i32>} : memref<8x3x32xf32, #tpu.memory_space<vmem>>, vector<8x1x32xf32>,
    %237 = arith.addf %15, %86 : vector<8x32xf32>
    %cst_92 = arith.constant dense<0.000000e+00> : vector<8xf32>
    %238 = vector.multi_reduction <add>, %237, %cst_92 [1] : vector<8x32xf32> to vector<8xf32>
    %239 = vector.shape_cast %238 : vector<8xf32> to vector<8x1xf32>
    %cst_93 = arith.constant 3.200000e+01 : f32
    %240 = vector.broadcast %cst_93 : f32 to vector<8x1xf32>
    %241 = arith.divf %239, %240 : vector<8x1xf32>
    %242 = arith.mulf %237, %237 : vector<8x32xf32>
    %cst_94 = arith.constant dense<0.000000e+00> : vector<8xf32>
    %243 = vector.multi_reduction <add>, %242, %cst_94 [1] : vector<8x32xf32> to vector<8xf32>
    %244 = vector.shape_cast %243 : vector<8xf32> to vector<8x1xf32>
    %cst_95 = arith.constant 3.200000e+01 : f32
    %245 = vector.broadcast %cst_95 : f32 to vector<8x1xf32>
    %246 = arith.divf %244, %245 : vector<8x1xf32>
    %247 = arith.mulf %241, %241 : vector<8x1xf32>
    %248 = arith.subf %246, %247 : vector<8x1xf32>
    %249 = vector.broadcast %241 : vector<8x1xf32> to vector<8x32xf32>
    %250 = arith.subf %237, %249 : vector<8x32xf32>
    %cst_96 = arith.constant 9.99999974E-6 : f32
    %251 = vector.broadcast %cst_96 : f32 to vector<8x1xf32>
    %252 = arith.addf %248, %251 : vector<8x1xf32>
    %253 = math.rsqrt %252 : vector<8x1xf32>
    %254 = vector.broadcast %253 : vector<8x1xf32> to vector<8x32xf32>
    %255 = arith.mulf %250, %254 : vector<8x32xf32>
    %256 = vector.broadcast %3 : vector<1x32xf32> to vector<8x32xf32>
    %257 = arith.mulf %255, %256 : vector<8x32xf32>
    %258 = vector.broadcast %4 : vector<1x32xf32> to vector<8x32xf32>
    %259 = arith.addf %257, %258 : vector<8x32xf32>
    %cst_97 = arith.constant dense<0.000000e+00> : vector<8x128xf32>
    %260 = tpu.matmul %259, %87, %cst_97 {dimension_numbers = #tpu.dot_dimension_numbers<[1], [0], [0], [1], [0, 0, 1, 1], [], []>, precision = #tpu.contract_precision<fp32>} : vector<8x32xf32>, vector<32x128xf32>, vector<8x128xf32> -> vector<8x128xf32>
    %261 = vector.broadcast %9 : vector<1x128xf32> to vector<8x128xf32>
    %262 = arith.addf %260, %261 : vector<8x128xf32>
    %cst_98 = arith.constant 5.000000e-01 : f32
    %263 = vector.broadcast %cst_98 : f32 to vector<8x128xf32>
    %264 = arith.mulf %263, %262 : vector<8x128xf32>
    %cst_99 = arith.constant 0.707106769 : f32
    %265 = vector.broadcast %cst_99 : f32 to vector<8x128xf32>
    %266 = arith.mulf %262, %265 : vector<8x128xf32>
    %cst_100 = arith.constant 0.000000e+00 : f32
    %267 = vector.broadcast %cst_100 : f32 to vector<8x128xf32>
    %268 = arith.cmpf olt, %266, %267 : vector<8x128xf32>
    %cst_101 = arith.constant -1.000000e+00 : f32
    %cst_102 = arith.constant 1.000000e+00 : f32
    %269 = vector.broadcast %cst_101 : f32 to vector<8x128xf32>
    %270 = vector.broadcast %cst_102 : f32 to vector<8x128xf32>
    %271 = arith.select %268, %269, %270 : vector<8x128xi1>, vector<8x128xf32>
    %272 = math.absf %266 : vector<8x128xf32>
    %cst_103 = arith.constant 0.327591091 : f32
    %273 = vector.broadcast %cst_103 : f32 to vector<8x128xf32>
    %274 = arith.mulf %273, %272 : vector<8x128xf32>
    %cst_104 = arith.constant 1.000000e+00 : f32
    %275 = vector.broadcast %cst_104 : f32 to vector<8x128xf32>
    %276 = arith.addf %275, %274 : vector<8x128xf32>
    %cst_105 = arith.constant 1.000000e+00 : f32
    %277 = vector.broadcast %cst_105 : f32 to vector<8x128xf32>
    %278 = arith.divf %277, %276 : vector<8x128xf32>
    %cst_106 = arith.constant 1.06140542 : f32
    %279 = vector.broadcast %cst_106 : f32 to vector<8x128xf32>
    %280 = arith.mulf %279, %278 : vector<8x128xf32>
    %cst_107 = arith.constant -1.45315206 : f32
    %281 = vector.broadcast %cst_107 : f32 to vector<8x128xf32>
    %282 = arith.addf %280, %281 : vector<8x128xf32>
    %283 = arith.mulf %282, %278 : vector<8x128xf32>
    %cst_108 = arith.constant 1.42141378 : f32
    %284 = vector.broadcast %cst_108 : f32 to vector<8x128xf32>
    %285 = arith.addf %283, %284 : vector<8x128xf32>
    %286 = arith.mulf %285, %278 : vector<8x128xf32>
    %cst_109 = arith.constant -0.284496725 : f32
    %287 = vector.broadcast %cst_109 : f32 to vector<8x128xf32>
    %288 = arith.addf %286, %287 : vector<8x128xf32>
    %289 = arith.mulf %288, %278 : vector<8x128xf32>
    %cst_110 = arith.constant 0.254829586 : f32
    %290 = vector.broadcast %cst_110 : f32 to vector<8x128xf32>
    %291 = arith.addf %289, %290 : vector<8x128xf32>
    %292 = arith.mulf %291, %278 : vector<8x128xf32>
    %cst_111 = arith.constant 0.000000e+00 : f32
    %293 = vector.broadcast %cst_111 : f32 to vector<8x128xf32>
    %294 = arith.subf %293, %272 : vector<8x128xf32>
    %295 = arith.mulf %294, %272 : vector<8x128xf32>
    %296 = math.exp %295 : vector<8x128xf32>
    %297 = arith.mulf %292, %296 : vector<8x128xf32>
    %cst_112 = arith.constant 1.000000e+00 : f32
    %298 = vector.broadcast %cst_112 : f32 to vector<8x128xf32>
    %299 = arith.subf %298, %297 : vector<8x128xf32>
    %300 = arith.mulf %271, %299 : vector<8x128xf32>
    %cst_113 = arith.constant 1.000000e+00 : f32
    %301 = vector.broadcast %cst_113 : f32 to vector<8x128xf32>
    %302 = arith.addf %301, %300 : vector<8x128xf32>
    %303 = arith.mulf %264, %302 : vector<8x128xf32>
    %cst_114 = arith.constant dense<0.000000e+00> : vector<8x32xf32>
    %304 = tpu.matmul %303, %88, %cst_114 {dimension_numbers = #tpu.dot_dimension_numbers<[1], [0], [0], [1], [0, 0, 1, 1], [], []>, precision = #tpu.contract_precision<fp32>} : vector<8x128xf32>, vector<128x32xf32>, vector<8x32xf32> -> vector<8x32xf32>
    %305 = vector.broadcast %6 : vector<1x32xf32> to vector<8x32xf32>
    %306 = arith.addf %304, %305 : vector<8x32xf32>
    %307 = arith.addf %237, %306 : vector<8x32xf32>
    %c0_115 = arith.constant 0 : index
    %c2_116 = arith.constant 2 : index
    %c0_117 = arith.constant 0 : index
    %308 = vector.load %arg8[%c0_115, %c2_116, %c0_117] : memref<8x3x32xf32, #tpu.memory_space<vmem>>, vector<8x1x32xf32>
    %309 = vector.shape_cast %308 : vector<8x1x32xf32> to vector<8x32xf32>
    %310 = vector.shape_cast %307 : vector<8x32xf32> to vector<8x1x32xf32>
    tpu.vector_store %arg8[%c0_115, %c2_116, %c0_117], %310 {strides = array<i32>} : memref<8x3x32xf32, #tpu.memory_space<vmem>>, vector<8x1x32xf32>,
    return
  }
  func.func @transform_0(%arg0: i32) -> (i32, i32, i32) {
    %c0_i32 = arith.constant 0 : i32
    %c0_i32_0 = arith.constant 0 : i32
    %c0_i32_1 = arith.constant 0 : i32
    return %arg0, %c0_i32, %c0_i32_0 : i32, i32, i32
  }
  func.func @transform_1(%arg0: i32) -> (i32, i32) {
    %c0_i32 = arith.constant 0 : i32
    %c0_i32_0 = arith.constant 0 : i32
    %c0_i32_1 = arith.constant 0 : i32
    return %c0_i32, %c0_i32_0 : i32, i32
  }
  func.func @transform_2(%arg0: i32) -> (i32, i32) {
    %c0_i32 = arith.constant 0 : i32
    %c0_i32_0 = arith.constant 0 : i32
    %c0_i32_1 = arith.constant 0 : i32
    return %c0_i32, %c0_i32_0 : i32, i32
  }
  func.func @transform_3(%arg0: i32) -> (i32, i32) {
    %c0_i32 = arith.constant 0 : i32
    %c0_i32_0 = arith.constant 0 : i32
    %c0_i32_1 = arith.constant 0 : i32
    return %c0_i32, %c0_i32_0 : i32, i32
  }
  func.func @transform_4(%arg0: i32) -> (i32, i32) {
    %c0_i32 = arith.constant 0 : i32
    %c0_i32_0 = arith.constant 0 : i32
    %c0_i32_1 = arith.constant 0 : i32
    return %c0_i32, %c0_i32_0 : i32, i32
  }
  func.func @transform_5(%arg0: i32) -> (i32, i32) {
    %c0_i32 = arith.constant 0 : i32
    %c0_i32_0 = arith.constant 0 : i32
    %c0_i32_1 = arith.constant 0 : i32
    return %c0_i32, %c0_i32_0 : i32, i32
  }
  func.func @transform_6(%arg0: i32) -> (i32, i32) {
    %c0_i32 = arith.constant 0 : i32
    %c0_i32_0 = arith.constant 0 : i32
    %c0_i32_1 = arith.constant 0 : i32
    return %c0_i32, %c0_i32_0 : i32, i32
  }
  func.func @transform_7(%arg0: i32) -> (i32, i32, i32) {
    %c0_i32 = arith.constant 0 : i32
    %c0_i32_0 = arith.constant 0 : i32
    %c0_i32_1 = arith.constant 0 : i32
    return %arg0, %c0_i32, %c0_i32_0 : i32, i32, i32
  }
}

</mosaic_0001>

<bundles_post_ra>
// kernel: tpu_custom_call.1
= control target key start
LH: loop header
LB: loop body
LE: loop exit
PB: predicated region body
PF: predicated region fallthrough
CT: control target
= control target key end

     0   :  { %vm61_vm0 = vcmask 1041409   ;;  %vm64_vm1 = vcmask 1042434   ;;  %vm67_vm2 = vcmask 1043459   ;;  %vm70_vm3 = vcmask 1044484   ;;  %s9983_s0 = inlined_call_operand.vmem [shape: f32[8,3,32], index: 0, kind: input, shape index: {}]   ;;  %s9984_s3 = inlined_call_operand.vmem [shape: f32[32,128], index: 3, kind: input, shape index: {}]   ;;  %s9985_s1 = inlined_call_operand.vmem [shape: f32[6,32], index: 1, kind: input, shape index: {}]   ;;  %s9986_s4 = inlined_call_operand.vmem [shape: f32[128,32], index: 4, kind: input, shape index: {}]   ;;  %s9987_s2 = inlined_call_operand.vmem [shape: f32[2,128], index: 2, kind: input, shape index: {}]   ;;  %s9988_s5 = inlined_call_operand.vmem [shape: f32[32,128], index: 5, kind: input, shape index: {}]   ;;  %s9989_s6 = inlined_call_operand.vmem [shape: f32[128,32], index: 6, kind: input, shape index: {}]   ;;  %s9990_s7 = inlined_call_operand.vmem [shape: f32[8,3,32], index: 7, kind: output, shape index: {}]  }
   0x1   :  { %v8026_v0 = vld [vmem:[%s9983_s0 + $0x2] sm:$0x1]  ;;  %v8031_v1 = vld [vmem:[%s9983_s0 + $0x6] sm:$0x1]  ;;  %v8036_v2 = vld [vmem:[%s9983_s0 + $0xa] sm:$0x1] }
   0x2   :  { %v8041_v3 = vld [vmem:[%s9983_s0 + $0xe] sm:$0x1]  ;;  %v8046_v4 = vld [vmem:[%s9983_s0 + $0x12] sm:$0x1]  ;;  %v8051_v5 = vld [vmem:[%s9983_s0 + $0x16] sm:$0x1]  ;;  %v88_v6 = vmul.f32 %v8026_v0, %v8026_v0  ;;  %v89_v7 = vmul.f32 %v8031_v1, %v8031_v1  ;;  %v90_v12 = vmul.f32 %v8036_v2, %v8036_v2 }
   0x3   :  { %v8060_v8 = vld [vmem:[%s9983_s0 + $0x1a] sm:$0x1]  ;;  %v8065_v9 = vld [vmem:[%s9983_s0 + $0x1e] sm:$0x1]  ;;  %v60_v10 = vrot.slane %v8031_v1, 7  ;;  %v63_v11 = vrot.slane %v8036_v2, 6  ;;  %v91_v13 = vmul.f32 %v8041_v3, %v8041_v3  ;;  %v92_v17 = vmul.f32 %v8046_v4, %v8046_v4 }
   0x4   :  { %v66_v14 = vrot.slane %v8041_v3, 5  ;;  %v69_v15 = vrot.slane %v8046_v4, 4  ;;  %v72_v16 = vrot.slane %v8051_v5, 3  ;;  %vm73_vm4 = vcmask 1045509   ;;  %v199_v47 = vld [vmem:[%s9984_s3] sm:$0xff]  ;;  %v200_v48 = vld [vmem:[%s9984_s3 + $0x8] sm:$0xff] }
   0x5   :  { %v62_v18 = vsel %vm61_vm0, %v60_v10, %v8026_v0  ;;  %v75_v19 = vrot.slane %v8060_v8, 2  ;;  %vm76_vm5 = vcmask 1046534   ;;  %v78_v21 = vrot.slane %v8065_v9, 1  ;;  %v201_v49 = vld [vmem:[%s9984_s3 + $0x10] sm:$0xff]  ;;  %v202_v52 = vld [vmem:[%s9984_s3 + $0x18] sm:$0xff] }
   0x6   :  { %v65_v20 = vsel %vm64_vm1, %v63_v11, %v62_v18  ;;  %vm79_vm6 = vcmask 1047559   ;;  %v93_v22 = vmul.f32 %v8051_v5, %v8051_v5  ;;  %v94_v24 = vmul.f32 %v8060_v8, %v8060_v8 }
   0x7   :  { %v68_v23 = vsel %vm67_vm2, %v66_v14, %v65_v20  ;;  %v95_v25 = vmul.f32 %v8065_v9, %v8065_v9  ;;  %v104_v26 = vrot.slane %v89_v7, 7  ;;  %v106_v28 = vrot.slane %v90_v12, 6 }
   0x8   :  { %v71_v27 = vsel %vm70_vm3, %v69_v15, %v68_v23  ;;  %v108_v29 = vrot.slane %v91_v13, 5  ;;  %v110_v30 = vrot.slane %v92_v17, 4  ;;  %vm82_vm7 = vcmask 261120  }
   0x9   :  { %v74_v31 = vsel %vm73_vm4, %v72_v16, %v71_v27  ;;  %v105_v32 = vsel %vm61_vm0, %v104_v26, %v88_v6  ;;  %v112_v33 = vrot.slane %v93_v22, 3  ;;  %v114_v36 = vrot.slane %v94_v24, 2 }
   0xa   :  { %v77_v34 = vsel %vm76_vm5, %v75_v19, %v74_v31  ;;  %v107_v35 = vsel %vm64_vm1, %v106_v28, %v105_v32  ;;  %v116_v39 = vrot.slane %v95_v25, 1  ;;  %v10010_v46 = vmov 0.0|0.0  }
   0xb   :  { %v80_v37 = vsel %vm79_vm6, %v78_v21, %v77_v34  ;;  %v109_v38 = vsel %vm67_vm2, %v108_v29, %v107_v35  ;;  %7146 = vmatprep.subr.bf16.mxu0 %v10010_v46  ;;  %7134 = vmatprep.subr.bf16.mxu1 %v10010_v46  ;;  %v232_v50 = vand.u32 4294901760, %v199_v47  ;;  %v235_v51 = vand.u32 4294901760, %v200_v48  ;;  %v8146_v35 = vld [vmem:[%s9985_s1] sm:$0x3f] }
   0xc   :  { %v83_v40 = vsel %vm82_vm7, %v80_v37, 0.0  ;;  %v111_v41 = vsel %vm70_vm3, %v110_v30, %v109_v38  ;;  %v238_v53 = vand.u32 4294901760, %v201_v49  ;;  %vm7980_vm8 = vmmov 0  }
   0xd   :  { %84 = vadd.xlane.f32.xlu0 %v83_v40  ;;  %v113_v42 = vsel %vm73_vm4, %v112_v33, %v111_v41  ;;  %v10012_v54 = vmov 0.0   ;;  %v241_v55 = vand.u32 4294901760, %v202_v52  ;;  %v312_v56 = vsub.f32 %v199_v47, %v232_v50 }
   0xe   :  { %v115_v43 = vsel %vm76_vm5, %v114_v36, %v113_v42  ;;  %6060 = vmatprep.mubr.msk.f32.mxu0 %vm7980_vm8, %v10012_v54  ;;  %6038 = vmatprep.mubr.msk.f32.mxu1 %vm7980_vm8, %v10012_v54  ;;  %v319_v57 = vsub.f32 %v200_v48, %v235_v51  ;;  %v326_v58 = vsub.f32 %v201_v49, %v238_v53  ;;  %v175_v30 = vlaneseq }
   0xf   :  { %v117_v44 = vsel %vm79_vm6, %v116_v39, %v115_v43  ;;  %v8121_v59 = vpack.c.bf16 %v235_v51, %v232_v50  ;;  %v333_v60 = vsub.f32 %v202_v52, %v241_v55  ;;  %v313_v63 = vand.u32 4294901760, %v312_v56 }
  0x10   :  { %v119_v45 = vsel %vm82_vm7, %v117_v44, 0.0  ;;  %v7147_v61 = vpack.c.bf16 %v319_v57, %v312_v56  ;;  %v320_v6 = vand.u32 4294901760, %v319_v57  ;;  %v8127_v7 = vpack.c.bf16 %v241_v55, %v238_v53 }
  0x11   :  { %120 = vadd.xlane.f32.xlu0 %v119_v45  ;;  %7136 = vmatpush3.bf16.msra.mxu1 %v8121_v59  ;;  %v7150_v62 = vpack.c.bf16 %v333_v60, %v326_v58  ;;  %v314_v10 = vsub.f32 %v312_v56, %v313_v63  ;;  %v327_v14 = vand.u32 4294901760, %v326_v58  ;;  %v334_v15 = vand.u32 4294901760, %v333_v60 }
  0x12   :  { %7137 = vmatprep.subr.bf16.mxu1 %v10010_v46  ;;  %7148 = vmatpush3.bf16.msra.mxu0 %v7147_v61  ;;  %v321_v11 = vsub.f32 %v319_v57, %v320_v6  ;;  %v8133_v19 = vpack.c.bf16 %v320_v6, %v313_v63  ;;  %v8139_v32 = vshrl.u32 %v175_v30, 7  ;;  %vm2795_vm12 = vcmask 253952  }
  0x13   :  { %7149 = vmatprep.subr.bf16.mxu0 %v10010_v46  ;;  %v315_v12 = vand.u32 4294901760, %v314_v10  ;;  %v328_v17 = vsub.f32 %v326_v58, %v327_v14  ;;  %v335_v18 = vsub.f32 %v333_v60, %v334_v15  ;;  %v8137_v23 = vpack.c.bf16 %v334_v15, %v327_v14 }
  0x14   :  { %v322_v13 = vand.u32 4294901760, %v321_v11  ;;  %10075 = vst [vmem:[#allocation2_spill] sm:$0xff] %v8139_v32  ;;  %v177_v33 = vsub.s32 0, %v8139_v32  ;;  %v9991_v34 = vsub.s32 1, %v8139_v32 }
  0x15   :  { %7139 = vmatpush3.bf16.msra.mxu1 %v8127_v7  ;;  %v329_v20 = vand.u32 4294901760, %v328_v17  ;;  %v336_v21 = vand.u32 4294901760, %v335_v18 }
  0x16   :  { %7151 = vmatpush3.bf16.msra.mxu0 %v7150_v62  ;;  %7140 = vmatprep.subr.bf16.mxu1 %v10010_v46  ;;  %v8131_v16 = vpack.c.bf16 %v322_v13, %v315_v12  ;;  %v178_v43 = vrot.slane %v8146_v35, %v177_v33  ;;  %v190_v44 = vrot.slane %v8146_v35, %v9991_v34 }
  0x17   :  { %7152 = vmatprep.subr.bf16.mxu0 %v10010_v46  ;;  %v8135_v22 = vpack.c.bf16 %v336_v21, %v329_v20 }
  0x9a   :  { %v85_v24 = vpop.xlane.xlu0 %84 }
  0x9b   :  { %v87_v25 = vmul.f32 0.03125, %v85_v24 }
  0x9d   :  { %v123_v27 = vmul.f32 %v87_v25, %v87_v25  ;;  %v126_v36 = vrot.slane %v87_v25, 1  ;;  %v127_v37 = vrot.slane %v87_v25, 2  ;;  %v128_v38 = vrot.slane %v87_v25, 3 }
  0x9e   :  { %v121_v26 = vpop.xlane.xlu0 %120  ;;  %v129_v39 = vrot.slane %v87_v25, 4  ;;  %v130_v40 = vrot.slane %v87_v25, 5  ;;  %v131_v41 = vrot.slane %v87_v25, 6  ;;  %v132_v42 = vrot.slane %v87_v25, 7 }
  0x9f   :  { %v122_v28 = vmul.f32 0.03125, %v121_v26  ;;  %v141_v45 = vsub.f32 %v8026_v0, %v87_v25  ;;  %v142_v47 = vsub.f32 %v8031_v1, %v126_v36  ;;  %v143_v48 = vsub.f32 %v8036_v2, %v127_v37 }
  0xa0   :  { %v144_v49 = vsub.f32 %v8041_v3, %v128_v38  ;;  %v145_v51 = vsub.f32 %v8046_v4, %v129_v39  ;;  %v146_v52 = vsub.f32 %v8051_v5, %v130_v40  ;;  %v147_v53 = vsub.f32 %v8060_v8, %v131_v41 }
  0xa1   :  { %v124_v29 = vsub.f32 %v122_v28, %v123_v27  ;;  %v148_v55 = vsub.f32 %v8065_v9, %v132_v42 }
  0xa3   :  { %v149_v31 = vadd.f32 1e-05, %v124_v29 }
  0xa5   :  { %7944 = vrsqrt.f32 %v149_v31 }
  0xaf   :  { %v7945_v50 = vpop.eup %7944 }
  0xb0   :  { %v152_v56 = vrot.slane %v7945_v50, 1  ;;  %v153_v57 = vrot.slane %v7945_v50, 2  ;;  %v154_v58 = vrot.slane %v7945_v50, 3  ;;  %v155_v60 = vrot.slane %v7945_v50, 4 }
  0xb1   :  { %v156_v0 = vrot.slane %v7945_v50, 5  ;;  %v157_v61 = vrot.slane %v7945_v50, 6  ;;  %v158_v1 = vrot.slane %v7945_v50, 7  ;;  %v167_v62 = vmul.f32 %v7945_v50, %v141_v45 }
  0xb2   :  { %v168_v2 = vmul.f32 %v152_v56, %v142_v47  ;;  %v169_v63 = vmul.f32 %v153_v57, %v143_v48  ;;  %v170_v3 = vmul.f32 %v154_v58, %v144_v49  ;;  %v171_v6 = vmul.f32 %v155_v60, %v145_v51  ;;  %v747_v60 = vld [vmem:[%s9986_s4 + $0x20] sm:$0xff] }
  0xb3   :  { %v172_v10 = vmul.f32 %v156_v0, %v146_v52  ;;  %v173_v4 = vmul.f32 %v157_v61, %v147_v53  ;;  %v174_v11 = vmul.f32 %v158_v1, %v148_v55  ;;  %v179_v5 = vmul.f32 %v178_v43, %v167_v62  ;;  %v746_v55 = vld [vmem:[%s9986_s4 + $0x18] sm:$0xff]  ;;  %v748_v0 = vld [vmem:[%s9986_s4 + $0x28] sm:$0xff] }
  0xb4   :  { %v180_v12 = vmul.f32 %v178_v43, %v168_v2  ;;  %v181_v8 = vmul.f32 %v178_v43, %v169_v63  ;;  %v182_v13 = vmul.f32 %v178_v43, %v170_v3  ;;  %v183_v9 = vmul.f32 %v178_v43, %v171_v6  ;;  %v749_v2 = vld [vmem:[%s9986_s4 + $0x30] sm:$0xff]  ;;  %v750_v63 = vld [vmem:[%s9986_s4 + $0x38] sm:$0xff] }
  0xb5   :  { %v184_v14 = vmul.f32 %v178_v43, %v172_v10  ;;  %v185_v15 = vmul.f32 %v178_v43, %v173_v4  ;;  %v186_v17 = vmul.f32 %v178_v43, %v174_v11  ;;  %v191_v25 = vadd.f32 %v190_v44, %v179_v5  ;;  %v751_v4 = vld [vmem:[%s9986_s4 + $0x40] sm:$0xff]  ;;  %v752_v11 = vld [vmem:[%s9986_s4 + $0x48] sm:$0xff] }
  0xb6   :  { %v192_v18 = vadd.f32 %v190_v44, %v180_v12  ;;  %v193_v20 = vadd.f32 %v190_v44, %v181_v8  ;;  %v194_v21 = vadd.f32 %v190_v44, %v182_v13  ;;  %v195_v24 = vadd.f32 %v190_v44, %v183_v9  ;;  %v753_v13 = vld [vmem:[%s9986_s4 + $0x50] sm:$0xff]  ;;  %v754_v9 = vld [vmem:[%s9986_s4 + $0x58] sm:$0xff] }
  0xb7   :  { %v196_v26 = vadd.f32 %v190_v44, %v184_v14  ;;  %v197_v29 = vadd.f32 %v190_v44, %v185_v15  ;;  %v198_v30 = vadd.f32 %v190_v44, %v186_v17  ;;  %v773_v57 = vand.u32 4294901760, %v746_v55 }
  0xb8   :  { %v215_v27 = vrot.slane %v192_v18, 7  ;;  %v217_v28 = vrot.slane %v193_v20, 6  ;;  %v219_v36 = vrot.slane %v194_v21, 5  ;;  %v221_v38 = vrot.slane %v195_v24, 4  ;;  %v755_v18 = vld [vmem:[%s9986_s4 + $0x60] sm:$0xff]  ;;  %v756_v20 = vld [vmem:[%s9986_s4 + $0x68] sm:$0xff] }
  0xb9   :  { %v223_v40 = vrot.slane %v196_v26, 3  ;;  %v225_v42 = vrot.slane %v197_v29, 2  ;;  %v227_v45 = vrot.slane %v198_v30, 1  ;;  %v776_v61 = vand.u32 4294901760, %v747_v60  ;;  %v757_v29 = vld [vmem:[%s9986_s4 + $0x70] sm:$0xff] }
  0xba   :  { %v216_v31 = vsel %vm61_vm0, %v215_v27, %v191_v25  ;;  %v779_v1 = vand.u32 4294901760, %v748_v0  ;;  %v782_v3 = vand.u32 4294901760, %v749_v2  ;;  %v785_v6 = vand.u32 4294901760, %v750_v63 }
  0xbb   :  { %v218_v37 = vsel %vm64_vm1, %v217_v28, %v216_v31  ;;  %v788_v5 = vand.u32 4294901760, %v751_v4  ;;  %v791_v12 = vand.u32 4294901760, %v752_v11  ;;  %v794_v14 = vand.u32 4294901760, %v753_v13 }
  0xbc   :  { %v220_v39 = vsel %vm67_vm2, %v219_v36, %v218_v37  ;;  %v8224_v62 = vpack.c.bf16 %v779_v1, %v776_v61  ;;  %v8234_v10 = vpack.c.bf16 %v785_v6, %v782_v3  ;;  %v797_v15 = vand.u32 4294901760, %v754_v9 }
  0xbd   :  { %v222_v41 = vsel %vm70_vm3, %v221_v38, %v220_v39  ;;  %v8244_v8 = vpack.c.bf16 %v791_v12, %v788_v5  ;;  %v800_v21 = vand.u32 4294901760, %v755_v18  ;;  %v803_v24 = vand.u32 4294901760, %v756_v20  ;;  %v758_v38 = vld [vmem:[%s9986_s4 + $0x78] sm:$0xff] }
  0xbe   :  { %v224_v43 = vsel %vm73_vm4, %v223_v40, %v222_v41  ;;  %v8254_v17 = vpack.c.bf16 %v797_v15, %v794_v14  ;;  %v8270_v28 = vsub.f32 %v746_v55, %v773_v57  ;;  %v8275_v30 = vsub.f32 %v747_v60, %v776_v61 }
  0xbf   :  { %v226_v47 = vsel %vm76_vm5, %v225_v42, %v224_v43  ;;  %v8277_v31 = vsub.f32 %v748_v0, %v779_v1  ;;  %v8279_v36 = vsub.f32 %v749_v2, %v782_v3  ;;  %v8281_v37 = vsub.f32 %v750_v63, %v785_v6 }
  0xc0   :  { %v228_v48 = vsel %vm79_vm6, %v227_v45, %v226_v47  ;;  %v8286_v39 = vsub.f32 %v751_v4, %v788_v5  ;;  %v8288_v40 = vsub.f32 %v752_v11, %v791_v12  ;;  %v8290_v41 = vsub.f32 %v753_v13, %v794_v14 }
  0xc1   :  { %v229_v44 = vsel %vm82_vm7, %v228_v48, 0  ;;  %v8292_v42 = vsub.f32 %v754_v9, %v797_v15  ;;  %v8294_v43 = vpack.c.bf16 %v803_v24, %v800_v21  ;;  %v8296_v45 = vsub.f32 %v755_v18, %v800_v21 }
  0xc2   :  { %v300_v49 = vand.u32 4294901760, %v229_v44  ;;  %v8298_v47 = vsub.f32 %v756_v20, %v803_v24  ;;  %v806_v48 = vand.u32 4294901760, %v757_v29  ;;  %v10003_v0 = vand.u32 4294901760, %v8275_v30 }
  0xc3   :  { %v10002_v61 = vand.u32 4294901760, %v8277_v31  ;;  %v10001_v5 = vand.u32 4294901760, %v8279_v36  ;;  %v10000_v12 = vand.u32 4294901760, %v8281_v37  ;;  %v9999_v20 = vand.u32 4294901760, %v8286_v39 }
  0xc4   :  { %v301_v50 = vsub.f32 %v229_v44, %v300_v49  ;;  %v809_v44 = vand.u32 4294901760, %v758_v38  ;;  %v886_v63 = vsub.f32 %v8275_v30, %v10003_v0  ;;  %v9998_v21 = vand.u32 4294901760, %v8288_v40 }
  0xc5   :  { %v893_v3 = vsub.f32 %v8277_v31, %v10002_v61  ;;  %v900_v9 = vsub.f32 %v8279_v36, %v10001_v5  ;;  %v907_v14 = vsub.f32 %v8281_v37, %v10000_v12 }
  0xc6   :  { %6061 = vmatmul.mubr.f32.vlgmr.msra.gmra.mrb[0].mxu0 %v301_v50  ;;  %v302_v51 = vand.u32 4294901760, %v301_v50  ;;  %v887_v4 = vand.u32 4294901760, %v886_v63  ;;  %v9994_v63 = vand.u32 4294901760, %v8298_v47 }
  0xc7   :  { %7154 = vmatpush3.bf16.msra.mxu0 %v8121_v59  ;;  %6071 = vmatprep.mubr.msk.f32.mxu0 %vm7980_vm8, %v10012_v54  ;;  %v894_v11 = vand.u32 4294901760, %v893_v3  ;;  %v901_v15 = vand.u32 4294901760, %v900_v9  ;;  %v908_v18 = vand.u32 4294901760, %v907_v14 }
  0xc8   :  { %7155 = vmatprep.subr.bf16.mxu0 %v10010_v46  ;;  %v303_v52 = vsub.f32 %v301_v50, %v302_v51 }
  0xc9   :  { %v8340_v13 = vpack.c.bf16 %v894_v11, %v887_v4  ;;  %v8350_v24 = vpack.c.bf16 %v908_v18, %v901_v15  ;;  %v949_v11 = vsub.f32 %v8298_v47, %v9994_v63 }
  0xca   :  { %v304_v53 = vand.u32 4294901760, %v303_v52  ;;  %v8306_v52 = vpack.c.bf16 %v809_v44, %v806_v48 }
  0xcb   :  { %7157 = vmatpush3.bf16.msra.mxu0 %v8127_v7  ;;  %v950_v14 = vand.u32 4294901760, %v949_v11  ;;  %v7228_v11 = vpack.c.bf16 %v8281_v37, %v8279_v36 }
  0xcc   :  { %6039 = vmatmul.mubr.f32.vlgmr.msra.gmra.mrb[0].mxu1 %v304_v53  ;;  %7158 = vmatprep.subr.bf16.mxu0 %v10010_v46  ;;  %v8308_v53 = vsub.f32 %v758_v38, %v809_v44  ;;  %v921_v38 = vsub.f32 %v8288_v40, %v9998_v21 }
  0xcd   :  { %7142 = vmatpush3.bf16.msra.mxu1 %v8131_v16  ;;  %6049 = vmatprep.mubr.msk.f32.mxu1 %vm7980_vm8, %v10012_v54  ;;  %v743_v16 = vld [vmem:[%s9986_s4] sm:$0xff] }
  0xce   :  { %6072 = vmatmul.mubr.f32.vlgmr.msra.gmra.mrb[0].mxu0 %v302_v51  ;;  %7143 = vmatprep.subr.bf16.mxu1 %v10010_v46  ;;  %v8303_v51 = vsub.f32 %v757_v29, %v806_v48  ;;  %v914_v29 = vsub.f32 %v8286_v39, %v9999_v20  ;;  %v922_v44 = vand.u32 4294901760, %v921_v38  ;;  %v9992_v18 = vand.u32 4294901760, %v8308_v53 }
  0xcf   :  { %7160 = vmatpush3.bf16.msra.mxu0 %v8133_v19  ;;  %6082 = vmatprep.mubr.msk.f32.mxu0 %vm7980_vm8, %v10012_v54  ;;  %v764_v19 = vand.u32 4294901760, %v743_v16 }
  0xd0   :  { %7161 = vmatprep.subr.bf16.mxu0 %v10010_v46  ;;  %v915_v48 = vand.u32 4294901760, %v914_v29  ;;  %v9993_v15 = vand.u32 4294901760, %v8303_v51 }
  0xd1   :  { %7145 = vmatpush3.bf16.msra.mxu1 %v8135_v22  ;;  %v8264_v25 = vsub.f32 %v743_v16, %v764_v19 }
  0xd2   :  { %7170 = vmatprep.subr.bf16.mxu1 %v10010_v46  ;;  %v956_v38 = vsub.f32 %v8303_v51, %v9993_v15 }
  0xd3   :  { %7163 = vmatpush3.bf16.msra.mxu0 %v8137_v23 }
  0xd4   :  { %6050 = vmatmul.mubr.f32.vlgmr.msra.gmra.mrb[0].mxu1 %v300_v49  ;;  %7164 = vmatprep.subr.bf16.mxu0 %v10010_v46 }
  0xd5   :  { %6128 = vmatprep.mubr.msk.f32.mxu1 %vm7980_vm8, %v10012_v54 }
  0xd6   :  { %6083 = vmatmul.mubr.f32.vlgmr.msra.gmra.mrb[0].mxu0 %v300_v49 }
  0xd7   :  { %7166 = vmatpush3.bf16.msra.mxu0 %v8121_v59  ;;  %6093 = vmatprep.mubr.msk.f32.mxu0 %vm7980_vm8, %v10012_v54  ;;  %v744_v59 = vld [vmem:[%s9986_s4 + $0x8] sm:$0xff] }
  0xd8   :  { %7167 = vmatprep.subr.bf16.mxu0 %v10010_v46  ;;  %v767_v22 = vand.u32 4294901760, %v744_v59 }
  0xda   :  { %v8204_v23 = vpack.c.bf16 %v767_v22, %v764_v19  ;;  %v8266_v26 = vsub.f32 %v744_v59, %v767_v22  ;;  %v10004_v22 = vand.u32 4294901760, %v8270_v28 }
  0xdb   :  { %7169 = vmatpush3.bf16.msra.mxu0 %v8127_v7  ;;  %v745_v7 = vld [vmem:[%s9986_s4 + $0x10] sm:$0xff] }
  0xdc   :  { %7314 = vmatprep.subr.bf16.mxu0 %v10010_v46  ;;  %7172 = vmatpush3.bf16.msra.mxu1 %v8204_v23  ;;  %v770_v56 = vand.u32 4294901760, %v745_v7  ;;  %v10006_v50 = vand.u32 4294901760, %v8266_v26 }
  0xdd   :  { %7173 = vmatprep.subr.bf16.mxu1 %v10010_v46 }
  0xde   :  { %6094 = vmatmul.mubr.f32.vlgmr.msra.gmra.mrb[0].mxu0 %v300_v49  ;;  %v8214_v58 = vpack.c.bf16 %v773_v57, %v770_v56  ;;  %v8268_v27 = vsub.f32 %v745_v7, %v770_v56  ;;  %v10007_v49 = vand.u32 4294901760, %v8264_v25  ;;  %v865_v59 = vsub.f32 %v8266_v26, %v10006_v50 }
  0xdf   :  { %6314 = vmatprep.mubr.msk.f32.mxu0 %vm7980_vm8, %v10012_v54  ;;  %v879_v57 = vsub.f32 %v8270_v28, %v10004_v22 }
  0xe0   :  { %7175 = vmatpush3.bf16.msra.mxu1 %v8214_v58  ;;  %v858_v16 = vsub.f32 %v8264_v25, %v10007_v49  ;;  %v10005_v19 = vand.u32 4294901760, %v8268_v27  ;;  %v866_v55 = vand.u32 4294901760, %v865_v59  ;;  %v9996_v59 = vand.u32 4294901760, %v8292_v42 }
  0xe1   :  { %7176 = vmatprep.subr.bf16.mxu1 %v10010_v46  ;;  %v880_v2 = vand.u32 4294901760, %v879_v57 }
  0xe2   :  { %v859_v7 = vand.u32 4294901760, %v858_v16  ;;  %v872_v56 = vsub.f32 %v8268_v27, %v10005_v19  ;;  %v9997_v16 = vand.u32 4294901760, %v8290_v41 }
  0xe4   :  { %7178 = vmatpush3.bf16.msra.mxu1 %v8224_v62  ;;  %v8326_v60 = vpack.c.bf16 %v866_v55, %v859_v7  ;;  %v873_v1 = vand.u32 4294901760, %v872_v56  ;;  %v8360_v7 = vpack.c.bf16 %v922_v44, %v915_v48  ;;  %v928_v55 = vsub.f32 %v8290_v41, %v9997_v16 }
  0xe5   :  { %7179 = vmatprep.subr.bf16.mxu1 %v10010_v46  ;;  %v935_v56 = vsub.f32 %v8292_v42, %v9996_v59  ;;  %v963_v48 = vsub.f32 %v8308_v53, %v9992_v18  ;;  %v957_v44 = vand.u32 4294901760, %v956_v38  ;;  %v27_v38 = vld [vmem:[%s9987_s2] sm:$0x3] }
  0xe6   :  { %v8336_v6 = vpack.c.bf16 %v880_v2, %v873_v1  ;;  %v929_v57 = vand.u32 4294901760, %v928_v55  ;;  %v9995_v2 = vand.u32 4294901760, %v8296_v45 }
  0xe7   :  { %v936_v1 = vand.u32 4294901760, %v935_v56  ;;  %v964_v55 = vand.u32 4294901760, %v963_v48 }
  0xe8   :  { %7181 = vmatpush3.bf16.msra.mxu1 %v8234_v10  ;;  %v942_v4 = vsub.f32 %v8296_v45, %v9995_v2 }
  0xe9   :  { %7182 = vmatprep.subr.bf16.mxu1 %v10010_v46  ;;  %v8370_v3 = vpack.c.bf16 %v936_v1, %v929_v57  ;;  %v8388_v56 = vpack.c.bf16 %v964_v55, %v957_v44  ;;  %v7219_v57 = vpack.c.bf16 %v8266_v26, %v8264_v25  ;;  %v7222_v1 = vpack.c.bf16 %v8270_v28, %v8268_v27 }
  0xea   :  { %v943_v9 = vand.u32 4294901760, %v942_v4  ;;  %v7225_v4 = vpack.c.bf16 %v8277_v31, %v8275_v30  ;;  %v206_v44 = vrot.slane %v27_v38, %v177_v33 }
  0xec   :  { %7184 = vmatpush3.bf16.msra.mxu1 %v8244_v8  ;;  %v8380_v29 = vpack.c.bf16 %v950_v14, %v943_v9  ;;  %v7231_v9 = vpack.c.bf16 %v8288_v40, %v8286_v39  ;;  %v7234_v14 = vpack.c.bf16 %v8292_v42, %v8290_v41 }
  0xed   :  { %7185 = vmatprep.subr.bf16.mxu1 %v10010_v46 }
  0xf0   :  { %7187 = vmatpush3.bf16.msra.mxu1 %v8254_v17 }
  0xf1   :  { %7188 = vmatprep.subr.bf16.mxu1 %v10010_v46 }
  0xf4   :  { %7190 = vmatpush3.bf16.msra.mxu1 %v8294_v43 }
  0xf5   :  { %7191 = vmatprep.subr.bf16.mxu1 %v10010_v46 }
  0xf8   :  { %7193 = vmatpush3.bf16.msra.mxu1 %v8306_v52 }
  0xf9   :  { %7194 = vmatprep.subr.bf16.mxu1 %v10010_v46 }
 0x1a7   :  { %v397_v55 = vpop.f32.mrb[0].mxu1 }
 0x1a8   :  { %v7854_v18 = vadd.f32 %v397_v55, %v206_v44  ;;  %v6051_v15 = vpop.f32.mrb[1].mxu1 }
 0x1b1   :  { %v712_v63 = vpop.f32.mrb[0].mxu0 }
 0x1b2   :  { %v7855_v2 = vadd.f32 %v7854_v18, %v712_v63  ;;  %v6095_v59 = vpop.f32.mrb[1].mxu0 }
 0x1b4   :  { %v717_v16 = vmul.f32 0.70710677, %v7855_v2 }
 0x1b6   :  { %v720_v21 = vand.u32 2147483647, %v717_v16  ;;  %vm718_vm9 = vcmp.lt.f32.partialorder %v717_v16, 0.0  ;;  %v10081_v16 = vand.u32 4294901760, %v8270_v28 }
 0x1b8   :  { %v721_v20 = vmul.f32 0.3275911, %v720_v21  ;;  %v734_v5 = vsub.f32 0.0, %v720_v21 }
 0x1ba   :  { %v722_v12 = vadd.f32 1.0, %v721_v20  ;;  %v735_v0 = vmul.f32 %v734_v5, %v720_v21  ;;  %v10008_v20 = vmov 1.0   ;;  %v716_v5 = vmul.f32 0.5, %v7855_v2 }
 0x1bc   :  { %7946 = vrcp.f32 %v722_v12  ;;  %v736_v33 = vmul.f32 1.442695, %v735_v0  ;;  %v719_v12 = vsel %vm718_vm9, -1.0, %v10008_v20 }
 0x1be   :  { %7948 = vpow2.f32 %v736_v33 }
 0x1c6   :  { %v7947_v61 = vpop.eup %7946 }
 0x1c7   :  { %v725_v22 = vmul.f32 1.0614054, %v7947_v61 }
 0x1c8   :  { %v7949_v59 = vpop.eup %7948 }
 0x1c9   :  { %v726_v19 = vadd.f32 -1.4531521, %v725_v22 }
 0x1cb   :  { %v727_v38 = vmul.f32 %v7947_v61, %v726_v19 }
 0x1cd   :  { %v728_v50 = vadd.f32 1.4214138, %v727_v38 }
 0x1cf   :  { %v729_v49 = vmul.f32 %v7947_v61, %v728_v50 }
 0x1d1   :  { %v730_v44 = vadd.f32 -0.28449672, %v729_v49 }
 0x1d3   :  { %v731_v15 = vmul.f32 %v7947_v61, %v730_v44 }
 0x1d5   :  { %v732_v55 = vadd.f32 0.2548296, %v731_v15  ;;  %v28_v15 = vld [vmem:[%s9983_s0] sm:$0x1] }
 0x1d7   :  { %v733_v63 = vmul.f32 %v7947_v61, %v732_v55  ;;  %v10078_v61 = vand.u32 4294901760, %v8264_v25  ;;  %v10082_v25 = vand.u32 4294901760, %v8275_v30  ;;  %v10088_v30 = vand.u32 4294901760, %v8290_v41  ;;  %v36_v41 = vld [vmem:[%s9983_s0 + $0x1] sm:$0x1] }
 0x1d9   :  { %v738_v18 = vmul.f32 %v7949_v59, %v733_v63 }
 0x1db   :  { %v739_v34 = vsub.f32 1.0, %v738_v18 }
 0x1dd   :  { %v740_v48 = vmul.f32 %v739_v34, %v719_v12  ;;  %v10076_v34 = vpack.c.bf16 %v8298_v47, %v8296_v45  ;;  %v29_v12 = vld [vmem:[%s9983_s0 + $0x4] sm:$0x1] }
 0x1df   :  { %v741_v21 = vadd.f32 1.0, %v740_v48 }
 0x1e1   :  { %v742_v22 = vmul.f32 %v741_v21, %v716_v5  ;;  %v30_v5 = vld [vmem:[%s9983_s0 + $0x8] sm:$0x1]  ;;  %v31_v21 = vld [vmem:[%s9983_s0 + $0xc] sm:$0x1] }
 0x1e3   :  { %v8412_v0 = vand.u32 4294901760, %v742_v22 }
 0x1e5   :  { %v845_v19 = vsub.f32 %v742_v22, %v8412_v0 }
 0x1e7   :  { %v846_v50 = vand.u32 4294901760, %v845_v19 }
 0x1e9   :  { %v847_v49 = vsub.f32 %v845_v19, %v846_v50 }
 0x1eb   :  { %v848_v33 = vand.u32 4294901760, %v847_v49  ;;  %v32_v49 = vld [vmem:[%s9983_s0 + $0x10] sm:$0x1] }
 0x1ed   :  { %6129 = vmatmul.mubr.f32.vlgmr.msra.gmra.mrb[2].mxu1 %v848_v33  ;;  %v33_v33 = vld [vmem:[%s9983_s0 + $0x14] sm:$0x1] }
 0x1ee   :  { %7196 = vmatpush3.bf16.msra.mxu1 %v8326_v60  ;;  %6163 = vmatprep.mubr.msk.f32.mxu1 %vm7980_vm8, %v10012_v54  ;;  %v10077_v60 = vpack.c.bf16 %v8308_v53, %v8303_v51 }
 0x1ef   :  { %7197 = vmatprep.subr.bf16.mxu1 %v10010_v46 }
 0x1f2   :  { %7199 = vmatpush3.bf16.msra.mxu1 %v8336_v6  ;;  %v10079_v6 = vand.u32 4294901760, %v8266_v26  ;;  %v10083_v26 = vand.u32 4294901760, %v8277_v31  ;;  %v10089_v31 = vand.u32 4294901760, %v8292_v42  ;;  %v38_v42 = vld [vmem:[%s9983_s0 + $0x9] sm:$0x1] }
 0x1f3   :  { %7200 = vmatprep.subr.bf16.mxu1 %v10010_v46 }
 0x1f4   :  { %v7273_v2 = vpack.c.bf16 %v10083_v26, %v10082_v25 }
 0x1f6   :  { %7202 = vmatpush3.bf16.msra.mxu1 %v8340_v13  ;;  %v7267_v13 = vpack.c.bf16 %v10079_v6, %v10078_v61 }
 0x1f7   :  { %7203 = vmatprep.subr.bf16.mxu1 %v10010_v46 }
 0x1fa   :  { %7205 = vmatpush3.bf16.msra.mxu1 %v8350_v24  ;;  %v10080_v24 = vand.u32 4294901760, %v8268_v27  ;;  %v10085_v27 = vand.u32 4294901760, %v8281_v37  ;;  %v10091_v37 = vand.u32 4294901760, %v8298_v47  ;;  %v42_v47 = vld [vmem:[%s9983_s0 + $0x19] sm:$0x1] }
 0x1fb   :  { %7206 = vmatprep.subr.bf16.mxu1 %v10010_v46 }
 0x1fe   :  { %7208 = vmatpush3.bf16.msra.mxu1 %v8360_v7  ;;  %v7270_v7 = vpack.c.bf16 %v10081_v16, %v10080_v24 }
 0x1ff   :  { %7209 = vmatprep.subr.bf16.mxu1 %v10010_v46 }
 0x202   :  { %7211 = vmatpush3.bf16.msra.mxu1 %v8370_v3  ;;  %v10084_v3 = vand.u32 4294901760, %v8279_v36  ;;  %v10090_v36 = vand.u32 4294901760, %v8296_v45  ;;  %v41_v45 = vld [vmem:[%s9983_s0 + $0x15] sm:$0x1] }
 0x203   :  { %7212 = vmatprep.subr.bf16.mxu1 %v10010_v46 }
 0x204   :  { %v7276_v28 = vpack.c.bf16 %v10085_v27, %v10084_v3 }
 0x206   :  { %7214 = vmatpush3.bf16.msra.mxu1 %v8380_v29  ;;  %v10086_v29 = vand.u32 4294901760, %v8286_v39  ;;  %v10092_v39 = vand.u32 4294901760, %v8303_v51  ;;  %v43_v51 = vld [vmem:[%s9983_s0 + $0x1d] sm:$0x1] }
 0x207   :  { %7215 = vmatprep.subr.bf16.mxu1 %v10010_v46 }
 0x20a   :  { %7217 = vmatpush3.bf16.msra.mxu1 %v8388_v56  ;;  %v10087_v56 = vand.u32 4294901760, %v8288_v40  ;;  %v10093_v40 = vand.u32 4294901760, %v8308_v53 }
 0x20b   :  { %7218 = vmatprep.subr.bf16.mxu1 %v10010_v46 }
 0x20d   :  { %6164 = vmatmul.mubr.f32.vlgmr.msra.gmra.mrb[2].mxu1 %v8412_v0 }
 0x20e   :  { %7220 = vmatpush3.bf16.msra.mxu1 %v7219_v57  ;;  %6198 = vmatprep.mubr.msk.f32.mxu1 %vm7980_vm8, %v10012_v54  ;;  %v7279_v57 = vpack.c.bf16 %v10087_v56, %v10086_v29 }
 0x20f   :  { %7221 = vmatprep.subr.bf16.mxu1 %v10010_v46 }
 0x212   :  { %7223 = vmatpush3.bf16.msra.mxu1 %v7222_v1  ;;  %v7282_v1 = vpack.c.bf16 %v10089_v31, %v10088_v30 }
 0x213   :  { %7224 = vmatprep.subr.bf16.mxu1 %v10010_v46 }
 0x216   :  { %7226 = vmatpush3.bf16.msra.mxu1 %v7225_v4  ;;  %v7285_v4 = vpack.c.bf16 %v10091_v37, %v10090_v36 }
 0x217   :  { %7227 = vmatprep.subr.bf16.mxu1 %v10010_v46 }
 0x21a   :  { %7229 = vmatpush3.bf16.msra.mxu1 %v7228_v11  ;;  %v7288_v11 = vpack.c.bf16 %v10093_v40, %v10092_v39 }
 0x21b   :  { %7230 = vmatprep.subr.bf16.mxu1 %v10010_v46 }
 0x21e   :  { %7232 = vmatpush3.bf16.msra.mxu1 %v7231_v9 }
 0x21f   :  { %7233 = vmatprep.subr.bf16.mxu1 %v10010_v46 }
 0x222   :  { %7235 = vmatpush3.bf16.msra.mxu1 %v7234_v14 }
 0x223   :  { %7236 = vmatprep.subr.bf16.mxu1 %v10010_v46 }
 0x226   :  { %7238 = vmatpush3.bf16.msra.mxu1 %v10076_v34  ;;  %v34_v34 = vld [vmem:[%s9983_s0 + $0x18] sm:$0x1] }
 0x227   :  { %7239 = vmatprep.subr.bf16.mxu1 %v10010_v46 }
 0x22a   :  { %7241 = vmatpush3.bf16.msra.mxu1 %v10077_v60 }
 0x22b   :  { %7242 = vmatprep.subr.bf16.mxu1 %v10010_v46 }
 0x22d   :  { %6199 = vmatmul.mubr.f32.vlgmr.msra.gmra.mrb[2].mxu1 %v845_v19 }
 0x22e   :  { %7244 = vmatpush3.bf16.msra.mxu1 %v8204_v23  ;;  %6233 = vmatprep.mubr.msk.f32.mxu1 %vm7980_vm8, %v10012_v54 }
 0x22f   :  { %7245 = vmatprep.subr.bf16.mxu1 %v10010_v46 }
 0x232   :  { %7247 = vmatpush3.bf16.msra.mxu1 %v8214_v58 }
 0x233   :  { %7248 = vmatprep.subr.bf16.mxu1 %v10010_v46 }
 0x236   :  { %7250 = vmatpush3.bf16.msra.mxu1 %v8224_v62 }
 0x237   :  { %7251 = vmatprep.subr.bf16.mxu1 %v10010_v46 }
 0x23a   :  { %7253 = vmatpush3.bf16.msra.mxu1 %v8234_v10 }
 0x23b   :  { %7254 = vmatprep.subr.bf16.mxu1 %v10010_v46 }
 0x23e   :  { %7256 = vmatpush3.bf16.msra.mxu1 %v8244_v8 }
 0x23f   :  { %7257 = vmatprep.subr.bf16.mxu1 %v10010_v46 }
 0x242   :  { %7259 = vmatpush3.bf16.msra.mxu1 %v8254_v17 }
 0x243   :  { %7260 = vmatprep.subr.bf16.mxu1 %v10010_v46 }
 0x246   :  { %7262 = vmatpush3.bf16.msra.mxu1 %v8294_v43 }
 0x247   :  { %7263 = vmatprep.subr.bf16.mxu1 %v10010_v46 }
 0x24a   :  { %7265 = vmatpush3.bf16.msra.mxu1 %v8306_v52 }
 0x24b   :  { %7266 = vmatprep.subr.bf16.mxu1 %v10010_v46 }
 0x24d   :  { %6234 = vmatmul.mubr.f32.vlgmr.msra.gmra.mrb[2].mxu1 %v846_v50 }
 0x24e   :  { %7268 = vmatpush3.bf16.msra.mxu1 %v7267_v13  ;;  %6268 = vmatprep.mubr.msk.f32.mxu1 %vm7980_vm8, %v10012_v54  ;;  %v35_v13 = vld [vmem:[%s9983_s0 + $0x1c] sm:$0x1] }
 0x24f   :  { %7269 = vmatprep.subr.bf16.mxu1 %v10010_v46 }
 0x252   :  { %7271 = vmatpush3.bf16.msra.mxu1 %v7270_v7 }
 0x253   :  { %7272 = vmatprep.subr.bf16.mxu1 %v10010_v46 }
 0x256   :  { %7274 = vmatpush3.bf16.msra.mxu1 %v7273_v2 }
 0x257   :  { %7275 = vmatprep.subr.bf16.mxu1 %v10010_v46 }
 0x25a   :  { %7277 = vmatpush3.bf16.msra.mxu1 %v7276_v28 }
 0x25b   :  { %7278 = vmatprep.subr.bf16.mxu1 %v10010_v46 }
 0x25e   :  { %7280 = vmatpush3.bf16.msra.mxu1 %v7279_v57 }
 0x25f   :  { %7281 = vmatprep.subr.bf16.mxu1 %v10010_v46 }
 0x262   :  { %7283 = vmatpush3.bf16.msra.mxu1 %v7282_v1 }
 0x263   :  { %7284 = vmatprep.subr.bf16.mxu1 %v10010_v46 }
 0x266   :  { %7286 = vmatpush3.bf16.msra.mxu1 %v7285_v4 }
 0x267   :  { %7287 = vmatprep.subr.bf16.mxu1 %v10010_v46 }
 0x26a   :  { %7289 = vmatpush3.bf16.msra.mxu1 %v7288_v11 }
 0x26b   :  { %7290 = vmatprep.subr.bf16.mxu1 %v10010_v46 }
 0x26d   :  { %6269 = vmatmul.mubr.f32.vlgmr.msra.gmra.mrb[2].mxu1 %v8412_v0 }
 0x26e   :  { %7292 = vmatpush3.bf16.msra.mxu1 %v8204_v23  ;;  %6303 = vmatprep.mubr.msk.f32.mxu1 %vm7980_vm8, %v10012_v54  ;;  %v761_v23 = vsub.s32 4, %v8139_v32 }
 0x26f   :  { %7293 = vmatprep.subr.bf16.mxu1 %v10010_v46 }
 0x272   :  { %7295 = vmatpush3.bf16.msra.mxu1 %v8214_v58  ;;  %v762_v58 = vrot.slane %v8146_v35, %v761_v23  ;;  %v39_v35 = vld [vmem:[%s9983_s0 + $0xd] sm:$0x1] }
 0x273   :  { %7296 = vmatprep.subr.bf16.mxu1 %v10010_v46 }
 0x276   :  { %7298 = vmatpush3.bf16.msra.mxu1 %v8224_v62 }
 0x277   :  { %7299 = vmatprep.subr.bf16.mxu1 %v10010_v46 }
 0x27a   :  { %7301 = vmatpush3.bf16.msra.mxu1 %v8234_v10  ;;  %v37_v10 = vld [vmem:[%s9983_s0 + $0x5] sm:$0x1] }
 0x27b   :  { %7302 = vmatprep.subr.bf16.mxu1 %v10010_v46 }
 0x27e   :  { %7304 = vmatpush3.bf16.msra.mxu1 %v8244_v8 }
 0x27f   :  { %7305 = vmatprep.subr.bf16.mxu1 %v10010_v46 }
 0x282   :  { %7307 = vmatpush3.bf16.msra.mxu1 %v8254_v17 }
 0x283   :  { %7308 = vmatprep.subr.bf16.mxu1 %v10010_v46 }
 0x286   :  { %7310 = vmatpush3.bf16.msra.mxu1 %v8294_v43  ;;  %v40_v43 = vld [vmem:[%s9983_s0 + $0x11] sm:$0x1] }
 0x287   :  { %7311 = vmatprep.subr.bf16.mxu1 %v10010_v46 }
 0x28a   :  { %7313 = vmatpush3.bf16.msra.mxu1 %v8306_v52 }
 0x28b   :  { %7350 = vmatprep.subr.bf16.mxu1 %v10010_v46 }
 0x28d   :  { %6304 = vmatmul.mubr.f32.vlgmr.msra.gmra.mrb[2].mxu1 %v8412_v0 }
 0x28e   :  { %6404 = vmatprep.mubr.msk.f32.mxu1 %vm7980_vm8, %v10012_v54 }
 0x360   :  { %v1400_v62 = vpop.f32.mrb[2].mxu1 }
 0x361   :  { %v8555_v8 = vadd.f32 %v1400_v62, %v762_v58  ;;  %v6305_v17 = vpop.f32.mrb[3].mxu1 }
 0x363   :  { %v8579_v52 = vrot.slane %v8555_v8, 1  ;;  %v8582_v53 = vrot.slane %v8555_v8, 2  ;;  %v8585_v9 = vrot.slane %v8555_v8, 3  ;;  %v8588_v14 = vrot.slane %v8555_v8, 4 }
 0x364   :  { %v8591_v48 = vrot.slane %v8555_v8, 5  ;;  %v8594_v38 = vrot.slane %v8555_v8, 6  ;;  %v8597_v44 = vrot.slane %v8555_v8, 7  ;;  %v8624_v22 = vadd.f32 %v8555_v8, %v36_v41 }
 0x365   :  { %v8603_v55 = vadd.f32 %v8579_v52, %v37_v10  ;;  %v8606_v63 = vadd.f32 %v8582_v53, %v38_v42  ;;  %v8609_v59 = vadd.f32 %v8585_v9, %v39_v35  ;;  %v8612_v18 = vadd.f32 %v8588_v14, %v40_v43 }
 0x366   :  { %10098 = vst [vmem:[#allocation7_spill] sm:$0xff] %v8624_v22  ;;  %v8627_v0 = vadd.f32 %v8591_v48, %v41_v45  ;;  %v8630_v19 = vadd.f32 %v8594_v38, %v42_v47  ;;  %v8633_v50 = vadd.f32 %v8597_v44, %v43_v51  ;;  %v8651_v24 = vadd.f32 %v8555_v8, %v28_v15 }
 0x367   :  { %10094 = vst [vmem:[#allocation3_spill] sm:$0xff] %v8603_v55  ;;  %10095 = vst [vmem:[#allocation4_spill] sm:$0xff] %v8606_v63  ;;  %v2820_v60 = vrot.slane %v8603_v55, 7  ;;  %v2822_v61 = vrot.slane %v8606_v63, 6  ;;  %v2824_v6 = vrot.slane %v8609_v59, 5  ;;  %v2826_v16 = vrot.slane %v8612_v18, 4 }
 0x368   :  { %10096 = vst [vmem:[#allocation5_spill] sm:$0xff] %v8609_v59  ;;  %10097 = vst [vmem:[#allocation6_spill] sm:$0xff] %v8612_v18  ;;  %v2828_v7 = vrot.slane %v8627_v0, 3  ;;  %v2830_v25 = vrot.slane %v8630_v19, 2  ;;  %v8657_v26 = vadd.f32 %v8579_v52, %v29_v12  ;;  %v8662_v3 = vadd.f32 %v8582_v53, %v30_v5 }
 0x369   :  { %10099 = vst [vmem:[#allocation8_spill] sm:$0xff] %v8627_v0  ;;  %10100 = vst [vmem:[#allocation9_spill] sm:$0xff] %v8630_v19  ;;  %v2821_v2 = vsel %vm61_vm0, %v2820_v60, %v8624_v22  ;;  %v8665_v27 = vadd.f32 %v8585_v9, %v31_v21  ;;  %v8668_v28 = vadd.f32 %v8588_v14, %v32_v49  ;;  %v2832_v1 = vrot.slane %v8633_v50, 1 }
 0x36a   :  { %10101 = vst [vmem:[#allocation10_spill] sm:$0xff] %v8633_v50  ;;  %10102 = vst [vmem:[#allocation11_spill] sm:$0xff] %v8651_v24  ;;  %v2823_v29 = vsel %vm64_vm1, %v2822_v61, %v2821_v2  ;;  %v8672_v56 = vadd.f32 %v8591_v48, %v33_v33  ;;  %v8675_v57 = vadd.f32 %v8594_v38, %v34_v34  ;;  %v1456_v36 = vrot.slane %v8657_v26, 7 }
 0x36b   :  { %10103 = vst [vmem:[#allocation12_spill] sm:$0xff] %v8657_v26  ;;  %10104 = vst [vmem:[#allocation13_spill] sm:$0xff] %v8662_v3  ;;  %v8678_v30 = vadd.f32 %v8597_v44, %v35_v13  ;;  %v2825_v31 = vsel %vm67_vm2, %v2824_v6, %v2823_v29  ;;  %v1458_v37 = vrot.slane %v8662_v3, 6  ;;  %v1460_v39 = vrot.slane %v8665_v27, 5 }
 0x36c   :  { %10105 = vst [vmem:[#allocation14_spill] sm:$0xff] %v8665_v27  ;;  %10106 = vst [vmem:[#allocation15_spill] sm:$0xff] %v8668_v28  ;;  %v2827_v4 = vsel %vm70_vm3, %v2826_v16, %v2825_v31  ;;  %v1462_v40 = vrot.slane %v8668_v28, 4  ;;  %v1464_v11 = vrot.slane %v8672_v56, 3  ;;  %v1457_v58 = vsel %vm61_vm0, %v1456_v36, %v8651_v24 }
 0x36d   :  { %10107 = vst [vmem:[#allocation16_spill] sm:$0xff] %v8672_v56  ;;  %10108 = vst [vmem:[#allocation17_spill] sm:$0xff] %v8675_v57  ;;  %v2829_v23 = vsel %vm73_vm4, %v2828_v7, %v2827_v4  ;;  %v1466_v62 = vrot.slane %v8675_v57, 2  ;;  %v1468_v10 = vrot.slane %v8678_v30, 1  ;;  %v1459_v41 = vsel %vm64_vm1, %v1458_v37, %v1457_v58 }
 0x36e   :  { %10109 = vst [vmem:[#allocation18_spill] sm:$0xff] %v8678_v30  ;;  %v2831_v17 = vsel %vm76_vm5, %v2830_v25, %v2829_v23  ;;  %v2840_v42 = vmul.f32 %v8603_v55, %v8603_v55  ;;  %v2841_v35 = vmul.f32 %v8606_v63, %v8606_v63  ;;  %v1461_v45 = vsel %vm67_vm2, %v1460_v39, %v1459_v41 }
 0x36f   :  { %v2833_v43 = vsel %vm79_vm6, %v2832_v1, %v2831_v17  ;;  %v2842_v47 = vmul.f32 %v8609_v59, %v8609_v59  ;;  %v2843_v51 = vmul.f32 %v8612_v18, %v8612_v18  ;;  %v1463_v12 = vsel %vm70_vm3, %v1462_v40, %v1461_v45 }
 0x370   :  { %v2835_v15 = vsel %vm82_vm7, %v2833_v43, 0.0  ;;  %v2844_v5 = vmul.f32 %v8627_v0, %v8627_v0  ;;  %v2845_v21 = vmul.f32 %v8630_v19, %v8630_v19  ;;  %v1465_v49 = vsel %vm73_vm4, %v1464_v11, %v1463_v12 }
 0x371   :  { %2836 = vadd.xlane.f32.xlu0 %v2835_v15  ;;  %v2839_v33 = vmul.f32 %v8624_v22, %v8624_v22  ;;  %v2855_v34 = vrot.slane %v2840_v42, 7  ;;  %v2857_v60 = vrot.slane %v2841_v35, 6  ;;  %v1467_v61 = vsel %vm76_vm5, %v1466_v62, %v1465_v49 }
 0x372   :  { %v2846_v6 = vmul.f32 %v8633_v50, %v8633_v50  ;;  %v2859_v13 = vrot.slane %v2842_v47, 5  ;;  %v1469_v16 = vsel %vm79_vm6, %v1468_v10, %v1467_v61  ;;  %v2861_v25 = vrot.slane %v2843_v51, 4 }
 0x373   :  { %v2856_v7 = vsel %vm61_vm0, %v2855_v34, %v2839_v33  ;;  %v2863_v2 = vrot.slane %v2844_v5, 3  ;;  %v1471_v29 = vsel %vm82_vm7, %v1469_v16, 0.0  ;;  %v2865_v1 = vrot.slane %v2845_v21, 2  ;;  %v7968_v33 = vld [vmem:[%s9983_s0 + $0x6] sm:$0x1] }
 0x374   :  { %v2858_v31 = vsel %vm64_vm1, %v2857_v60, %v2856_v7  ;;  %v1476_v36 = vmul.f32 %v8657_v26, %v8657_v26  ;;  %1472 = vadd.xlane.f32.xlu1 %v1471_v29  ;;  %v1477_v4 = vmul.f32 %v8662_v3, %v8662_v3  ;;  %v1478_v39 = vmul.f32 %v8665_v27, %v8665_v27  ;;  %v7969_v60 = vld [vmem:[%s9983_s0 + $0xa] sm:$0x1] }
 0x375   :  { %v2860_v37 = vsel %vm67_vm2, %v2859_v13, %v2858_v31  ;;  %v1479_v40 = vmul.f32 %v8668_v28, %v8668_v28  ;;  %v2867_v23 = vrot.slane %v2846_v6, 1  ;;  %v1480_v58 = vmul.f32 %v8672_v56, %v8672_v56  ;;  %v7970_v13 = vld [vmem:[%s9983_s0 + $0xe] sm:$0x1] }
 0x376   :  { %v2862_v11 = vsel %vm70_vm3, %v2861_v25, %v2860_v37  ;;  %v1481_v62 = vmul.f32 %v8675_v57, %v8675_v57  ;;  %v1475_v17 = vmul.f32 %v8651_v24, %v8651_v24  ;;  %v1491_v41 = vrot.slane %v1476_v36, 7  ;;  %v7975_v37 = vld [vmem:[%s9983_s0 + $0x1e] sm:$0x1] }
 0x377   :  { %v2864_v10 = vsel %vm73_vm4, %v2863_v2, %v2862_v11  ;;  %v1493_v42 = vrot.slane %v1477_v4, 6  ;;  %v1482_v43 = vmul.f32 %v8678_v30, %v8678_v30  ;;  %v1495_v45 = vrot.slane %v1478_v39, 5 }
 0x378   :  { %v2866_v35 = vsel %vm76_vm5, %v2865_v1, %v2864_v10  ;;  %v1497_v47 = vrot.slane %v1479_v40, 4  ;;  %v1492_v15 = vsel %vm61_vm0, %v1491_v41, %v1475_v17  ;;  %v1499_v12 = vrot.slane %v1480_v58, 3 }
 0x379   :  { %v2868_v51 = vsel %vm79_vm6, %v2867_v23, %v2866_v35  ;;  %v1501_v5 = vrot.slane %v1481_v62, 2  ;;  %v1494_v49 = vsel %vm64_vm1, %v1493_v42, %v1492_v15  ;;  %v8749_v34 = vadd.f32 %v7968_v33, %v8579_v52  ;;  %v7971_v52 = vld [vmem:[%s9983_s0 + $0x12] sm:$0x1] }
 0x37a   :  { %v2870_v21 = vsel %vm82_vm7, %v2868_v51, 0.0  ;;  %v8755_v61 = vadd.f32 %v7969_v60, %v8582_v53  ;;  %v1496_v6 = vsel %vm67_vm2, %v1495_v45, %v1494_v49  ;;  %v8762_v16 = vadd.f32 %v7970_v13, %v8585_v9  ;;  %v7972_v53 = vld [vmem:[%s9983_s0 + $0x16] sm:$0x1]  ;;  %v7973_v9 = vld [vmem:[%s9983_s0 + $0x2] sm:$0x1] }
 0x37b   :  { %10110 = vst [vmem:[#allocation19_spill] sm:$0xff] %v8749_v34  ;;  %2871 = vadd.xlane.f32.xlu0 %v2870_v21  ;;  %v8768_v7 = vadd.f32 %v7971_v52, %v8588_v14  ;;  %v8774_v25 = vadd.f32 %v7972_v53, %v8591_v48  ;;  %v1498_v2 = vsel %vm70_vm3, %v1497_v47, %v1496_v6  ;;  %v7974_v14 = vld [vmem:[%s9983_s0 + $0x1a] sm:$0x1]  ;;  %v4167_v1 = vrot.slane %v8749_v34, 7 }
 0x37c   :  { %10111 = vst [vmem:[#allocation20_spill] sm:$0xff] %v8755_v61  ;;  %10112 = vst [vmem:[#allocation21_spill] sm:$0xff] %v8762_v16  ;;  %v8781_v29 = vadd.f32 %v7973_v9, %v8555_v8  ;;  %v8787_v31 = vadd.f32 %v7974_v14, %v8594_v38  ;;  %v1500_v48 = vsel %vm73_vm4, %v1499_v12, %v1498_v2  ;;  %v1503_v36 = vrot.slane %v1482_v43, 1 }
 0x37d   :  { %10113 = vst [vmem:[#allocation22_spill] sm:$0xff] %v8768_v7  ;;  %10114 = vst [vmem:[#allocation23_spill] sm:$0xff] %v8774_v25  ;;  %v8795_v4 = vadd.f32 %v7975_v37, %v8597_v44  ;;  %v4169_v8 = vrot.slane %v8755_v61, 6  ;;  %v1502_v39 = vsel %vm76_vm5, %v1501_v5, %v1500_v48  ;;  %v4171_v40 = vrot.slane %v8762_v16, 5 }
 0x37e   :  { %10115 = vst [vmem:[#allocation24_spill] sm:$0xff] %v8781_v29  ;;  %10116 = vst [vmem:[#allocation25_spill] sm:$0xff] %v8787_v31  ;;  %v4168_v38 = vsel %vm61_vm0, %v4167_v1, %v8781_v29  ;;  %v4173_v11 = vrot.slane %v8768_v7, 4  ;;  %v1504_v23 = vsel %vm79_vm6, %v1503_v36, %v1502_v39  ;;  %v4175_v62 = vrot.slane %v8774_v25, 3 }
 0x37f   :  { %10117 = vst [vmem:[#allocation26_spill] sm:$0xff] %v8795_v4  ;;  %v4170_v58 = vsel %vm64_vm1, %v4169_v8, %v4168_v38  ;;  %v4177_v44 = vrot.slane %v8787_v31, 2  ;;  %v1506_v10 = vsel %vm82_vm7, %v1504_v23, 0.0  ;;  %v4187_v41 = vmul.f32 %v8749_v34, %v8749_v34  ;;  %v1405_v23 = vld [vmem:[%s9988_s5 + $0x8] sm:$0xff] }
 0x380   :  { %v4172_v17 = vsel %vm67_vm2, %v4171_v40, %v4170_v58  ;;  %v4188_v42 = vmul.f32 %v8755_v61, %v8755_v61  ;;  %1507 = vadd.xlane.f32.xlu1 %v1506_v10  ;;  %v4179_v43 = vrot.slane %v8795_v4, 1  ;;  %v4189_v45 = vmul.f32 %v8762_v16, %v8762_v16  ;;  %v1406_v58 = vld [vmem:[%s9988_s5 + $0x10] sm:$0xff]  ;;  %v1407_v10 = vld [vmem:[%s9988_s5 + $0x18] sm:$0xff] }
 0x381   :  { %v4174_v35 = vsel %vm70_vm3, %v4173_v11, %v4172_v17  ;;  %v4190_v47 = vmul.f32 %v8768_v7, %v8768_v7  ;;  %v4186_v15 = vmul.f32 %v8781_v29, %v8781_v29  ;;  %v4191_v12 = vmul.f32 %v8774_v25, %v8774_v25  ;;  %v1404_v11 = vld [vmem:[%s9988_s5] sm:$0xff] }
 0x382   :  { %v4176_v51 = vsel %vm73_vm4, %v4175_v62, %v4174_v35  ;;  %v4202_v5 = vrot.slane %v4187_v41, 7  ;;  %v4192_v49 = vmul.f32 %v8787_v31, %v8787_v31  ;;  %v4204_v33 = vrot.slane %v4188_v42, 6 }
 0x383   :  { %v4178_v21 = vsel %vm76_vm5, %v4177_v44, %v4176_v51  ;;  %v4193_v6 = vmul.f32 %v8795_v4, %v8795_v4  ;;  %v4206_v52 = vrot.slane %v4189_v45, 5  ;;  %v4208_v9 = vrot.slane %v4190_v47, 4 }
 0x384   :  { %v4180_v60 = vsel %vm79_vm6, %v4179_v43, %v4178_v21  ;;  %v4203_v13 = vsel %vm61_vm0, %v4202_v5, %v4186_v15  ;;  %v4210_v1 = vrot.slane %v4191_v12, 3  ;;  %v4212_v36 = vrot.slane %v4192_v49, 2 }
 0x385   :  { %v4182_v53 = vsel %vm82_vm7, %v4180_v60, 0.0  ;;  %v4205_v2 = vsel %vm64_vm1, %v4204_v33, %v4203_v13  ;;  %v4214_v8 = vrot.slane %v4193_v6, 1  ;;  %v1615_v62 = vand.u32 4294901760, %v1404_v11 }
 0x386   :  { %4183 = vadd.xlane.f32.xlu1 %v4182_v53  ;;  %v4207_v14 = vsel %vm67_vm2, %v4206_v52, %v4205_v2  ;;  %v1618_v44 = vand.u32 4294901760, %v1405_v23  ;;  %v1621_v17 = vand.u32 4294901760, %v1406_v58  ;;  %v1624_v41 = vand.u32 4294901760, %v1407_v10 }
 0x387   :  { %v4209_v48 = vsel %vm70_vm3, %v4208_v9, %v4207_v14  ;;  %v1695_v43 = vsub.f32 %v1404_v11, %v1615_v62  ;;  %v1576_v11 = vsub.s32 3, %v8139_v32 }
 0x388   :  { %v4211_v37 = vsel %vm73_vm4, %v4210_v1, %v4209_v48  ;;  %v8851_v42 = vpack.c.bf16 %v1618_v44, %v1615_v62  ;;  %v8854_v35 = vpack.c.bf16 %v1624_v41, %v1621_v17  ;;  %v1702_v45 = vsub.f32 %v1405_v23, %v1618_v44 }
 0x389   :  { %v4213_v39 = vsel %vm76_vm5, %v4212_v36, %v4211_v37  ;;  %v1696_v47 = vand.u32 4294901760, %v1695_v43  ;;  %v1709_v15 = vsub.f32 %v1406_v58, %v1621_v17  ;;  %v1716_v12 = vsub.f32 %v1407_v10, %v1624_v41  ;;  %v7976_v17 = vld [vmem:[%s9985_s1] sm:$0x3f] }
 0x38a   :  { %v4215_v38 = vsel %vm79_vm6, %v4214_v8, %v4213_v39  ;;  %7316 = vmatpush3.bf16.msra.mxu0 %v8851_v42  ;;  %v1703_v51 = vand.u32 4294901760, %v1702_v45  ;;  %v8861_v14 = vpack.c.bf16 %v1702_v45, %v1695_v43 }
 0x38b   :  { %v4217_v40 = vsel %vm82_vm7, %v4215_v38, 0.0  ;;  %7317 = vmatprep.subr.bf16.mxu0 %v10010_v46  ;;  %v1697_v5 = vsub.f32 %v1695_v43, %v1696_v47  ;;  %v1710_v49 = vand.u32 4294901760, %v1709_v15  ;;  %v1717_v33 = vand.u32 4294901760, %v1716_v12 }
 0x38c   :  { %4218 = vadd.xlane.f32.xlu1 %v4217_v40  ;;  %v1704_v21 = vsub.f32 %v1702_v45, %v1703_v51  ;;  %v8865_v48 = vpack.c.bf16 %v1716_v12, %v1709_v15  ;;  %v8867_v36 = vpack.c.bf16 %v1703_v51, %v1696_v47  ;;  %v1564_v40 = vsub.s32 2, %v8139_v32 }
 0x38d   :  { %v1698_v60 = vand.u32 4294901760, %v1697_v5  ;;  %v1711_v13 = vsub.f32 %v1709_v15, %v1710_v49  ;;  %v1718_v52 = vsub.f32 %v1716_v12, %v1717_v33  ;;  %v8869_v37 = vpack.c.bf16 %v1717_v33, %v1710_v49 }
 0x38e   :  { %7319 = vmatpush3.bf16.msra.mxu0 %v8854_v35  ;;  %v1705_v6 = vand.u32 4294901760, %v1704_v21  ;;  %v8882_v41 = vrot.slane %v7976_v17, %v1564_v40  ;;  %v8884_v43 = vrot.slane %v7976_v17, %v1576_v11 }
 0x38f   :  { %7320 = vmatprep.subr.bf16.mxu0 %v10010_v46  ;;  %v1712_v2 = vand.u32 4294901760, %v1711_v13  ;;  %v1719_v9 = vand.u32 4294901760, %v1718_v52 }
 0x390   :  { %v8859_v53 = vpack.c.bf16 %v1705_v6, %v1698_v60 }
 0x391   :  { %v8863_v1 = vpack.c.bf16 %v1719_v9, %v1712_v2 }
 0x3fe   :  { %v2837_v8 = vpop.xlane.xlu0 %2836 }
 0x3ff   :  { %v8871_v39 = vmul.f32 0.03125, %v2837_v8 }
 0x401   :  { %v1473_v38 = vpop.xlane.xlu1 %1472  ;;  %v2874_v58 = vmul.f32 %v8871_v39, %v8871_v39  ;;  %v2877_v45 = vrot.slane %v8871_v39, 1  ;;  %v2878_v47 = vrot.slane %v8871_v39, 2  ;;  %v2879_v15 = vrot.slane %v8871_v39, 3 }
 0x402   :  { %v8877_v44 = vmul.f32 0.03125, %v1473_v38  ;;  %v2880_v12 = vrot.slane %v8871_v39, 4  ;;  %v2881_v5 = vrot.slane %v8871_v39, 5  ;;  %v2882_v33 = vrot.slane %v8871_v39, 6 }
 0x403   :  { %v2883_v60 = vrot.slane %v8871_v39, 7  ;;  %v2892_v6 = vsub.f32 %v8624_v22, %v8871_v39  ;;  %v2893_v40 = vsub.f32 %v8603_v55, %v2877_v45  ;;  %v2894_v39 = vsub.f32 %v8606_v63, %v2878_v47 }
 0x404   :  { %v1510_v21 = vmul.f32 %v8877_v44, %v8877_v44  ;;  %v1513_v52 = vrot.slane %v8877_v44, 1  ;;  %v1514_v2 = vrot.slane %v8877_v44, 2  ;;  %v1515_v9 = vrot.slane %v8877_v44, 3 }
 0x405   :  { %v1516_v8 = vrot.slane %v8877_v44, 4  ;;  %v1517_v38 = vrot.slane %v8877_v44, 5  ;;  %v2897_v17 = vsub.f32 %v8627_v0, %v2881_v5  ;;  %v1528_v45 = vsub.f32 %v8651_v24, %v8877_v44 }
 0x406   :  { %v1531_v47 = vsub.f32 %v8665_v27, %v1515_v9 }
 0x408   :  { %v2872_v23 = vpop.xlane.xlu0 %2871 }
 0x409   :  { %v2873_v62 = vmul.f32 0.03125, %v2872_v23  ;;  %v1518_v23 = vrot.slane %v8877_v44, 6 }
 0x40b   :  { %v2875_v10 = vsub.f32 %v2873_v62, %v2874_v58  ;;  %v1519_v58 = vrot.slane %v8877_v44, 7  ;;  %v2895_v62 = vsub.f32 %v8609_v59, %v2879_v15  ;;  %v1532_v15 = vsub.f32 %v8668_v28, %v1516_v8 }
 0x40c   :  { %v1534_v5 = vsub.f32 %v8675_v57, %v1518_v23 }
 0x40d   :  { %v2900_v51 = vadd.f32 1e-05, %v2875_v10  ;;  %v1508_v49 = vpop.xlane.xlu1 %1507  ;;  %v2896_v10 = vsub.f32 %v8612_v18, %v2880_v12  ;;  %v1533_v12 = vsub.f32 %v8672_v56, %v1517_v38 }
 0x40e   :  { %v1509_v13 = vmul.f32 0.03125, %v1508_v49 }
 0x40f   :  { %7950 = vrsqrt.f32 %v2900_v51  ;;  %v2898_v51 = vsub.f32 %v8630_v19, %v2882_v33  ;;  %v1535_v33 = vsub.f32 %v8678_v30, %v1519_v58 }
 0x410   :  { %v1511_v11 = vsub.f32 %v1509_v13, %v1510_v21  ;;  %v1529_v21 = vsub.f32 %v8657_v26, %v1513_v52  ;;  %v1530_v13 = vsub.f32 %v8662_v3, %v1514_v2 }
 0x412   :  { %v1536_v49 = vadd.f32 1e-05, %v1511_v11  ;;  %v2899_v11 = vsub.f32 %v8633_v50, %v2883_v60 }
 0x413   :  { %v4184_v20 = vpop.xlane.xlu1 %4183 }
 0x414   :  { %v8914_v46 = vmul.f32 0.03125, %v4184_v20  ;;  %7952 = vrsqrt.f32 %v1536_v49 }
 0x416   :  { %v4221_v44 = vmul.f32 %v8914_v46, %v8914_v46  ;;  %v4224_v52 = vrot.slane %v8914_v46, 1  ;;  %v4225_v20 = vrot.slane %v8914_v46, 2  ;;  %v4226_v2 = vrot.slane %v8914_v46, 3 }
 0x417   :  { %v4227_v9 = vrot.slane %v8914_v46, 4  ;;  %v4228_v8 = vrot.slane %v8914_v46, 5  ;;  %v4229_v38 = vrot.slane %v8914_v46, 6  ;;  %v4230_v23 = vrot.slane %v8914_v46, 7 }
 0x418   :  { %v8934_v58 = vsub.f32 %v8749_v34, %v4224_v52  ;;  %v8937_v49 = vsub.f32 %v8755_v61, %v4225_v20  ;;  %v8940_v54 = vsub.f32 %v8762_v16, %v4226_v2 }
 0x419   :  { %v7951_v50 = vpop.eup %7950  ;;  %v4219_v19 = vpop.xlane.xlu1 %4218  ;;  %v8943_v0 = vsub.f32 %v8768_v7, %v4227_v9  ;;  %v8946_v18 = vsub.f32 %v8774_v25, %v4228_v8  ;;  %v8949_v59 = vsub.f32 %v8787_v31, %v4229_v38  ;;  %v8952_v52 = vsub.f32 %v8795_v4, %v4230_v23 }
 0x41a   :  { %v4220_v60 = vmul.f32 0.03125, %v4219_v19  ;;  %v2903_v20 = vrot.slane %v7951_v50, 1  ;;  %v2904_v61 = vrot.slane %v7951_v50, 2  ;;  %v2905_v34 = vrot.slane %v7951_v50, 3 }
 0x41b   :  { %v2906_v2 = vrot.slane %v7951_v50, 4  ;;  %v2907_v16 = vrot.slane %v7951_v50, 5  ;;  %v2908_v63 = vrot.slane %v7951_v50, 6  ;;  %v2909_v55 = vrot.slane %v7951_v50, 7 }
 0x41c   :  { %v4222_v22 = vsub.f32 %v4220_v60, %v4221_v44  ;;  %v2918_v9 = vmul.f32 %v7951_v50, %v2892_v6  ;;  %v2919_v7 = vmul.f32 %v2903_v20, %v2893_v40  ;;  %v2920_v30 = vmul.f32 %v2904_v61, %v2894_v39 }
 0x41d   :  { %v2921_v8 = vmul.f32 %v2905_v34, %v2895_v62  ;;  %v2922_v25 = vmul.f32 %v2906_v2, %v2896_v10  ;;  %v2923_v57 = vmul.f32 %v2907_v16, %v2897_v17  ;;  %v2924_v38 = vmul.f32 %v2908_v63, %v2898_v51 }
 0x41e   :  { %v4247_v31 = vadd.f32 1e-05, %v4222_v22  ;;  %v2925_v56 = vmul.f32 %v2909_v55, %v2899_v11  ;;  %v2926_v23 = vmul.f32 %v2918_v9, %v8882_v41  ;;  %v2927_v19 = vmul.f32 %v2919_v7, %v8882_v41  ;;  %v7953_v4 = vpop.eup %7952 }
 0x41f   :  { %v2928_v28 = vmul.f32 %v2920_v30, %v8882_v41  ;;  %v2929_v27 = vmul.f32 %v2921_v8, %v8882_v41  ;;  %v2930_v44 = vmul.f32 %v2922_v25, %v8882_v41  ;;  %v2931_v50 = vmul.f32 %v2923_v57, %v8882_v41 }
 0x420   :  { %7954 = vrsqrt.f32 %v4247_v31  ;;  %v1539_v34 = vrot.slane %v7953_v4, 1  ;;  %v1540_v61 = vrot.slane %v7953_v4, 2  ;;  %v1541_v16 = vrot.slane %v7953_v4, 3 }
 0x421   :  { %v1542_v63 = vrot.slane %v7953_v4, 4  ;;  %v1543_v22 = vrot.slane %v7953_v4, 5  ;;  %v1544_v55 = vrot.slane %v7953_v4, 6  ;;  %v1545_v6 = vrot.slane %v7953_v4, 7 }
 0x422   :  { %v1554_v40 = vmul.f32 %v7953_v4, %v1528_v45  ;;  %v1555_v39 = vmul.f32 %v1539_v34, %v1529_v21  ;;  %v1556_v7 = vmul.f32 %v1540_v61, %v1530_v13  ;;  %v1557_v62 = vmul.f32 %v1541_v16, %v1531_v47 }
 0x423   :  { %v1558_v10 = vmul.f32 %v1542_v63, %v1532_v15  ;;  %v1559_v30 = vmul.f32 %v1543_v22, %v1533_v12  ;;  %v1560_v17 = vmul.f32 %v1544_v55, %v1534_v5  ;;  %v1561_v51 = vmul.f32 %v1545_v6, %v1535_v33 }
 0x424   :  { %v1566_v25 = vmul.f32 %v8882_v41, %v1554_v40  ;;  %v1567_v57 = vmul.f32 %v8882_v41, %v1555_v39  ;;  %v1568_v31 = vmul.f32 %v8882_v41, %v1556_v7  ;;  %v1569_v11 = vmul.f32 %v8882_v41, %v1557_v62 }
 0x425   :  { %v1570_v60 = vmul.f32 %v8882_v41, %v1558_v10  ;;  %v1571_v20 = vmul.f32 %v8882_v41, %v1559_v30  ;;  %v1572_v4 = vmul.f32 %v8882_v41, %v1560_v17  ;;  %v1573_v45 = vmul.f32 %v8882_v41, %v1561_v51 }
 0x426   :  { %v1578_v21 = vadd.f32 %v8884_v43, %v1566_v25  ;;  %v1579_v13 = vadd.f32 %v8884_v43, %v1567_v57  ;;  %v1580_v47 = vadd.f32 %v8884_v43, %v1568_v31  ;;  %v1581_v15 = vadd.f32 %v8884_v43, %v1569_v11 }
 0x427   :  { %v1582_v12 = vadd.f32 %v8884_v43, %v1570_v60  ;;  %v1583_v5 = vadd.f32 %v8884_v43, %v1571_v20  ;;  %v1584_v33 = vadd.f32 %v8884_v43, %v1572_v4  ;;  %v1585_v2 = vadd.f32 %v8884_v43, %v1573_v45 }
 0x428   :  { %v1598_v9 = vrot.slane %v1579_v13, 7  ;;  %v1600_v8 = vrot.slane %v1580_v47, 6  ;;  %v1602_v34 = vrot.slane %v1581_v15, 5  ;;  %v2932_v61 = vmul.f32 %v2924_v38, %v8882_v41 }
 0x429   :  { %v1604_v16 = vrot.slane %v1582_v12, 4  ;;  %v1606_v63 = vrot.slane %v1583_v5, 3  ;;  %v1608_v22 = vrot.slane %v1584_v33, 2  ;;  %v1610_v55 = vrot.slane %v1585_v2, 1 }
 0x42a   :  { %v7955_v6 = vpop.eup %7954  ;;  %v1599_v40 = vsel %vm61_vm0, %v1598_v9, %v1578_v21  ;;  %v2933_v39 = vmul.f32 %v2925_v56, %v8882_v41  ;;  %v2934_v7 = vadd.f32 %v2926_v23, %v8884_v43  ;;  %v2935_v62 = vadd.f32 %v2927_v19, %v8884_v43 }
 0x42b   :  { %v1601_v10 = vsel %vm64_vm1, %v1600_v8, %v1599_v40  ;;  %v2936_v30 = vadd.f32 %v2928_v28, %v8884_v43  ;;  %v2937_v17 = vadd.f32 %v2929_v27, %v8884_v43  ;;  %v2938_v38 = vadd.f32 %v2930_v44, %v8884_v43 }
 0x42c   :  { %v1603_v51 = vsel %vm67_vm2, %v1602_v34, %v1601_v10  ;;  %v2939_v25 = vadd.f32 %v2931_v50, %v8884_v43  ;;  %v2940_v57 = vadd.f32 %v2932_v61, %v8884_v43  ;;  %v2941_v56 = vadd.f32 %v2933_v39, %v8884_v43 }
 0x42d   :  { %v1605_v23 = vsel %vm70_vm3, %v1604_v16, %v1603_v51  ;;  %v2950_v31 = vrot.slane %v2935_v62, 7  ;;  %v2952_v19 = vrot.slane %v2936_v30, 6  ;;  %v2954_v11 = vrot.slane %v2937_v17, 5 }
 0x42e   :  { %v1607_v60 = vsel %vm73_vm4, %v1606_v63, %v1605_v23  ;;  %v2956_v28 = vrot.slane %v2938_v38, 4  ;;  %v2958_v20 = vrot.slane %v2939_v25, 3  ;;  %v2960_v27 = vrot.slane %v2940_v57, 2 }
 0x42f   :  { %v1609_v44 = vsel %vm76_vm5, %v1608_v22, %v1607_v60  ;;  %v2951_v4 = vsel %vm61_vm0, %v2950_v31, %v2934_v7  ;;  %v2962_v45 = vrot.slane %v2941_v56, 1  ;;  %v4250_v50 = vrot.slane %v7955_v6, 1 }
 0x430   :  { %v1611_v21 = vsel %vm79_vm6, %v1610_v55, %v1609_v44  ;;  %v2953_v13 = vsel %vm64_vm1, %v2952_v19, %v2951_v4  ;;  %v4251_v47 = vrot.slane %v7955_v6, 2  ;;  %v4252_v15 = vrot.slane %v7955_v6, 3 }
 0x431   :  { %v1612_v12 = vsel %vm82_vm7, %v1611_v21, 0  ;;  %v2955_v5 = vsel %vm67_vm2, %v2954_v11, %v2953_v13  ;;  %v4253_v33 = vrot.slane %v7955_v6, 4  ;;  %v4254_v2 = vrot.slane %v7955_v6, 5 }
 0x432   :  { %v8997_v9 = vand.u32 4294901760, %v1612_v12  ;;  %v2957_v8 = vsel %vm70_vm3, %v2956_v28, %v2955_v5  ;;  %v4255_v34 = vrot.slane %v7955_v6, 6  ;;  %v4256_v61 = vrot.slane %v7955_v6, 7 }
 0x433   :  { %v2959_v16 = vsel %vm73_vm4, %v2958_v20, %v2957_v8  ;;  %v10118_v63 = vsub.f32 %v8781_v29, %v8914_v46  ;;  %v4266_v55 = vmul.f32 %v4250_v50, %v8934_v58  ;;  %v4267_v40 = vmul.f32 %v4251_v47, %v8937_v49 }
 0x434   :  { %v1684_v39 = vsub.f32 %v1612_v12, %v8997_v9  ;;  %v2961_v7 = vsel %vm76_vm5, %v2960_v27, %v2959_v16  ;;  %v4268_v62 = vmul.f32 %v4252_v15, %v8940_v54  ;;  %v4269_v10 = vmul.f32 %v4253_v33, %v8943_v0 }
 0x435   :  { %v4265_v22 = vmul.f32 %v7955_v6, %v10118_v63  ;;  %v9011_v30 = vsel %vm79_vm6, %v2962_v45, %v2961_v7  ;;  %v4270_v17 = vmul.f32 %v4254_v2, %v8946_v18  ;;  %v4271_v46 = vmul.f32 %v4255_v34, %v8949_v59  ;;  %v1408_v34 = vld [vmem:[%s9989_s6] sm:$0xff] }
 0x436   :  { %v4272_v6 = vmul.f32 %v4256_v61, %v8952_v52  ;;  %v1685_v58 = vand.u32 4294901760, %v1684_v39  ;;  %v4274_v38 = vmul.f32 %v4266_v55, %v8882_v41  ;;  %v4275_v51 = vmul.f32 %v4267_v40, %v8882_v41  ;;  %v1409_v61 = vld [vmem:[%s9989_s6 + $0x8] sm:$0xff]  ;;  %v9094_v40 = vld [vmem:[%s9989_s6 + $0x18] sm:$0xff] }
 0x437   :  { %v4273_v49 = vmul.f32 %v4265_v22, %v8882_v41  ;;  %v4276_v54 = vmul.f32 %v4268_v62, %v8882_v41  ;;  %v4277_v0 = vmul.f32 %v4269_v10, %v8882_v41  ;;  %v4278_v57 = vmul.f32 %v4270_v17, %v8882_v41 }
 0x438   :  { %v1686_v25 = vsub.f32 %v1684_v39, %v1685_v58  ;;  %v4279_v18 = vmul.f32 %v4271_v46, %v8882_v41  ;;  %v4280_v59 = vmul.f32 %v4272_v6, %v8882_v41  ;;  %v4282_v56 = vadd.f32 %v4274_v38, %v8884_v43  ;;  %v9120_v38 = vld [vmem:[%s9989_s6 + $0x28] sm:$0xff] }
 0x439   :  { %v4281_v52 = vadd.f32 %v4273_v49, %v8884_v43  ;;  %v4283_v23 = vadd.f32 %v4275_v51, %v8884_v43  ;;  %v4284_v19 = vadd.f32 %v4276_v54, %v8884_v43  ;;  %v4285_v11 = vadd.f32 %v4277_v0, %v8884_v43  ;;  %v9115_v49 = vld [vmem:[%s9989_s6 + $0x20] sm:$0xff] }
 0x43a   :  { %v1687_v31 = vand.u32 4294901760, %v1686_v25  ;;  %v4286_v60 = vadd.f32 %v4278_v57, %v8884_v43  ;;  %v4287_v28 = vadd.f32 %v4279_v18, %v8884_v43  ;;  %v4288_v20 = vadd.f32 %v4280_v59, %v8884_v43 }
 0x43b   :  { %v4297_v27 = vrot.slane %v4282_v56, 7  ;;  %v4299_v41 = vrot.slane %v4283_v23, 6  ;;  %v10119_v44 = vmov 0.0   ;;  %v4301_v45 = vrot.slane %v4284_v19, 5  ;;  %v9147_v19 = vld [vmem:[%s9989_s6 + $0x30] sm:$0xff] }
 0x43c   :  { %6315 = vmatmul.mubr.f32.vlgmr.msra.gmra.mrb[2].mxu0 %v1687_v31  ;;  %v10120_v50 = vmov 0.0|0.0   ;;  %v4303_v13 = vrot.slane %v4285_v11, 4  ;;  %v4305_v15 = vrot.slane %v4286_v60, 3  ;;  %v4307_v12 = vrot.slane %v4287_v28, 2  ;;  %v9152_v11 = vld [vmem:[%s9989_s6 + $0x38] sm:$0xff] }
 0x43d   :  { %7322 = vmatpush3.bf16.msra.mxu0 %v8859_v53  ;;  %6325 = vmatprep.mubr.msk.f32.mxu0 %vm7980_vm8, %v10119_v44  ;;  %v4298_v4 = vsel %vm61_vm0, %v4297_v27, %v4281_v52  ;;  %v4309_v33 = vrot.slane %v4288_v20, 1  ;;  %v2131_v16 = vand.u32 4294901760, %v1408_v34  ;;  %v2134_v63 = vand.u32 4294901760, %v1409_v61 }
 0x43e   :  { %7323 = vmatprep.subr.bf16.mxu0 %v10120_v50  ;;  %v4300_v21 = vsel %vm64_vm1, %v4299_v41, %v4298_v4  ;;  %v2140_v10 = vand.u32 4294901760, %v9094_v40  ;;  %v2143_v57 = vand.u32 4294901760, %v9115_v49  ;;  %v2146_v18 = vand.u32 4294901760, %v9120_v38 }
 0x43f   :  { %v4302_v47 = vsel %vm67_vm2, %v4301_v45, %v4300_v21  ;;  %v9082_v22 = vsub.f32 %v1408_v34, %v2131_v16  ;;  %v9084_v55 = vsub.f32 %v1409_v61, %v2134_v63  ;;  %v2149_v20 = vand.u32 4294901760, %v9147_v19 }
 0x440   :  { %v4304_v43 = vsel %vm70_vm3, %v4303_v13, %v4302_v47  ;;  %v9137_v23 = vsub.f32 %v9115_v49, %v2143_v57  ;;  %v9142_v31 = vsub.f32 %v9120_v38, %v2146_v18  ;;  %v2152_v27 = vand.u32 4294901760, %v9152_v11  ;;  %v1422_v38 = vld [vmem:[%s9989_s6 + $0x70] sm:$0xff] }
 0x441   :  { %7325 = vmatpush3.bf16.msra.mxu0 %v8863_v1  ;;  %v4306_v5 = vsel %vm73_vm4, %v4305_v15, %v4304_v43  ;;  %v10042_v7 = vand.u32 4294901760, %v9084_v55  ;;  %v9165_v21 = vsub.f32 %v9147_v19, %v2149_v20  ;;  %v9181_v43 = vld [vmem:[%s9989_s6 + $0x40] sm:$0xff] }
 0x442   :  { %7326 = vmatprep.subr.bf16.mxu0 %v10120_v50  ;;  %v4308_v2 = vsel %vm76_vm5, %v4307_v12, %v4306_v5  ;;  %v10039_v41 = vand.u32 4294901760, %v9137_v23  ;;  %v10036_v4 = vand.u32 4294901760, %v9142_v31  ;;  %v9170_v13 = vsub.f32 %v9152_v11, %v2152_v27  ;;  %v9186_v12 = vld [vmem:[%s9989_s6 + $0x48] sm:$0xff] }
 0x443   :  { %v9045_v8 = vsel %vm79_vm6, %v4309_v33, %v4308_v2  ;;  %v2232_v46 = vsub.f32 %v9084_v55, %v10042_v7  ;;  %v10035_v5 = vand.u32 4294901760, %v9165_v21  ;;  %v2155_v2 = vand.u32 4294901760, %v9181_v43 }
 0x444   :  { %10121 = vst [vmem:[#allocation27_spill] sm:$0xff] %v9045_v8  ;;  %6326 = vmatmul.mubr.f32.vlgmr.msra.gmra.mrb[2].mxu0 %v8997_v9  ;;  %v2253_v47 = vsub.f32 %v9137_v23, %v10039_v41  ;;  %v2260_v15 = vsub.f32 %v9142_v31, %v10036_v4  ;;  %v10034_v33 = vand.u32 4294901760, %v9170_v13  ;;  %v2158_v34 = vand.u32 4294901760, %v9186_v12 }
 0x445   :  { %7328 = vmatpush3.bf16.msra.mxu0 %v8861_v14  ;;  %6336 = vmatprep.mubr.msk.f32.mxu0 %vm7980_vm8, %v10119_v44  ;;  %v2233_v54 = vand.u32 4294901760, %v2232_v46  ;;  %v9263_v41 = vpack.c.bf16 %v2146_v18, %v2143_v57  ;;  %v1423_v57 = vld [vmem:[%s9989_s6 + $0x78] sm:$0xff]  ;;  %v9288_v18 = vpack.c.bf16 %v2152_v27, %v2149_v20  ;;  %v9298_v11 = vpack.c.bf16 %v9084_v55, %v9082_v22 }
 0x446   :  { %7329 = vmatprep.subr.bf16.mxu0 %v10120_v50  ;;  %v2254_v61 = vand.u32 4294901760, %v2253_v47  ;;  %v2274_v46 = vsub.f32 %v9170_v13, %v10034_v33  ;;  %v2176_v19 = vand.u32 4294901760, %v1423_v57 }
 0x449   :  { %7331 = vmatpush3.bf16.msra.mxu0 %v8865_v48 }
 0x44a   :  { %7332 = vmatprep.subr.bf16.mxu0 %v10120_v50 }
 0x44c   :  { %6337 = vmatmul.mubr.f32.vlgmr.msra.gmra.mrb[2].mxu0 %v1684_v39  ;;  %v10049_v39 = vand.u32 4294901760, %v9082_v22 }
 0x44d   :  { %7334 = vmatpush3.bf16.msra.mxu0 %v8851_v42  ;;  %6347 = vmatprep.mubr.msk.f32.mxu0 %vm7980_vm8, %v10119_v44 }
 0x44e   :  { %7335 = vmatprep.subr.bf16.mxu0 %v10120_v50  ;;  %v2225_v17 = vsub.f32 %v9082_v22, %v10049_v39 }
 0x450   :  { %v2226_v51 = vand.u32 4294901760, %v2225_v17  ;;  %v2267_v17 = vsub.f32 %v9165_v21, %v10035_v5 }
 0x451   :  { %7337 = vmatpush3.bf16.msra.mxu0 %v8854_v35 }
 0x452   :  { %7338 = vmatprep.subr.bf16.mxu0 %v10120_v50  ;;  %v9126_v59 = vpack.c.bf16 %v2233_v54, %v2226_v51  ;;  %v9205_v51 = vsub.f32 %v9181_v43, %v2155_v2 }
 0x454   :  { %6348 = vmatmul.mubr.f32.vlgmr.msra.gmra.mrb[2].mxu0 %v1685_v58  ;;  %v9110_v58 = vsub.f32 %v9094_v40, %v2140_v10  ;;  %10122 = vst [vmem:[#allocation28_spill] sm:$0xff] %v9126_v59  ;;  %v9194_v40 = vpack.c.bf16 %v2134_v63, %v2131_v16  ;;  %v9212_v16 = vsub.f32 %v9186_v12, %v2158_v34  ;;  %v9217_v63 = vld [vmem:[%s9989_s6 + $0x50] sm:$0xff] }
 0x455   :  { %7340 = vmatpush3.bf16.msra.mxu0 %v8867_v36  ;;  %6358 = vmatprep.mubr.msk.f32.mxu0 %vm7980_vm8, %v10119_v44  ;;  %v2161_v47 = vand.u32 4294901760, %v9217_v63 }
 0x456   :  { %7341 = vmatprep.subr.bf16.mxu0 %v10120_v50  ;;  %v10040_v25 = vand.u32 4294901760, %v9110_v58  ;;  %7352 = vmatpush3.bf16.msra.mxu1 %v9194_v40 }
 0x457   :  { %7353 = vmatprep.subr.bf16.mxu1 %v10120_v50 }
 0x458   :  { %v2246_v56 = vsub.f32 %v9110_v58, %v10040_v25 }
 0x459   :  { %7343 = vmatpush3.bf16.msra.mxu0 %v8869_v37 }
 0x45a   :  { %7344 = vmatprep.subr.bf16.mxu0 %v10120_v50  ;;  %v2247_v28 = vand.u32 4294901760, %v2246_v56  ;;  %v2268_v56 = vand.u32 4294901760, %v2267_v17 }
 0x45c   :  { %6359 = vmatmul.mubr.f32.vlgmr.msra.gmra.mrb[2].mxu0 %v8997_v9 }
 0x45d   :  { %7346 = vmatpush3.bf16.msra.mxu0 %v8851_v42  ;;  %6369 = vmatprep.mubr.msk.f32.mxu0 %vm7980_vm8, %v10119_v44 }
 0x45e   :  { %7347 = vmatprep.subr.bf16.mxu0 %v10120_v50 }
 0x461   :  { %7349 = vmatpush3.bf16.msra.mxu0 %v8854_v35 }
 0x462   :  { %7374 = vmatprep.subr.bf16.mxu0 %v10120_v50 }
 0x464   :  { %6370 = vmatmul.mubr.f32.vlgmr.msra.gmra.mrb[2].mxu0 %v8997_v9  ;;  %v9089_v9 = vld [vmem:[%s9989_s6 + $0x10] sm:$0xff] }
 0x465   :  { %6439 = vmatprep.mubr.msk.f32.mxu0 %vm7980_vm8, %v10119_v44  ;;  %v2137_v62 = vand.u32 4294901760, %v9089_v9  ;;  %7376 = vmatpush3.bf16.msra.mxu0 %v9126_v59 }
 0x466   :  { %7377 = vmatprep.subr.bf16.mxu0 %v10120_v50 }
 0x467   :  { %v9107_v6 = vsub.f32 %v9089_v9, %v2137_v62  ;;  %v2261_v9 = vand.u32 4294901760, %v2260_v15  ;;  %v10038_v15 = vand.u32 4294901760, %v9212_v16 }
 0x469   :  { %v10041_v0 = vand.u32 4294901760, %v9107_v6  ;;  %v9207_v54 = vpack.c.bf16 %v2261_v9, %v2254_v61  ;;  %v9231_v9 = vpack.c.bf16 %v2140_v10, %v2137_v62  ;;  %v2288_v5 = vsub.f32 %v9212_v16, %v10038_v15  ;;  %v1420_v62 = vld [vmem:[%s9989_s6 + $0x60] sm:$0xff]  ;;  %v1421_v10 = vld [vmem:[%s9989_s6 + $0x68] sm:$0xff] }
 0x46a   :  { %v9302_v20 = vpack.c.bf16 %v9110_v58, %v9107_v6 }
 0x46b   :  { %v2239_v52 = vsub.f32 %v9107_v6, %v10041_v0  ;;  %10124 = vst [vmem:[#allocation30_spill] sm:$0xff] %v9207_v54  ;;  %7355 = vmatpush3.bf16.msra.mxu1 %v9231_v9 }
 0x46c   :  { %7356 = vmatprep.subr.bf16.mxu1 %v10120_v50 }
 0x46d   :  { %v2240_v60 = vand.u32 4294901760, %v2239_v52  ;;  %v9222_v52 = vld [vmem:[%s9989_s6 + $0x58] sm:$0xff] }
 0x46e   :  { %v2164_v61 = vand.u32 4294901760, %v9222_v52 }
 0x46f   :  { %v9160_v45 = vpack.c.bf16 %v2247_v28, %v2240_v60  ;;  %v2275_v60 = vand.u32 4294901760, %v2274_v46  ;;  %v10037_v28 = vand.u32 4294901760, %v9205_v51  ;;  %v9240_v46 = vsub.f32 %v9217_v63, %v2161_v47  ;;  %7358 = vmatpush3.bf16.msra.mxu1 %v9263_v41 }
 0x470   :  { %v9246_v4 = vsub.f32 %v9222_v52, %v2164_v61  ;;  %v2289_v52 = vand.u32 4294901760, %v2288_v5  ;;  %7359 = vmatprep.subr.bf16.mxu1 %v10120_v50 }
 0x471   :  { %10123 = vst [vmem:[#allocation29_spill] sm:$0xff] %v9160_v45  ;;  %7379 = vmatpush3.bf16.msra.mxu0 %v9160_v45  ;;  %v9234_v33 = vpack.c.bf16 %v2275_v60, %v2268_v56  ;;  %v2281_v17 = vsub.f32 %v9205_v51, %v10037_v28  ;;  %v10044_v63 = vand.u32 4294901760, %v9240_v46  ;;  %v2167_v60 = vand.u32 4294901760, %v1420_v62 }
 0x472   :  { %7380 = vmatprep.subr.bf16.mxu0 %v10120_v50  ;;  %v2170_v28 = vand.u32 4294901760, %v1421_v10  ;;  %v10043_v15 = vand.u32 4294901760, %v9246_v4 }
 0x473   :  { %10125 = vst [vmem:[#allocation31_spill] sm:$0xff] %v9234_v33  ;;  %v2282_v56 = vand.u32 4294901760, %v2281_v17  ;;  %v2295_v17 = vsub.f32 %v9240_v46, %v10044_v63  ;;  %v9269_v25 = vsub.f32 %v1420_v62, %v2167_v60  ;;  %7361 = vmatpush3.bf16.msra.mxu1 %v9288_v18 }
 0x474   :  { %v9271_v0 = vsub.f32 %v1421_v10, %v2170_v28  ;;  %v2302_v49 = vsub.f32 %v9246_v4, %v10043_v15  ;;  %v9316_v15 = vpack.c.bf16 %v2158_v34, %v2155_v2  ;;  %7362 = vmatprep.subr.bf16.mxu1 %v10120_v50  ;;  %v9330_v34 = vpack.c.bf16 %v2164_v61, %v2161_v47 }
 0x475   :  { %7382 = vmatpush3.bf16.msra.mxu0 %v9207_v54  ;;  %v9273_v7 = vpack.c.bf16 %v2289_v52, %v2282_v56  ;;  %v2296_v5 = vand.u32 4294901760, %v2295_v17  ;;  %v10045_v10 = vand.u32 4294901760, %v9269_v25  ;;  %v2173_v52 = vand.u32 4294901760, %v1422_v38 }
 0x476   :  { %7383 = vmatprep.subr.bf16.mxu0 %v10120_v50  ;;  %v2303_v62 = vand.u32 4294901760, %v2302_v49  ;;  %v10048_v56 = vand.u32 4294901760, %v9271_v0 }
 0x477   :  { %10126 = vst [vmem:[#allocation32_spill] sm:$0xff] %v9273_v7  ;;  %v2309_v17 = vsub.f32 %v9269_v25, %v10045_v10  ;;  %v9319_v63 = vsub.f32 %v1422_v38, %v2173_v52  ;;  %7364 = vmatpush3.bf16.msra.mxu1 %v9316_v15 }
 0x478   :  { %v9304_v27 = vpack.c.bf16 %v2303_v62, %v2296_v5  ;;  %v2316_v49 = vsub.f32 %v9271_v0, %v10048_v56  ;;  %v9321_v5 = vsub.f32 %v1423_v57, %v2176_v19  ;;  %7365 = vmatprep.subr.bf16.mxu1 %v10120_v50 }
 0x479   :  { %7385 = vmatpush3.bf16.msra.mxu0 %v9234_v33  ;;  %10128 = vst [vmem:[#allocation34_spill] sm:$0xff] %v9319_v63  ;;  %v2310_v62 = vand.u32 4294901760, %v2309_v17  ;;  %v10047_v43 = vand.u32 4294901760, %v9319_v63  ;;  %v9341_v17 = vpack.c.bf16 %v9142_v31, %v9137_v23 }
 0x47a   :  { %7386 = vmatprep.subr.bf16.mxu0 %v10120_v50  ;;  %10127 = vst [vmem:[#allocation33_spill] sm:$0xff] %v9304_v27  ;;  %10129 = vst [vmem:[#allocation35_spill] sm:$0xff] %v9321_v5  ;;  %v2317_v10 = vand.u32 4294901760, %v2316_v49  ;;  %v10046_v12 = vand.u32 4294901760, %v9321_v5  ;;  %v9350_v49 = vpack.c.bf16 %v2170_v28, %v2167_v60  ;;  %v9368_v28 = vpack.c.bf16 %v9246_v4, %v9240_v46 }
 0x47b   :  { %v2323_v38 = vsub.f32 %v9319_v63, %v10047_v43  ;;  %7367 = vmatpush3.bf16.msra.mxu1 %v9330_v34  ;;  %v9374_v60 = vpack.c.bf16 %v9271_v0, %v9269_v25 }
 0x47c   :  { %v9328_v2 = vpack.c.bf16 %v2317_v10, %v2310_v62  ;;  %v2330_v57 = vsub.f32 %v9321_v5, %v10046_v12  ;;  %v9348_v10 = vpack.c.bf16 %v9170_v13, %v9165_v21  ;;  %7368 = vmatprep.subr.bf16.mxu1 %v10120_v50  ;;  %v9358_v12 = vpack.c.bf16 %v2176_v19, %v2173_v52  ;;  %v7977_v19 = vld [vmem:[%s9987_s2] sm:$0x3] }
 0x47d   :  { %7388 = vmatpush3.bf16.msra.mxu0 %v9273_v7  ;;  %v2324_v47 = vand.u32 4294901760, %v2323_v38  ;;  %v9363_v38 = vpack.c.bf16 %v9212_v16, %v9205_v51  ;;  %v9378_v52 = vpack.c.bf16 %v9321_v5, %v9319_v63 }
 0x47e   :  { %7389 = vmatprep.subr.bf16.mxu0 %v10120_v50  ;;  %10130 = vst [vmem:[#allocation36_spill] sm:$0xff] %v9328_v2  ;;  %v2331_v61 = vand.u32 4294901760, %v2330_v57  ;;  %v10132_v57 = vsub.s32 1, %v8139_v32 }
 0x47f   :  { %7370 = vmatpush3.bf16.msra.mxu1 %v9350_v49 }
 0x480   :  { %v9353_v62 = vpack.c.bf16 %v2331_v61, %v2324_v47  ;;  %7371 = vmatprep.subr.bf16.mxu1 %v10120_v50  ;;  %v9385_v47 = vrot.slane %v7977_v19, %v10132_v57 }
 0x481   :  { %7391 = vmatpush3.bf16.msra.mxu0 %v9304_v27 }
 0x482   :  { %7392 = vmatprep.subr.bf16.mxu0 %v10120_v50  ;;  %10131 = vst [vmem:[#allocation37_spill] sm:$0xff] %v9353_v62  ;;  %10133 = vst [vmem:[#allocation38_spill] sm:$0xff] %v9385_v47 }
 0x483   :  { %7373 = vmatpush3.bf16.msra.mxu1 %v9358_v12 }
 0x484   :  { %7494 = vmatprep.subr.bf16.mxu1 %v10120_v50 }
 0x485   :  { %7394 = vmatpush3.bf16.msra.mxu0 %v9328_v2 }
 0x486   :  { %7395 = vmatprep.subr.bf16.mxu0 %v10120_v50 }
 0x489   :  { %7397 = vmatpush3.bf16.msra.mxu0 %v9353_v62 }
 0x48a   :  { %7398 = vmatprep.subr.bf16.mxu0 %v10120_v50 }
 0x537   :  { %v2095_v61 = vpop.f32.mrb[2].mxu0 }
 0x538   :  { %v7857_v43 = vadd.f32 %v2095_v61, %v9385_v47  ;;  %v6371_v56 = vpop.f32.mrb[3].mxu0 }
 0x53a   :  { %v2100_v39 = vmul.f32 0.70710677, %v7857_v43  ;;  %v2099_v63 = vmul.f32 0.5, %v7857_v43  ;;  %v10137_v43 = vand.u32 4294901760, %v9107_v6 }
 0x53c   :  { %v2103_v29 = vand.u32 2147483647, %v2100_v39  ;;  %vm2101_vm10 = vcmp.lt.f32.partialorder %v2100_v39, 0.0 }
 0x53e   :  { %v2104_v62 = vmul.f32 0.3275911, %v2103_v29  ;;  %v2117_v27 = vsub.f32 0.0, %v2103_v29 }
 0x540   :  { %v2105_v2 = vadd.f32 1.0, %v2104_v62  ;;  %v2118_v3 = vmul.f32 %v2117_v27, %v2103_v29  ;;  %v10134_v62 = vmov 1.0   ;;  %v10136_v27 = vand.u32 4294901760, %v9084_v55 }
 0x541   :  { %v10139_v55 = vand.u32 4294901760, %v9137_v23  ;;  %v10143_v23 = vand.u32 4294901760, %v9205_v51  ;;  %v10147_v51 = vand.u32 4294901760, %v9269_v25 }
 0x542   :  { %7956 = vrcp.f32 %v2105_v2  ;;  %v2119_v33 = vmul.f32 1.442695, %v2118_v3  ;;  %v2102_v2 = vsel %vm2101_vm10, -1.0, %v10134_v62 }
 0x544   :  { %7958 = vpow2.f32 %v2119_v33 }
 0x54c   :  { %v7957_v7 = vpop.eup %7956 }
 0x54d   :  { %v2108_v26 = vmul.f32 1.0614054, %v7957_v7 }
 0x54e   :  { %v7959_v56 = vpop.eup %7958 }
 0x54f   :  { %v2109_v24 = vadd.f32 -1.4531521, %v2108_v26  ;;  %v2964_v26 = vsel %vm82_vm7, %v9011_v30, 0 }
 0x551   :  { %v2110_v54 = vmul.f32 %v7957_v7, %v2109_v24 }
 0x553   :  { %v2111_v45 = vadd.f32 1.4214138, %v2110_v54 }
 0x555   :  { %v2112_v19 = vmul.f32 %v7957_v7, %v2111_v45  ;;  %v9393_v45 = vand.u32 4294901760, %v2964_v26 }
 0x557   :  { %v2113_v57 = vadd.f32 -0.28449672, %v2112_v19  ;;  %v3036_v30 = vsub.f32 %v2964_v26, %v9393_v45  ;;  %v10140_v19 = vand.u32 4294901760, %v9142_v31  ;;  %v10144_v31 = vand.u32 4294901760, %v9212_v16  ;;  %v10151_v26 = vld [vmem:[#allocation35_spill] sm:$0xff] }
 0x558   :  { %v10148_v16 = vand.u32 4294901760, %v9271_v0  ;;  %v10153_v0 = vld [vmem:[#allocation27_spill] sm:$0xff] }
 0x559   :  { %v2114_v32 = vmul.f32 %v7957_v7, %v2113_v57  ;;  %v9511_v6 = vpack.c.bf16 %v10140_v19, %v10139_v55  ;;  %v10142_v57 = vand.u32 4294901760, %v9170_v13  ;;  %v10146_v13 = vand.u32 4294901760, %v9246_v4  ;;  %v10149_v4 = vld [vmem:[#allocation34_spill] sm:$0xff] }
 0x55a   :  { %v4311_v25 = vsel %vm82_vm7, %v10153_v0, 0 }
 0x55b   :  { %v2115_v59 = vadd.f32 0.2548296, %v2114_v32 }
 0x55d   :  { %v2116_v61 = vmul.f32 %v7957_v7, %v2115_v59  ;;  %v3037_v59 = vand.u32 4294901760, %v3036_v30 }
 0x55f   :  { %v2121_v47 = vmul.f32 %v7959_v56, %v2116_v61  ;;  %v3038_v33 = vsub.f32 %v3036_v30, %v3037_v59  ;;  %v9531_v56 = vpack.c.bf16 %v10144_v31, %v10143_v23 }
 0x561   :  { %v2122_v8 = vsub.f32 1.0, %v2121_v47  ;;  %v3039_v54 = vand.u32 4294901760, %v3038_v33  ;;  %v10138_v47 = vand.u32 4294901760, %v9110_v58  ;;  %v10141_v58 = vand.u32 4294901760, %v9165_v21 }
 0x562   :  { %v10145_v21 = vand.u32 4294901760, %v9240_v46  ;;  %v10150_v46 = vand.u32 4294901760, %v10149_v4 }
 0x563   :  { %v2123_v5 = vmul.f32 %v2122_v8, %v2102_v2  ;;  %v9521_v61 = vpack.c.bf16 %v10142_v57, %v10141_v58 }
 0x564   :  { %v9541_v2 = vpack.c.bf16 %v10146_v13, %v10145_v21 }
 0x565   :  { %v2124_v29 = vadd.f32 1.0, %v2123_v5 }
 0x567   :  { %v2125_v24 = vmul.f32 %v2124_v29, %v2099_v63  ;;  %v10135_v63 = vand.u32 4294901760, %v9082_v22  ;;  %v9499_v22 = vpack.c.bf16 %v10138_v47, %v10137_v43  ;;  %v9551_v29 = vpack.c.bf16 %v10148_v16, %v10147_v51 }
 0x569   :  { %v9391_v3 = vand.u32 4294901760, %v2125_v24  ;;  %v9487_v5 = vpack.c.bf16 %v10136_v27, %v10135_v63 }
 0x56b   :  { %v9396_v32 = vsub.f32 %v2125_v24, %v9391_v3  ;;  %6440 = vmatmul.mubr.f32.vlgmr.msra.gmra.mrb[4].mxu0 %v9391_v3  ;;  %v10152_v24 = vand.u32 4294901760, %v10151_v26 }
 0x56c   :  { %7400 = vmatpush3.bf16.msra.mxu0 %v9298_v11  ;;  %6474 = vmatprep.mubr.msk.f32.mxu0 %vm7980_vm8, %v10119_v44 }
 0x56d   :  { %7401 = vmatprep.subr.bf16.mxu0 %v10120_v50  ;;  %v2213_v8 = vand.u32 4294901760, %v9396_v32 }
 0x56f   :  { %v2214_v39 = vsub.f32 %v9396_v32, %v2213_v8 }
 0x570   :  { %7403 = vmatpush3.bf16.msra.mxu0 %v9302_v20 }
 0x571   :  { %7404 = vmatprep.subr.bf16.mxu0 %v10120_v50  ;;  %v2215_v7 = vand.u32 4294901760, %v2214_v39 }
 0x573   :  { %6405 = vmatmul.mubr.f32.vlgmr.msra.gmra.mrb[4].mxu1 %v2215_v7 }
 0x574   :  { %7406 = vmatpush3.bf16.msra.mxu0 %v9341_v17  ;;  %7496 = vmatpush3.bf16.msra.mxu1 %v8851_v42 }
 0x575   :  { %7407 = vmatprep.subr.bf16.mxu0 %v10120_v50  ;;  %7497 = vmatprep.subr.bf16.mxu1 %v10120_v50 }
 0x576   :  { %6590 = vmatprep.mubr.msk.f32.mxu1 %vm7980_vm8, %v10119_v44 }
 0x578   :  { %7409 = vmatpush3.bf16.msra.mxu0 %v9348_v10  ;;  %7499 = vmatpush3.bf16.msra.mxu1 %v8854_v35 }
 0x579   :  { %7410 = vmatprep.subr.bf16.mxu0 %v10120_v50  ;;  %7500 = vmatprep.subr.bf16.mxu1 %v10120_v50 }
 0x57b   :  { %6591 = vmatmul.mubr.f32.vlgmr.msra.gmra.mrb[6].mxu1 %v3039_v54 }
 0x57c   :  { %7412 = vmatpush3.bf16.msra.mxu0 %v9363_v38  ;;  %7502 = vmatpush3.bf16.msra.mxu1 %v8859_v53 }
 0x57d   :  { %7413 = vmatprep.subr.bf16.mxu0 %v10120_v50  ;;  %7503 = vmatprep.subr.bf16.mxu1 %v10120_v50 }
 0x57e   :  { %6601 = vmatprep.mubr.msk.f32.mxu1 %vm7980_vm8, %v10119_v44 }
 0x580   :  { %7415 = vmatpush3.bf16.msra.mxu0 %v9368_v28  ;;  %7505 = vmatpush3.bf16.msra.mxu1 %v8863_v1 }
 0x581   :  { %7416 = vmatprep.subr.bf16.mxu0 %v10120_v50  ;;  %7506 = vmatprep.subr.bf16.mxu1 %v10120_v50 }
 0x583   :  { %6602 = vmatmul.mubr.f32.vlgmr.msra.gmra.mrb[6].mxu1 %v9393_v45 }
 0x584   :  { %7418 = vmatpush3.bf16.msra.mxu0 %v9374_v60  ;;  %7508 = vmatpush3.bf16.msra.mxu1 %v8861_v14 }
 0x585   :  { %7419 = vmatprep.subr.bf16.mxu0 %v10120_v50  ;;  %7509 = vmatprep.subr.bf16.mxu1 %v10120_v50 }
 0x586   :  { %6612 = vmatprep.mubr.msk.f32.mxu1 %vm7980_vm8, %v10119_v44 }
 0x588   :  { %7421 = vmatpush3.bf16.msra.mxu0 %v9378_v52  ;;  %7511 = vmatpush3.bf16.msra.mxu1 %v8865_v48 }
 0x589   :  { %7422 = vmatprep.subr.bf16.mxu0 %v10120_v50  ;;  %7512 = vmatprep.subr.bf16.mxu1 %v10120_v50 }
 0x58b   :  { %6475 = vmatmul.mubr.f32.vlgmr.msra.gmra.mrb[4].mxu0 %v9396_v32  ;;  %6613 = vmatmul.mubr.f32.vlgmr.msra.gmra.mrb[6].mxu1 %v3036_v30  ;;  %v4382_v32 = vand.u32 4294901760, %v4311_v25 }
 0x58c   :  { %7424 = vmatpush3.bf16.msra.mxu0 %v9194_v40  ;;  %7514 = vmatpush3.bf16.msra.mxu1 %v8851_v42 }
 0x58d   :  { %7425 = vmatprep.subr.bf16.mxu0 %v10120_v50  ;;  %7515 = vmatprep.subr.bf16.mxu1 %v10120_v50 }
 0x58e   :  { %6623 = vmatprep.mubr.msk.f32.mxu1 %vm7980_vm8, %v10119_v44  ;;  %6509 = vmatprep.mubr.msk.f32.mxu0 %vm7980_vm8, %v10119_v44 }
 0x590   :  { %7427 = vmatpush3.bf16.msra.mxu0 %v9231_v9  ;;  %7517 = vmatpush3.bf16.msra.mxu1 %v8854_v35 }
 0x591   :  { %7428 = vmatprep.subr.bf16.mxu0 %v10120_v50  ;;  %7518 = vmatprep.subr.bf16.mxu1 %v10120_v50 }
 0x593   :  { %6624 = vmatmul.mubr.f32.vlgmr.msra.gmra.mrb[6].mxu1 %v3037_v59 }
 0x594   :  { %7430 = vmatpush3.bf16.msra.mxu0 %v9263_v41  ;;  %7520 = vmatpush3.bf16.msra.mxu1 %v8867_v36 }
 0x595   :  { %7431 = vmatprep.subr.bf16.mxu0 %v10120_v50  ;;  %7521 = vmatprep.subr.bf16.mxu1 %v10120_v50 }
 0x596   :  { %6634 = vmatprep.mubr.msk.f32.mxu1 %vm7980_vm8, %v10119_v44 }
 0x598   :  { %7433 = vmatpush3.bf16.msra.mxu0 %v9288_v18  ;;  %7523 = vmatpush3.bf16.msra.mxu1 %v8869_v37 }
 0x599   :  { %7434 = vmatprep.subr.bf16.mxu0 %v10120_v50  ;;  %7524 = vmatprep.subr.bf16.mxu1 %v10120_v50 }
 0x59b   :  { %6635 = vmatmul.mubr.f32.vlgmr.msra.gmra.mrb[6].mxu1 %v9393_v45 }
 0x59c   :  { %7436 = vmatpush3.bf16.msra.mxu0 %v9316_v15  ;;  %7526 = vmatpush3.bf16.msra.mxu1 %v8851_v42 }
 0x59d   :  { %7437 = vmatprep.subr.bf16.mxu0 %v10120_v50  ;;  %7527 = vmatprep.subr.bf16.mxu1 %v10120_v50 }
 0x59e   :  { %6645 = vmatprep.mubr.msk.f32.mxu1 %vm7980_vm8, %v10119_v44 }
 0x5a0   :  { %7439 = vmatpush3.bf16.msra.mxu0 %v9330_v34  ;;  %7529 = vmatpush3.bf16.msra.mxu1 %v8854_v35 }
 0x5a1   :  { %7440 = vmatprep.subr.bf16.mxu0 %v10120_v50  ;;  %7530 = vmatprep.subr.bf16.mxu1 %v10120_v50 }
 0x5a3   :  { %6646 = vmatmul.mubr.f32.vlgmr.msra.gmra.mrb[6].mxu1 %v9393_v45  ;;  %v9561_v45 = vpack.c.bf16 %v10152_v24, %v10150_v46 }
 0x5a4   :  { %7442 = vmatpush3.bf16.msra.mxu0 %v9350_v49  ;;  %7532 = vmatpush3.bf16.msra.mxu1 %v9194_v40 }
 0x5a5   :  { %7443 = vmatprep.subr.bf16.mxu0 %v10120_v50  ;;  %7533 = vmatprep.subr.bf16.mxu1 %v10120_v50 }
 0x5a6   :  { %6680 = vmatprep.mubr.msk.f32.mxu1 %vm7980_vm8, %v10119_v44 }
 0x5a8   :  { %7445 = vmatpush3.bf16.msra.mxu0 %v9358_v12  ;;  %7535 = vmatpush3.bf16.msra.mxu1 %v9231_v9 }
 0x5a9   :  { %7446 = vmatprep.subr.bf16.mxu0 %v10120_v50  ;;  %7536 = vmatprep.subr.bf16.mxu1 %v10120_v50 }
 0x5ab   :  { %6510 = vmatmul.mubr.f32.vlgmr.msra.gmra.mrb[4].mxu0 %v2213_v8  ;;  %v4383_v8 = vsub.f32 %v4311_v25, %v4382_v32 }
 0x5ac   :  { %7448 = vmatpush3.bf16.msra.mxu0 %v9487_v5  ;;  %6544 = vmatprep.mubr.msk.f32.mxu0 %vm7980_vm8, %v10119_v44 }
 0x5ad   :  { %7449 = vmatprep.subr.bf16.mxu0 %v10120_v50  ;;  %7538 = vmatpush3.bf16.msra.mxu1 %v9263_v41  ;;  %v4384_v30 = vand.u32 4294901760, %v4383_v8 }
 0x5ae   :  { %7539 = vmatprep.subr.bf16.mxu1 %v10120_v50 }
 0x5af   :  { %v4385_v39 = vsub.f32 %v4383_v8, %v4384_v30 }
 0x5b0   :  { %7451 = vmatpush3.bf16.msra.mxu0 %v9499_v22 }
 0x5b1   :  { %7452 = vmatprep.subr.bf16.mxu0 %v10120_v50  ;;  %7541 = vmatpush3.bf16.msra.mxu1 %v9288_v18  ;;  %v4386_v7 = vand.u32 4294901760, %v4385_v39 }
 0x5b2   :  { %7542 = vmatprep.subr.bf16.mxu1 %v10120_v50 }
 0x5b4   :  { %7454 = vmatpush3.bf16.msra.mxu0 %v9511_v6 }
 0x5b5   :  { %7455 = vmatprep.subr.bf16.mxu0 %v10120_v50  ;;  %7544 = vmatpush3.bf16.msra.mxu1 %v9316_v15 }
 0x5b6   :  { %7545 = vmatprep.subr.bf16.mxu1 %v10120_v50 }
 0x5b8   :  { %7457 = vmatpush3.bf16.msra.mxu0 %v9521_v61 }
 0x5b9   :  { %7458 = vmatprep.subr.bf16.mxu0 %v10120_v50  ;;  %7547 = vmatpush3.bf16.msra.mxu1 %v9330_v34 }
 0x5ba   :  { %7548 = vmatprep.subr.bf16.mxu1 %v10120_v50 }
 0x5bc   :  { %7460 = vmatpush3.bf16.msra.mxu0 %v9531_v56 }
 0x5bd   :  { %7461 = vmatprep.subr.bf16.mxu0 %v10120_v50  ;;  %7550 = vmatpush3.bf16.msra.mxu1 %v9350_v49 }
 0x5be   :  { %7551 = vmatprep.subr.bf16.mxu1 %v10120_v50 }
 0x5c0   :  { %7463 = vmatpush3.bf16.msra.mxu0 %v9541_v2 }
 0x5c1   :  { %7464 = vmatprep.subr.bf16.mxu0 %v10120_v50  ;;  %7553 = vmatpush3.bf16.msra.mxu1 %v9358_v12 }
 0x5c2   :  { %7554 = vmatprep.subr.bf16.mxu1 %v10120_v50 }
 0x5c4   :  { %7466 = vmatpush3.bf16.msra.mxu0 %v9551_v29 }
 0x5c5   :  { %7467 = vmatprep.subr.bf16.mxu0 %v10120_v50 }
 0x5c8   :  { %7469 = vmatpush3.bf16.msra.mxu0 %v9561_v45 }
 0x5c9   :  { %7470 = vmatprep.subr.bf16.mxu0 %v10120_v50 }
 0x5cb   :  { %6545 = vmatmul.mubr.f32.vlgmr.msra.gmra.mrb[4].mxu0 %v9391_v3 }
 0x5cc   :  { %7472 = vmatpush3.bf16.msra.mxu0 %v9194_v40  ;;  %6579 = vmatprep.mubr.msk.f32.mxu0 %vm7980_vm8, %v10119_v44 }
 0x5cd   :  { %7473 = vmatprep.subr.bf16.mxu0 %v10120_v50 }
 0x5d0   :  { %7475 = vmatpush3.bf16.msra.mxu0 %v9231_v9 }
 0x5d1   :  { %7476 = vmatprep.subr.bf16.mxu0 %v10120_v50 }
 0x5d4   :  { %7478 = vmatpush3.bf16.msra.mxu0 %v9263_v41 }
 0x5d5   :  { %7479 = vmatprep.subr.bf16.mxu0 %v10120_v50 }
 0x5d8   :  { %7481 = vmatpush3.bf16.msra.mxu0 %v9288_v18 }
 0x5d9   :  { %7482 = vmatprep.subr.bf16.mxu0 %v10120_v50 }
 0x5dc   :  { %7484 = vmatpush3.bf16.msra.mxu0 %v9316_v15 }
 0x5dd   :  { %7485 = vmatprep.subr.bf16.mxu0 %v10120_v50 }
 0x5e0   :  { %7487 = vmatpush3.bf16.msra.mxu0 %v9330_v34 }
 0x5e1   :  { %7488 = vmatprep.subr.bf16.mxu0 %v10120_v50 }
 0x5e4   :  { %7490 = vmatpush3.bf16.msra.mxu0 %v9350_v49 }
 0x5e5   :  { %7491 = vmatprep.subr.bf16.mxu0 %v10120_v50 }
 0x5e8   :  { %7493 = vmatpush3.bf16.msra.mxu0 %v9358_v12 }
 0x5e9   :  { %7674 = vmatprep.subr.bf16.mxu0 %v10120_v50 }
 0x5eb   :  { %6580 = vmatmul.mubr.f32.vlgmr.msra.gmra.mrb[4].mxu0 %v9391_v3 }
 0x5ec   :  { %7676 = vmatpush3.bf16.msra.mxu0 %v8851_v42  ;;  %6866 = vmatprep.mubr.msk.f32.mxu0 %vm7980_vm8, %v10119_v44 }
 0x5ed   :  { %7677 = vmatprep.subr.bf16.mxu0 %v10120_v50 }
 0x5f0   :  { %7679 = vmatpush3.bf16.msra.mxu0 %v8854_v35 }
 0x5f1   :  { %7680 = vmatprep.subr.bf16.mxu0 %v10120_v50 }
 0x5f3   :  { %6867 = vmatmul.mubr.f32.vlgmr.msra.gmra.mrb[6].mxu0 %v4386_v7  ;;  %v10155_v7 = vld [vmem:[#allocation28_spill] sm:$0xff] }
 0x5f4   :  { %7682 = vmatpush3.bf16.msra.mxu0 %v8859_v53  ;;  %6877 = vmatprep.mubr.msk.f32.mxu0 %vm7980_vm8, %v10119_v44 }
 0x5f5   :  { %7683 = vmatprep.subr.bf16.mxu0 %v10120_v50 }
 0x5f8   :  { %7685 = vmatpush3.bf16.msra.mxu0 %v8863_v1 }
 0x5f9   :  { %7686 = vmatprep.subr.bf16.mxu0 %v10120_v50 }
 0x5fb   :  { %6878 = vmatmul.mubr.f32.vlgmr.msra.gmra.mrb[6].mxu0 %v4382_v32 }
 0x5fc   :  { %7688 = vmatpush3.bf16.msra.mxu0 %v8861_v14  ;;  %6888 = vmatprep.mubr.msk.f32.mxu0 %vm7980_vm8, %v10119_v44  ;;  %v10154_v14 = vld [vmem:[#allocation38_spill] sm:$0xff] }
 0x5fd   :  { %7689 = vmatprep.subr.bf16.mxu0 %v10120_v50 }
 0x600   :  { %7691 = vmatpush3.bf16.msra.mxu0 %v8865_v48 }
 0x601   :  { %7692 = vmatprep.subr.bf16.mxu0 %v10120_v50 }
 0x603   :  { %6889 = vmatmul.mubr.f32.vlgmr.msra.gmra.mrb[6].mxu0 %v4383_v8 }
 0x604   :  { %7694 = vmatpush3.bf16.msra.mxu0 %v8851_v42  ;;  %6899 = vmatprep.mubr.msk.f32.mxu0 %vm7980_vm8, %v10119_v44 }
 0x605   :  { %7695 = vmatprep.subr.bf16.mxu0 %v10120_v50 }
 0x608   :  { %7697 = vmatpush3.bf16.msra.mxu0 %v8854_v35 }
 0x609   :  { %7698 = vmatprep.subr.bf16.mxu0 %v10120_v50 }
 0x60b   :  { %6900 = vmatmul.mubr.f32.vlgmr.msra.gmra.mrb[6].mxu0 %v4384_v30 }
 0x60c   :  { %7700 = vmatpush3.bf16.msra.mxu0 %v8867_v36  ;;  %6910 = vmatprep.mubr.msk.f32.mxu0 %vm7980_vm8, %v10119_v44 }
 0x60d   :  { %7701 = vmatprep.subr.bf16.mxu0 %v10120_v50 }
 0x610   :  { %7703 = vmatpush3.bf16.msra.mxu0 %v8869_v37 }
 0x611   :  { %7704 = vmatprep.subr.bf16.mxu0 %v10120_v50 }
 0x613   :  { %6911 = vmatmul.mubr.f32.vlgmr.msra.gmra.mrb[6].mxu0 %v4382_v32 }
 0x614   :  { %7706 = vmatpush3.bf16.msra.mxu0 %v8851_v42  ;;  %6921 = vmatprep.mubr.msk.f32.mxu0 %vm7980_vm8, %v10119_v44 }
 0x615   :  { %7707 = vmatprep.subr.bf16.mxu0 %v10120_v50 }
 0x618   :  { %7709 = vmatpush3.bf16.msra.mxu0 %v8854_v35 }
 0x619   :  { %7710 = vmatprep.subr.bf16.mxu0 %v10120_v50 }
 0x61b   :  { %6922 = vmatmul.mubr.f32.vlgmr.msra.gmra.mrb[6].mxu0 %v4382_v32 }
 0x61c   :  { %7712 = vmatpush3.bf16.msra.mxu0 %v9194_v40  ;;  %6956 = vmatprep.mubr.msk.f32.mxu0 %vm7980_vm8, %v10119_v44 }
 0x61d   :  { %7713 = vmatprep.subr.bf16.mxu0 %v10120_v50 }
 0x620   :  { %7715 = vmatpush3.bf16.msra.mxu0 %v9231_v9 }
 0x621   :  { %7716 = vmatprep.subr.bf16.mxu0 %v10120_v50 }
 0x624   :  { %7718 = vmatpush3.bf16.msra.mxu0 %v9263_v41 }
 0x625   :  { %7719 = vmatprep.subr.bf16.mxu0 %v10120_v50 }
 0x628   :  { %7721 = vmatpush3.bf16.msra.mxu0 %v9288_v18 }
 0x629   :  { %7722 = vmatprep.subr.bf16.mxu0 %v10120_v50 }
 0x62c   :  { %7724 = vmatpush3.bf16.msra.mxu0 %v9316_v15 }
 0x62d   :  { %7725 = vmatprep.subr.bf16.mxu0 %v10120_v50 }
 0x630   :  { %7727 = vmatpush3.bf16.msra.mxu0 %v9330_v34 }
 0x631   :  { %7728 = vmatprep.subr.bf16.mxu0 %v10120_v50 }
 0x634   :  { %7730 = vmatpush3.bf16.msra.mxu0 %v9350_v49 }
 0x635   :  { %7731 = vmatprep.subr.bf16.mxu0 %v10120_v50 }
 0x638   :  { %7733 = vmatpush3.bf16.msra.mxu0 %v9358_v12 }
 0x639   :  { %7734 = vmatprep.subr.bf16.mxu0 %v10120_v50 }
 0x646   :  { %v2217_v42 = vpop.f32.mrb[4].mxu1 }
 0x647   :  { %v6406_v35 = vpop.f32.mrb[5].mxu1 }
 0x648   :  { %v10156_v35 = vld [vmem:[#allocation2_spill] sm:$0xff] }
 0x676   :  { %v3447_v53 = vpop.f32.mrb[6].mxu1 }
 0x677   :  { %v7860_v1 = vadd.f32 %v3447_v53, %v10154_v14  ;;  %v6647_v48 = vpop.f32.mrb[7].mxu1  ;;  %v2128_v53 = vsub.s32 5, %v10156_v35 }
 0x678   :  { %v7978_v48 = vld [vmem:[%s9985_s1] sm:$0x3f] }
 0x679   :  { %v3452_v36 = vmul.f32 0.70710677, %v7860_v1  ;;  %v3451_v26 = vmul.f32 0.5, %v7860_v1  ;;  %v10157_v1 = vld [vmem:[#allocation29_spill] sm:$0xff] }
 0x67b   :  { %v3455_v37 = vand.u32 2147483647, %v3452_v36  ;;  %vm3453_vm11 = vcmp.lt.f32.partialorder %v3452_v36, 0.0  ;;  %v9663_v36 = vrot.slane %v7978_v48, %v2128_v53  ;;  %v10168_v53 = vld [vmem:[#allocation18_spill] sm:$0xff] }
 0x67c   :  { %v3454_v4 = vsel %vm3453_vm11, -1.0, %v10134_v62 }
 0x67d   :  { %v3456_v3 = vmul.f32 0.3275911, %v3455_v37  ;;  %v3469_v33 = vsub.f32 0.0, %v3455_v37 }
 0x67f   :  { %v3457_v59 = vadd.f32 1.0, %v3456_v3  ;;  %v3470_v63 = vmul.f32 %v3469_v33, %v3455_v37  ;;  %v10158_v37 = vld [vmem:[#allocation30_spill] sm:$0xff]  ;;  %v2218_v3 = vadd.f32 %v2217_v42, %v9663_v36  ;;  %v10162_v42 = vld [vmem:[#allocation13_spill] sm:$0xff] }
 0x681   :  { %7960 = vrcp.f32 %v3457_v59  ;;  %v3471_v47 = vmul.f32 1.442695, %v3470_v63 }
 0x683   :  { %7962 = vpow2.f32 %v3471_v47 }
 0x68b   :  { %v7961_v54 = vpop.eup %7960 }
 0x68c   :  { %v3460_v27 = vmul.f32 1.0614054, %v7961_v54 }
 0x68d   :  { %v7963_v13 = vpop.eup %7962 }
 0x68e   :  { %v3461_v43 = vadd.f32 -1.4531521, %v3460_v27 }
 0x690   :  { %v3462_v55 = vmul.f32 %v7961_v54, %v3461_v43 }
 0x692   :  { %v3463_v19 = vadd.f32 1.4214138, %v3462_v55 }
 0x694   :  { %v3464_v58 = vmul.f32 %v7961_v54, %v3463_v19 }
 0x696   :  { %v3465_v57 = vadd.f32 -0.28449672, %v3464_v58 }
 0x698   :  { %v3466_v23 = vmul.f32 %v7961_v54, %v3465_v57 }
 0x69a   :  { %v3467_v31 = vadd.f32 0.2548296, %v3466_v23  ;;  %v10160_v23 = vld [vmem:[#allocation11_spill] sm:$0xff] }
 0x69c   :  { %v3468_v21 = vmul.f32 %v7961_v54, %v3467_v31  ;;  %v10159_v54 = vld [vmem:[#allocation31_spill] sm:$0xff] }
 0x69e   :  { %v3473_v51 = vmul.f32 %v7963_v13, %v3468_v21  ;;  %v10161_v21 = vld [vmem:[#allocation12_spill] sm:$0xff] }
 0x6a0   :  { %v3474_v16 = vsub.f32 1.0, %v3473_v51 }
 0x6a2   :  { %v3475_v46 = vmul.f32 %v3474_v16, %v3454_v4  ;;  %v10163_v16 = vld [vmem:[#allocation14_spill] sm:$0xff] }
 0x6a4   :  { %v3476_v24 = vadd.f32 1.0, %v3475_v46  ;;  %v10164_v46 = vld [vmem:[#allocation15_spill] sm:$0xff] }
 0x6a6   :  { %v3477_v0 = vmul.f32 %v3476_v24, %v3451_v26  ;;  %v10165_v24 = vld [vmem:[#allocation32_spill] sm:$0xff] }
 0x6a8   :  { %v9644_v25 = vand.u32 4294901760, %v3477_v0 }
 0x6aa   :  { %v9647_v32 = vsub.f32 %v3477_v0, %v9644_v25  ;;  %v10166_v0 = vld [vmem:[#allocation16_spill] sm:$0xff] }
 0x6ac   :  { %v3561_v8 = vand.u32 4294901760, %v9647_v32 }
 0x6ae   :  { %v3562_v30 = vsub.f32 %v9647_v32, %v3561_v8 }
 0x6b0   :  { %v3563_v39 = vand.u32 4294901760, %v3562_v30 }
 0x6b2   :  { %6681 = vmatmul.mubr.f32.vlgmr.msra.gmra.mrb[8].mxu1 %v3563_v39  ;;  %v10167_v39 = vld [vmem:[#allocation17_spill] sm:$0xff] }
 0x6b3   :  { %7556 = vmatpush3.bf16.msra.mxu1 %v10155_v7  ;;  %6715 = vmatprep.mubr.msk.f32.mxu1 %vm7980_vm8, %v10119_v44 }
 0x6b4   :  { %7557 = vmatprep.subr.bf16.mxu1 %v10120_v50 }
 0x6b7   :  { %7559 = vmatpush3.bf16.msra.mxu1 %v10157_v1 }
 0x6b8   :  { %7560 = vmatprep.subr.bf16.mxu1 %v10120_v50 }
 0x6bb   :  { %7562 = vmatpush3.bf16.msra.mxu1 %v10158_v37 }
 0x6bc   :  { %7563 = vmatprep.subr.bf16.mxu1 %v10120_v50 }
 0x6be   :  { %v2767_v59 = vpop.f32.mrb[4].mxu0 }
 0x6bf   :  { %v7859_v33 = vadd.f32 %v2767_v59, %v2218_v3  ;;  %7565 = vmatpush3.bf16.msra.mxu1 %v10159_v54  ;;  %v6581_v63 = vpop.f32.mrb[5].mxu0  ;;  %v10169_v3 = vld [vmem:[#allocation33_spill] sm:$0xff]  ;;  %v10170_v59 = vld [vmem:[#allocation36_spill] sm:$0xff] }
 0x6c0   :  { %7566 = vmatprep.subr.bf16.mxu1 %v10120_v50 }
 0x6c1   :  { %v2772_v27 = vrot.slane %v7859_v33, 1  ;;  %v2773_v43 = vrot.slane %v7859_v33, 2  ;;  %v2774_v47 = vrot.slane %v7859_v33, 3  ;;  %v2775_v55 = vrot.slane %v7859_v33, 4 }
 0x6c2   :  { %v2776_v19 = vrot.slane %v7859_v33, 5  ;;  %v2777_v58 = vrot.slane %v7859_v33, 6  ;;  %v2778_v57 = vrot.slane %v7859_v33, 7  ;;  %v2787_v31 = vadd.f32 %v7859_v33, %v10160_v23  ;;  %v10171_v33 = vld [vmem:[#allocation37_spill] sm:$0xff] }
 0x6c3   :  { %v2788_v13 = vadd.f32 %v2772_v27, %v10161_v21  ;;  %v2789_v51 = vadd.f32 %v2773_v43, %v10162_v42  ;;  %v2790_v4 = vadd.f32 %v2774_v47, %v10163_v16  ;;  %v2791_v26 = vadd.f32 %v2775_v55, %v10164_v46  ;;  %7568 = vmatpush3.bf16.msra.mxu1 %v10165_v24 }
 0x6c4   :  { %v2792_v30 = vadd.f32 %v2776_v19, %v10166_v0  ;;  %v2793_v35 = vadd.f32 %v2777_v58, %v10167_v39  ;;  %v2794_v48 = vadd.f32 %v2778_v57, %v10168_v53  ;;  %2796 = vst.msk [vmem:[%s9990_s7] sm:$0x1] %vm2795_vm12, %v2787_v31  ;;  %7569 = vmatprep.subr.bf16.mxu1 %v10120_v50 }
 0x6c5   :  { %2797 = vst.msk [vmem:[%s9990_s7 + $0x4] sm:$0x1] %vm2795_vm12, %v2788_v13  ;;  %2798 = vst.msk [vmem:[%s9990_s7 + $0x8] sm:$0x1] %vm2795_vm12, %v2789_v51 }
 0x6c6   :  { %2799 = vst.msk [vmem:[%s9990_s7 + $0xc] sm:$0x1] %vm2795_vm12, %v2790_v4  ;;  %2800 = vst.msk [vmem:[%s9990_s7 + $0x10] sm:$0x1] %vm2795_vm12, %v2791_v26 }
 0x6c7   :  { %2801 = vst.msk [vmem:[%s9990_s7 + $0x14] sm:$0x1] %vm2795_vm12, %v2792_v30  ;;  %2802 = vst.msk [vmem:[%s9990_s7 + $0x18] sm:$0x1] %vm2795_vm12, %v2793_v35  ;;  %7571 = vmatpush3.bf16.msra.mxu1 %v10169_v3 }
 0x6c8   :  { %2803 = vst.msk [vmem:[%s9990_s7 + $0x1c] sm:$0x1] %vm2795_vm12, %v2794_v48  ;;  %7572 = vmatprep.subr.bf16.mxu1 %v10120_v50 }
 0x6cb   :  { %7574 = vmatpush3.bf16.msra.mxu1 %v10170_v59 }
 0x6cc   :  { %7575 = vmatprep.subr.bf16.mxu1 %v10120_v50 }
 0x6cf   :  { %7577 = vmatpush3.bf16.msra.mxu1 %v10171_v33 }
 0x6d0   :  { %7578 = vmatprep.subr.bf16.mxu1 %v10120_v50 }
 0x6d2   :  { %6716 = vmatmul.mubr.f32.vlgmr.msra.gmra.mrb[8].mxu1 %v9644_v25 }
 0x6d3   :  { %7580 = vmatpush3.bf16.msra.mxu1 %v9298_v11  ;;  %6750 = vmatprep.mubr.msk.f32.mxu1 %vm7980_vm8, %v10119_v44 }
 0x6d4   :  { %7581 = vmatprep.subr.bf16.mxu1 %v10120_v50 }
 0x6d7   :  { %7583 = vmatpush3.bf16.msra.mxu1 %v9302_v20 }
 0x6d8   :  { %7584 = vmatprep.subr.bf16.mxu1 %v10120_v50 }
 0x6db   :  { %7586 = vmatpush3.bf16.msra.mxu1 %v9341_v17 }
 0x6dc   :  { %7587 = vmatprep.subr.bf16.mxu1 %v10120_v50 }
 0x6df   :  { %7589 = vmatpush3.bf16.msra.mxu1 %v9348_v10 }
 0x6e0   :  { %7590 = vmatprep.subr.bf16.mxu1 %v10120_v50 }
 0x6e3   :  { %7592 = vmatpush3.bf16.msra.mxu1 %v9363_v38 }
 0x6e4   :  { %7593 = vmatprep.subr.bf16.mxu1 %v10120_v50 }
 0x6e7   :  { %7595 = vmatpush3.bf16.msra.mxu1 %v9368_v28 }
 0x6e8   :  { %7596 = vmatprep.subr.bf16.mxu1 %v10120_v50 }
 0x6eb   :  { %7598 = vmatpush3.bf16.msra.mxu1 %v9374_v60 }
 0x6ec   :  { %7599 = vmatprep.subr.bf16.mxu1 %v10120_v50 }
 0x6ee   :  { %v4794_v63 = vpop.f32.mrb[6].mxu0 }
 0x6ef   :  { %7601 = vmatpush3.bf16.msra.mxu1 %v9378_v52  ;;  %v7862_v27 = vadd.f32 %v4794_v63, %v10154_v14  ;;  %v6923_v43 = vpop.f32.mrb[7].mxu0 }
 0x6f0   :  { %7602 = vmatprep.subr.bf16.mxu1 %v10120_v50 }
 0x6f1   :  { %v4799_v47 = vmul.f32 0.70710677, %v7862_v27 }
 0x6f2   :  { %6751 = vmatmul.mubr.f32.vlgmr.msra.gmra.mrb[8].mxu1 %v9647_v32 }
 0x6f3   :  { %v4802_v55 = vand.u32 2147483647, %v4799_v47  ;;  %7604 = vmatpush3.bf16.msra.mxu1 %v9194_v40  ;;  %6785 = vmatprep.mubr.msk.f32.mxu1 %vm7980_vm8, %v10119_v44  ;;  %vm4800_vm13 = vcmp.lt.f32.partialorder %v4799_v47, 0.0 }
 0x6f4   :  { %7605 = vmatprep.subr.bf16.mxu1 %v10120_v50  ;;  %v4801_v53 = vsel %vm4800_vm13, -1.0, %v10134_v62 }
 0x6f5   :  { %v4803_v19 = vmul.f32 0.3275911, %v4802_v55  ;;  %v4816_v14 = vsub.f32 0.0, %v4802_v55 }
 0x6f7   :  { %v4804_v58 = vadd.f32 1.0, %v4803_v19  ;;  %7607 = vmatpush3.bf16.msra.mxu1 %v9231_v9  ;;  %v4817_v23 = vmul.f32 %v4816_v14, %v4802_v55 }
 0x6f8   :  { %7608 = vmatprep.subr.bf16.mxu1 %v10120_v50 }
 0x6f9   :  { %7964 = vrcp.f32 %v4804_v58  ;;  %v4818_v13 = vmul.f32 1.442695, %v4817_v23  ;;  %v10180_v58 = vld [vmem:[#allocation24_spill] sm:$0xff] }
 0x6fb   :  { %7610 = vmatpush3.bf16.msra.mxu1 %v9263_v41  ;;  %7966 = vpow2.f32 %v4818_v13  ;;  %v10183_v13 = vld [vmem:[#allocation21_spill] sm:$0xff] }
 0x6fc   :  { %7611 = vmatprep.subr.bf16.mxu1 %v10120_v50 }
 0x6ff   :  { %7613 = vmatpush3.bf16.msra.mxu1 %v9288_v18 }
 0x700   :  { %7614 = vmatprep.subr.bf16.mxu1 %v10120_v50 }
 0x703   :  { %v7965_v57 = vpop.eup %7964  ;;  %7616 = vmatpush3.bf16.msra.mxu1 %v9316_v15 }
 0x704   :  { %v4807_v31 = vmul.f32 1.0614054, %v7965_v57  ;;  %7617 = vmatprep.subr.bf16.mxu1 %v10120_v50 }
 0x705   :  { %v7967_v30 = vpop.eup %7966 }
 0x706   :  { %v4808_v21 = vadd.f32 -1.4531521, %v4807_v31  ;;  %v10182_v31 = vld [vmem:[#allocation20_spill] sm:$0xff] }
 0x707   :  { %7619 = vmatpush3.bf16.msra.mxu1 %v9330_v34 }
 0x708   :  { %v4809_v42 = vmul.f32 %v7965_v57, %v4808_v21  ;;  %7620 = vmatprep.subr.bf16.mxu1 %v10120_v50 }
 0x70a   :  { %v4810_v51 = vadd.f32 1.4214138, %v4809_v42 }
 0x70b   :  { %7622 = vmatpush3.bf16.msra.mxu1 %v9350_v49 }
 0x70c   :  { %v4811_v16 = vmul.f32 %v7965_v57, %v4810_v51  ;;  %7623 = vmatprep.subr.bf16.mxu1 %v10120_v50  ;;  %v10184_v51 = vld [vmem:[#allocation22_spill] sm:$0xff] }
 0x70e   :  { %v4812_v4 = vadd.f32 -0.28449672, %v4811_v16 }
 0x70f   :  { %7625 = vmatpush3.bf16.msra.mxu1 %v9358_v12 }
 0x710   :  { %v4813_v46 = vmul.f32 %v7965_v57, %v4812_v4  ;;  %7626 = vmatprep.subr.bf16.mxu1 %v10120_v50  ;;  %v10185_v4 = vld [vmem:[#allocation23_spill] sm:$0xff] }
 0x712   :  { %v4814_v26 = vadd.f32 0.2548296, %v4813_v46  ;;  %6786 = vmatmul.mubr.f32.vlgmr.msra.gmra.mrb[8].mxu1 %v3561_v8  ;;  %v4798_v8 = vmul.f32 0.5, %v7862_v27  ;;  %v10186_v46 = vld [vmem:[#allocation25_spill] sm:$0xff] }
 0x713   :  { %7628 = vmatpush3.bf16.msra.mxu1 %v9487_v5  ;;  %6820 = vmatprep.mubr.msk.f32.mxu1 %vm7980_vm8, %v10119_v44 }
 0x714   :  { %v4815_v0 = vmul.f32 %v7965_v57, %v4814_v26  ;;  %7629 = vmatprep.subr.bf16.mxu1 %v10120_v50  ;;  %v10181_v57 = vld [vmem:[#allocation19_spill] sm:$0xff] }
 0x716   :  { %v4820_v39 = vmul.f32 %v7967_v30, %v4815_v0  ;;  %v10187_v0 = vld [vmem:[#allocation26_spill] sm:$0xff] }
 0x717   :  { %7631 = vmatpush3.bf16.msra.mxu1 %v9499_v22 }
 0x718   :  { %v4821_v35 = vsub.f32 1.0, %v4820_v39  ;;  %7632 = vmatprep.subr.bf16.mxu1 %v10120_v50 }
 0x71a   :  { %v4822_v32 = vmul.f32 %v4821_v35, %v4801_v53 }
 0x71b   :  { %7634 = vmatpush3.bf16.msra.mxu1 %v9511_v6 }
 0x71c   :  { %v4823_v48 = vadd.f32 1.0, %v4822_v32  ;;  %7635 = vmatprep.subr.bf16.mxu1 %v10120_v50 }
 0x71e   :  { %v4824_v63 = vmul.f32 %v4823_v48, %v4798_v8 }
 0x71f   :  { %7637 = vmatpush3.bf16.msra.mxu1 %v9521_v61 }
 0x720   :  { %v9769_v43 = vand.u32 4294901760, %v4824_v63  ;;  %7638 = vmatprep.subr.bf16.mxu1 %v10120_v50 }
 0x722   :  { %v9773_v47 = vsub.f32 %v4824_v63, %v9769_v43 }
 0x723   :  { %7640 = vmatpush3.bf16.msra.mxu1 %v9531_v56 }
 0x724   :  { %7641 = vmatprep.subr.bf16.mxu1 %v10120_v50  ;;  %v4908_v62 = vand.u32 4294901760, %v9773_v47 }
 0x726   :  { %v4909_v27 = vsub.f32 %v9773_v47, %v4908_v62 }
 0x727   :  { %7643 = vmatpush3.bf16.msra.mxu1 %v9541_v2 }
 0x728   :  { %7644 = vmatprep.subr.bf16.mxu1 %v10120_v50  ;;  %v4910_v55 = vand.u32 4294901760, %v4909_v27 }
 0x72a   :  { %6957 = vmatmul.mubr.f32.vlgmr.msra.gmra.mrb[8].mxu0 %v4910_v55 }
 0x72b   :  { %7646 = vmatpush3.bf16.msra.mxu1 %v9551_v29  ;;  %7736 = vmatpush3.bf16.msra.mxu0 %v10155_v7 }
 0x72c   :  { %7647 = vmatprep.subr.bf16.mxu1 %v10120_v50  ;;  %7737 = vmatprep.subr.bf16.mxu0 %v10120_v50 }
 0x72d   :  { %6991 = vmatprep.mubr.msk.f32.mxu0 %vm7980_vm8, %v10119_v44 }
 0x72f   :  { %7649 = vmatpush3.bf16.msra.mxu1 %v9561_v45  ;;  %7739 = vmatpush3.bf16.msra.mxu0 %v10157_v1 }
 0x730   :  { %7650 = vmatprep.subr.bf16.mxu1 %v10120_v50  ;;  %7740 = vmatprep.subr.bf16.mxu0 %v10120_v50 }
 0x732   :  { %6821 = vmatmul.mubr.f32.vlgmr.msra.gmra.mrb[8].mxu1 %v9644_v25 }
 0x733   :  { %7652 = vmatpush3.bf16.msra.mxu1 %v9194_v40  ;;  %7742 = vmatpush3.bf16.msra.mxu0 %v10158_v37 }
 0x734   :  { %7653 = vmatprep.subr.bf16.mxu1 %v10120_v50  ;;  %7743 = vmatprep.subr.bf16.mxu0 %v10120_v50 }
 0x735   :  { %6855 = vmatprep.mubr.msk.f32.mxu1 %vm7980_vm8, %v10119_v44 }
 0x737   :  { %7655 = vmatpush3.bf16.msra.mxu1 %v9231_v9  ;;  %7745 = vmatpush3.bf16.msra.mxu0 %v10159_v54 }
 0x738   :  { %7656 = vmatprep.subr.bf16.mxu1 %v10120_v50  ;;  %7746 = vmatprep.subr.bf16.mxu0 %v10120_v50 }
 0x73b   :  { %7658 = vmatpush3.bf16.msra.mxu1 %v9263_v41  ;;  %7748 = vmatpush3.bf16.msra.mxu0 %v10165_v24 }
 0x73c   :  { %7659 = vmatprep.subr.bf16.mxu1 %v10120_v50  ;;  %7749 = vmatprep.subr.bf16.mxu0 %v10120_v50 }
 0x73f   :  { %7661 = vmatpush3.bf16.msra.mxu1 %v9288_v18  ;;  %7751 = vmatpush3.bf16.msra.mxu0 %v10169_v3 }
 0x740   :  { %7662 = vmatprep.subr.bf16.mxu1 %v10120_v50  ;;  %7752 = vmatprep.subr.bf16.mxu0 %v10120_v50 }
 0x743   :  { %7664 = vmatpush3.bf16.msra.mxu1 %v9316_v15  ;;  %7754 = vmatpush3.bf16.msra.mxu0 %v10170_v59 }
 0x744   :  { %7665 = vmatprep.subr.bf16.mxu1 %v10120_v50  ;;  %7755 = vmatprep.subr.bf16.mxu0 %v10120_v50 }
 0x747   :  { %7667 = vmatpush3.bf16.msra.mxu1 %v9330_v34  ;;  %7757 = vmatpush3.bf16.msra.mxu0 %v10171_v33 }
 0x748   :  { %7668 = vmatprep.subr.bf16.mxu1 %v10120_v50  ;;  %7758 = vmatprep.subr.bf16.mxu0 %v10120_v50 }
 0x74a   :  { %6992 = vmatmul.mubr.f32.vlgmr.msra.gmra.mrb[8].mxu0 %v9769_v43 }
 0x74b   :  { %7670 = vmatpush3.bf16.msra.mxu1 %v9350_v49  ;;  %7760 = vmatpush3.bf16.msra.mxu0 %v9298_v11 }
 0x74c   :  { %7671 = vmatprep.subr.bf16.mxu1 %v10120_v50  ;;  %7761 = vmatprep.subr.bf16.mxu0 %v10120_v50 }
 0x74d   :  { %7026 = vmatprep.mubr.msk.f32.mxu0 %vm7980_vm8, %v10119_v44 }
 0x74f   :  { %7673 = vmatpush3.bf16.msra.mxu1 %v9358_v12  ;;  %7763 = vmatpush3.bf16.msra.mxu0 %v9302_v20 }
 0x750   :  { %7764 = vmatprep.subr.bf16.mxu0 %v10120_v50 }
 0x752   :  { %6856 = vmatmul.mubr.f32.vlgmr.msra.gmra.mrb[8].mxu1 %v9644_v25 }
 0x753   :  { %7766 = vmatpush3.bf16.msra.mxu0 %v9341_v17 }
 0x754   :  { %7767 = vmatprep.subr.bf16.mxu0 %v10120_v50 }
 0x757   :  { %7769 = vmatpush3.bf16.msra.mxu0 %v9348_v10  ;;  %v10172_v10 = vld [vmem:[#allocation7_spill] sm:$0xff] }
 0x758   :  { %7770 = vmatprep.subr.bf16.mxu0 %v10120_v50 }
 0x75b   :  { %7772 = vmatpush3.bf16.msra.mxu0 %v9363_v38 }
 0x75c   :  { %7773 = vmatprep.subr.bf16.mxu0 %v10120_v50 }
 0x75f   :  { %7775 = vmatpush3.bf16.msra.mxu0 %v9368_v28 }
 0x760   :  { %7776 = vmatprep.subr.bf16.mxu0 %v10120_v50 }
 0x763   :  { %7778 = vmatpush3.bf16.msra.mxu0 %v9374_v60 }
 0x764   :  { %7779 = vmatprep.subr.bf16.mxu0 %v10120_v50 }
 0x767   :  { %7781 = vmatpush3.bf16.msra.mxu0 %v9378_v52 }
 0x768   :  { %7782 = vmatprep.subr.bf16.mxu0 %v10120_v50 }
 0x76a   :  { %7027 = vmatmul.mubr.f32.vlgmr.msra.gmra.mrb[8].mxu0 %v9773_v47 }
 0x76b   :  { %7784 = vmatpush3.bf16.msra.mxu0 %v9194_v40  ;;  %7061 = vmatprep.mubr.msk.f32.mxu0 %vm7980_vm8, %v10119_v44 }
 0x76c   :  { %7785 = vmatprep.subr.bf16.mxu0 %v10120_v50 }
 0x76f   :  { %7787 = vmatpush3.bf16.msra.mxu0 %v9231_v9 }
 0x770   :  { %7788 = vmatprep.subr.bf16.mxu0 %v10120_v50 }
 0x773   :  { %7790 = vmatpush3.bf16.msra.mxu0 %v9263_v41 }
 0x774   :  { %7791 = vmatprep.subr.bf16.mxu0 %v10120_v50 }
 0x777   :  { %7793 = vmatpush3.bf16.msra.mxu0 %v9288_v18 }
 0x778   :  { %7794 = vmatprep.subr.bf16.mxu0 %v10120_v50 }
 0x77b   :  { %7796 = vmatpush3.bf16.msra.mxu0 %v9316_v15 }
 0x77c   :  { %7797 = vmatprep.subr.bf16.mxu0 %v10120_v50 }
 0x77f   :  { %7799 = vmatpush3.bf16.msra.mxu0 %v9330_v34 }
 0x780   :  { %7800 = vmatprep.subr.bf16.mxu0 %v10120_v50 }
 0x783   :  { %7802 = vmatpush3.bf16.msra.mxu0 %v9350_v49 }
 0x784   :  { %7803 = vmatprep.subr.bf16.mxu0 %v10120_v50 }
 0x787   :  { %7805 = vmatpush3.bf16.msra.mxu0 %v9358_v12 }
 0x788   :  { %7806 = vmatprep.subr.bf16.mxu0 %v10120_v50 }
 0x78a   :  { %7062 = vmatmul.mubr.f32.vlgmr.msra.gmra.mrb[8].mxu0 %v4908_v62 }
 0x78b   :  { %7808 = vmatpush3.bf16.msra.mxu0 %v9487_v5  ;;  %7096 = vmatprep.mubr.msk.f32.mxu0 %vm7980_vm8, %v10119_v44  ;;  %v10176_v5 = vld [vmem:[#allocation6_spill] sm:$0xff] }
 0x78c   :  { %7809 = vmatprep.subr.bf16.mxu0 %v10120_v50 }
 0x78f   :  { %7811 = vmatpush3.bf16.msra.mxu0 %v9499_v22 }
 0x790   :  { %7812 = vmatprep.subr.bf16.mxu0 %v10120_v50 }
 0x793   :  { %7814 = vmatpush3.bf16.msra.mxu0 %v9511_v6  ;;  %v10177_v6 = vld [vmem:[#allocation8_spill] sm:$0xff] }
 0x794   :  { %7815 = vmatprep.subr.bf16.mxu0 %v10120_v50 }
 0x797   :  { %7817 = vmatpush3.bf16.msra.mxu0 %v9521_v61 }
 0x798   :  { %7818 = vmatprep.subr.bf16.mxu0 %v10120_v50 }
 0x79b   :  { %7820 = vmatpush3.bf16.msra.mxu0 %v9531_v56  ;;  %v10178_v56 = vld [vmem:[#allocation9_spill] sm:$0xff] }
 0x79c   :  { %7821 = vmatprep.subr.bf16.mxu0 %v10120_v50 }
 0x79f   :  { %7823 = vmatpush3.bf16.msra.mxu0 %v9541_v2 }
 0x7a0   :  { %7824 = vmatprep.subr.bf16.mxu0 %v10120_v50 }
 0x7a3   :  { %7826 = vmatpush3.bf16.msra.mxu0 %v9551_v29  ;;  %v10179_v29 = vld [vmem:[#allocation10_spill] sm:$0xff] }
 0x7a4   :  { %7827 = vmatprep.subr.bf16.mxu0 %v10120_v50 }
 0x7a7   :  { %7829 = vmatpush3.bf16.msra.mxu0 %v9561_v45 }
 0x7a8   :  { %7830 = vmatprep.subr.bf16.mxu0 %v10120_v50 }
 0x7aa   :  { %7097 = vmatmul.mubr.f32.vlgmr.msra.gmra.mrb[8].mxu0 %v9769_v43 }
 0x7ab   :  { %7832 = vmatpush3.bf16.msra.mxu0 %v9194_v40  ;;  %7131 = vmatprep.mubr.msk.f32.mxu0 %vm7980_vm8, %v10119_v44 }
 0x7ac   :  { %7833 = vmatprep.subr.bf16.mxu0 %v10120_v50 }
 0x7af   :  { %7835 = vmatpush3.bf16.msra.mxu0 %v9231_v9 }
 0x7b0   :  { %7836 = vmatprep.subr.bf16.mxu0 %v10120_v50 }
 0x7b3   :  { %7838 = vmatpush3.bf16.msra.mxu0 %v9263_v41 }
 0x7b4   :  { %7839 = vmatprep.subr.bf16.mxu0 %v10120_v50 }
 0x7b7   :  { %7841 = vmatpush3.bf16.msra.mxu0 %v9288_v18 }
 0x7b8   :  { %7842 = vmatprep.subr.bf16.mxu0 %v10120_v50 }
 0x7bb   :  { %7844 = vmatpush3.bf16.msra.mxu0 %v9316_v15 }
 0x7bc   :  { %7845 = vmatprep.subr.bf16.mxu0 %v10120_v50 }
 0x7bf   :  { %7847 = vmatpush3.bf16.msra.mxu0 %v9330_v34 }
 0x7c0   :  { %7848 = vmatprep.subr.bf16.mxu0 %v10120_v50 }
 0x7c3   :  { %7850 = vmatpush3.bf16.msra.mxu0 %v9350_v49  ;;  %v10173_v49 = vld [vmem:[#allocation3_spill] sm:$0xff] }
 0x7c4   :  { %7851 = vmatprep.subr.bf16.mxu0 %v10120_v50  ;;  %v10174_v50 = vld [vmem:[#allocation4_spill] sm:$0xff] }
 0x7c7   :  { %7853 = vmatpush3.bf16.msra.mxu0 %v9358_v12  ;;  %v10175_v12 = vld [vmem:[#allocation5_spill] sm:$0xff] }
 0x7ca   :  { %7132 = vmatmul.mubr.f32.vlgmr.msra.gmra.mrb[8].mxu0 %v9769_v43 }
 0x825   :  { %v4115_v44 = vpop.f32.mrb[8].mxu1 }
 0x826   :  { %v7861_v41 = vadd.f32 %v4115_v44, %v9663_v36  ;;  %v6857_v40 = vpop.f32.mrb[9].mxu1 }
 0x828   :  { %v4120_v9 = vrot.slane %v7861_v41, 1  ;;  %v4121_v15 = vrot.slane %v7861_v41, 2  ;;  %v4122_v18 = vrot.slane %v7861_v41, 3  ;;  %v4123_v11 = vrot.slane %v7861_v41, 4 }
 0x829   :  { %v4124_v20 = vrot.slane %v7861_v41, 5  ;;  %v4125_v34 = vrot.slane %v7861_v41, 6  ;;  %v4126_v17 = vrot.slane %v7861_v41, 7  ;;  %v4135_v38 = vadd.f32 %v7861_v41, %v10172_v10 }
 0x82a   :  { %v4136_v28 = vadd.f32 %v4120_v9, %v10173_v49  ;;  %v4137_v60 = vadd.f32 %v4121_v15, %v10174_v50  ;;  %v4138_v52 = vadd.f32 %v4122_v18, %v10175_v12  ;;  %v4139_v22 = vadd.f32 %v4123_v11, %v10176_v5 }
 0x82b   :  { %v4140_v61 = vadd.f32 %v4124_v20, %v10177_v6  ;;  %v4141_v2 = vadd.f32 %v4125_v34, %v10178_v56  ;;  %v4142_v45 = vadd.f32 %v4126_v17, %v10179_v29  ;;  %4143 = vst.msk [vmem:[%s9990_s7 + $0x1] sm:$0x1] %vm2795_vm12, %v4135_v38 }
 0x82c   :  { %4144 = vst.msk [vmem:[%s9990_s7 + $0x5] sm:$0x1] %vm2795_vm12, %v4136_v28  ;;  %4145 = vst.msk [vmem:[%s9990_s7 + $0x9] sm:$0x1] %vm2795_vm12, %v4137_v60 }
 0x82d   :  { %4146 = vst.msk [vmem:[%s9990_s7 + $0xd] sm:$0x1] %vm2795_vm12, %v4138_v52  ;;  %4147 = vst.msk [vmem:[%s9990_s7 + $0x11] sm:$0x1] %vm2795_vm12, %v4139_v22 }
 0x82e   :  { %4148 = vst.msk [vmem:[%s9990_s7 + $0x15] sm:$0x1] %vm2795_vm12, %v4140_v61  ;;  %4149 = vst.msk [vmem:[%s9990_s7 + $0x19] sm:$0x1] %vm2795_vm12, %v4141_v2 }
 0x82f   :  { %4150 = vst.msk [vmem:[%s9990_s7 + $0x1d] sm:$0x1] %vm2795_vm12, %v4142_v45 }
 0x89d   :  { %v5462_v25 = vpop.f32.mrb[8].mxu0 }
 0x89e   :  { %v7863_v7 = vadd.f32 %v5462_v25, %v9663_v36  ;;  %v7133_v1 = vpop.f32.mrb[9].mxu0 }
 0x8a0   :  { %v5467_v37 = vrot.slane %v7863_v7, 1  ;;  %v5468_v54 = vrot.slane %v7863_v7, 2  ;;  %v5469_v24 = vrot.slane %v7863_v7, 3  ;;  %v5470_v3 = vrot.slane %v7863_v7, 4 }
 0x8a1   :  { %v5471_v59 = vrot.slane %v7863_v7, 5  ;;  %v5472_v33 = vrot.slane %v7863_v7, 6  ;;  %v5473_v19 = vrot.slane %v7863_v7, 7  ;;  %v5482_v14 = vadd.f32 %v7863_v7, %v10180_v58 }
 0x8a2   :  { %v5483_v23 = vadd.f32 %v5467_v37, %v10181_v57  ;;  %v5484_v21 = vadd.f32 %v5468_v54, %v10182_v31  ;;  %v5485_v42 = vadd.f32 %v5469_v24, %v10183_v13  ;;  %v5486_v16 = vadd.f32 %v5470_v3, %v10184_v51 }
 0x8a3   :  { %v5487_v36 = vadd.f32 %v5471_v59, %v10185_v4  ;;  %v5488_v26 = vadd.f32 %v5472_v33, %v10186_v46  ;;  %v5489_v30 = vadd.f32 %v5473_v19, %v10187_v0  ;;  %5490 = vst.msk [vmem:[%s9990_s7 + $0x2] sm:$0x1] %vm2795_vm12, %v5482_v14 }
 0x8a4   :  { %5491 = vst.msk [vmem:[%s9990_s7 + $0x6] sm:$0x1] %vm2795_vm12, %v5483_v23  ;;  %5492 = vst.msk [vmem:[%s9990_s7 + $0xa] sm:$0x1] %vm2795_vm12, %v5484_v21 }
 0x8a5   :  { %5493 = vst.msk [vmem:[%s9990_s7 + $0xe] sm:$0x1] %vm2795_vm12, %v5485_v42  ;;  %5494 = vst.msk [vmem:[%s9990_s7 + $0x12] sm:$0x1] %vm2795_vm12, %v5486_v16 }
 0x8a6   :  { %5495 = vst.msk [vmem:[%s9990_s7 + $0x16] sm:$0x1] %vm2795_vm12, %v5487_v36  ;;  %5496 = vst.msk [vmem:[%s9990_s7 + $0x1a] sm:$0x1] %vm2795_vm12, %v5488_v26 }
 0x8a7   :  { %5497 = vst.msk [vmem:[%s9990_s7 + $0x1e] sm:$0x1] %vm2795_vm12, %v5489_v30 }

</bundles_post_ra>
